<compile_context>
chip_gen: v6e
topology: v6e:2x2x1
jax: 0.10.0
libtpu: 0.0.40
codegen_flags: <defaults>
</compile_context>

<pallas_src>
import functools

import jax
import jax.numpy as jnp
import numpy as np
from jax import lax
from jax.experimental import pallas as pl
from jax.experimental.pallas import tpu as pltpu


def _ds_ddb_fused_kernel(x_ref, vp_ref, wp_ref, o_ref, skip_ref, *,
                         depth, C, H, W, Wp, pad_top):
    """All `depth` dense stages for one batch element, fused.

    Layout: channels on sublanes, flat row-major (H, Wp) image on lanes, with
    Wp = W + 1 so every image row ends in one zero gap column.

    x_ref   : (1, C, H*Wp)        input, gap columns already zero (wrapper pad)
    vp_ref  : (maxCin, 16*depth)  stage i occupies columns [16i, 16i+16):
                                    cols 0..8  depthwise 3x3 taps (kh*3+kw),
                                    col  9     depthwise bias   (rows c0..maxCin)
                                    cols 10..13 pw bias, IN gamma, IN beta,
                                               PReLU alpha      (rows 0..C)
    wp_ref  : (depth*C, maxCin)   pointwise 1x1 weights, stage i rows [iC,(i+1)C)
    o_ref   : (1, C, H*Wp)        last-stage output (gap columns zero)
    skip_ref: (maxCin, HP*Wp)     VMEM scratch holding the growing skip tensor
                                  with `pad_top` zero halo rows top and bottom.
    """
    maxCin = C * depth
    HW = H * W
    HWp = H * Wp
    row0 = pad_top * Wp                     # flat offset of image row 0
    npad = float(H * (Wp - W))              # gap positions per channel

    # Zero only the row halos, every step.  (A once-only init under
    # pl.when(program_id == 0) would break when the "parallel" batch axis is
    # split across TensorCores, since the other core never sees program 0.)
    tail = skip_ref.shape[1] - row0 - HWp
    skip_ref[:, :row0] = jnp.zeros((maxCin, row0), jnp.float32)
    skip_ref[:, row0 + HWp:] = jnp.zeros((maxCin, tail), jnp.float32)

    # x goes into the LAST C channels (PyTorch cat prepends new outputs, so
    # stage i reads scratch channels [maxCin-(i+1)C : maxCin]).  Its gap
    # columns are already zero, so the column invariant holds.
    skip_ref[maxCin - C:, row0:row0 + HWp] = x_ref[0].astype(jnp.float32)

    # Gap-column mask (used only twice per stage, on C-channel tensors).
    col = lax.broadcasted_iota(jnp.int32, (1, HWp), 1) % Wp
    colmask = (col < W).astype(jnp.float32)

    out_w = None
    for i in range(depth):                  # unrolled; all shapes static
        dil = 2 ** i
        Cin = C * (i + 1)
        c0 = maxCin - Cin                   # live input channels: [c0:maxCin]

        # Per-stage params, loaded once (hoisted out of the tap loop).
        vpi = vp_ref[c0:, i * 16:i * 16 + 10].astype(jnp.float32)      # (Cin, 10)
        vpo = vp_ref[:C, i * 16 + 10:i * 16 + 14].astype(jnp.float32)  # (C, 4)

        # ---- depthwise dilated 3x3, "same" padding, LIVE channels only ------
        # The zero halo rows + zero gap columns make every tap a plain static
        # slice with no boundary masks.
        acc = None
        for kh in range(3):
            base = row0 + (kh - 1) * dil * Wp
            for kw in range(3):
                start = base + (kw - 1)
                patch = skip_ref[c0:, start:start + HWp]
                term = patch * vpi[:, kh * 3 + kw:kh * 3 + kw + 1]
                acc = term if acc is None else acc + term
        acc = acc + vpi[:, 9:10]            # depthwise bias

        # ---- pointwise 1x1 conv: (C, Cin) @ (Cin, H*Wp) on the MXU ----------
        y = jnp.dot(wp_ref[i * C:(i + 1) * C, c0:].astype(jnp.float32), acc,
                    preferred_element_type=jnp.float32)
        y = y + vpo[:, 0:1]                 # pointwise bias

        # ---- InstanceNorm2d (biased var, eps=1e-5) over the H*W valid cols --
        ym = y * colmask                    # gap columns held junk -> zero them
        mean = jnp.sum(ym, axis=1, keepdims=True) * (1.0 / HW)
        d = ym - mean
        # sum(d^2) counts each of the npad gap positions as (0-mean)^2; remove.
        var = (jnp.sum(d * d, axis=1, keepdims=True)
               - npad * mean * mean) * (1.0 / HW)
        var = jnp.maximum(var, 0.0)
        yn = d * lax.rsqrt(var + 1e-5)
        yn = yn * vpo[:, 1:2] + vpo[:, 2:3]

        # ---- PReLU (per-channel slope); re-zero gaps for the write-back -----
        out = jnp.where(yn >= 0, yn, vpo[:, 3:4] * yn)
        out_w = out * colmask

        if i < depth - 1:                   # torch.cat([out, skip], dim=1)
            skip_ref[c0 - C:c0, row0:row0 + HWp] = out_w

    o_ref[0] = out_w.astype(o_ref.dtype)


def _pack_params(params, C, depth):
    """Pack per-stage params into 2 lane-dense zero-padded arrays."""
    maxCin = C * depth
    vp = jnp.zeros((maxCin, 16 * depth), jnp.float32)
    wp = jnp.zeros((depth * C, maxCin), jnp.float32)
    for i, p in enumerate(params):
        Cin = C * (i + 1)
        c0 = maxCin - Cin                   # stage-i input chans = scratch [c0:]
        vp = vp.at[c0:, i * 16:i * 16 + 9].set(jnp.asarray(p["wd"], jnp.float32).T)
        vp = vp.at[c0:, i * 16 + 9].set(jnp.asarray(p["bd"], jnp.float32)[0])
        vp = vp.at[:C, i * 16 + 10].set(jnp.asarray(p["bp"], jnp.float32)[0])
        vp = vp.at[:C, i * 16 + 11].set(jnp.asarray(p["gamma"], jnp.float32)[0])
        vp = vp.at[:C, i * 16 + 12].set(jnp.asarray(p["beta"], jnp.float32)[0])
        vp = vp.at[:C, i * 16 + 13].set(jnp.asarray(p["alpha"], jnp.float32)[0])
        wp = wp.at[i * C:(i + 1) * C, c0:].set(jnp.asarray(p["wp"], jnp.float32).T)
    return vp, wp


def ds_ddb_forward(x_nchw, params):
    """Pallas implementation of DS_DDB.forward. Input/output are NCHW."""
    N, C, H, W = x_nchw.shape
    depth = len(params)
    maxCin = C * depth
    dmax = 2 ** (depth - 1)
    Wp = W + 1                              # one zero gap column per image row
    pad_top = dmax + 1                      # zero halo rows above/below image
    HP = H + 2 * pad_top
    HWp = H * Wp
    HW = H * W

    vp, wp = _pack_params(params, C, depth)
    x_g = jnp.pad(x_nchw, ((0, 0), (0, 0), (0, 0), (0, Wp - W))).reshape(N, C, HWp)

    kernel = functools.partial(_ds_ddb_fused_kernel, depth=depth, C=C, H=H, W=W,
                               Wp=Wp, pad_top=pad_top)

    # Footprint (with (8,128) tile padding) -> explicit scoped-VMEM limit.
    r8 = lambda v: -(-v // 8) * 8
    r128 = lambda v: -(-v // 128) * 128
    scratch_b = r8(maxCin) * r128(HP * Wp) * 4
    io_b = 2 * 2 * r8(C) * r128(HWp) * 4            # double-buffered in + out
    par_b = r8(maxCin) * r128(16 * depth) * 4 + r8(depth * C) * r128(maxCin) * 4
    footprint = scratch_b + io_b + par_b
    vmem_limit = int(min(96 * 2 ** 20, max(32 * 2 ** 20, 2 * footprint)))

    flops = 0
    for i in range(depth):
        Cin = C * (i + 1)
        flops += N * (18 * Cin * HW + 2 * C * Cin * HW + 10 * C * HW)
    cost = pl.CostEstimate(
        flops=int(flops),
        transcendentals=int(N * depth * C),
        bytes_accessed=int(4 * (2 * N * C * HW + vp.size + wp.size)))

    out = pl.pallas_call(
        kernel,
        out_shape=jax.ShapeDtypeStruct((N, C, HWp), x_nchw.dtype),
        grid=(N,),
        in_specs=[
            pl.BlockSpec((1, C, HWp), lambda n: (n, 0, 0)),
            pl.BlockSpec((maxCin, 16 * depth), lambda n: (0, 0)),
            pl.BlockSpec((depth * C, maxCin), lambda n: (0, 0)),
        ],
        out_specs=pl.BlockSpec((1, C, HWp), lambda n: (n, 0, 0)),
        scratch_shapes=[pltpu.VMEM((maxCin, HP * Wp), jnp.float32)],
        compiler_params=pltpu.CompilerParams(
            dimension_semantics=("parallel",),
            vmem_limit_bytes=vmem_limit),
        cost_estimate=cost,
    )(x_g, vp, wp)
    return out.reshape(N, C, H, Wp)[..., :W]


def init_params(key, dense_channel, depth=4):
    """Deterministic synthetic parameters mirroring the PyTorch module shapes.

    PyTorch shapes per stage i (Cin = dense_channel*(i+1), C = dense_channel):
      depthwise Conv2d weight (Cin, 1, 3, 3) -> stored here as (9, Cin)
      pointwise Conv2d weight (C, Cin, 1, 1) -> stored here transposed (Cin, C)
      InstanceNorm2d weight/bias (C,), PReLU weight (C,) -> stored as (1, C)
    """
    C = dense_channel
    params = []
    for i in range(depth):
        Cin = C * (i + 1)
        key, k1, k2, k3, k4 = jax.random.split(key, 5)
        params.append(dict(
            wd=0.2 * jax.random.normal(k1, (9, Cin), jnp.float32),
            bd=0.1 * jax.random.normal(k2, (1, Cin), jnp.float32),
            wp=(1.0 / jnp.sqrt(Cin))
               * jax.random.normal(k3, (Cin, C), jnp.float32),
            bp=0.1 * jax.random.normal(k4, (1, C), jnp.float32),
            gamma=jnp.ones((1, C), jnp.float32),        # InstanceNorm2d default
            beta=jnp.zeros((1, C), jnp.float32),
            alpha=jnp.full((1, C), 0.25, jnp.float32),  # PReLU default
        ))
    return params


def ref_forward(x_nchw, params):
    """Pure-JAX reference (mirrors the PyTorch forward) for correctness check."""
    x = jnp.transpose(x_nchw, (0, 2, 3, 1))
    skip = x
    out = x
    for i, p in enumerate(params):
        dil = 2 ** i
        Cin = skip.shape[-1]
        rhs = p["wd"].reshape(3, 3, Cin)[:, :, None, :]   # HWIO depthwise
        y = lax.conv_general_dilated(
            skip, rhs, window_strides=(1, 1),
            padding=((dil, dil), (1, 1)), rhs_dilation=(dil, 1),
            dimension_numbers=("NHWC", "HWIO", "NHWC"),
            feature_group_count=Cin)
        y = y + p["bd"][0]
        y = jnp.einsum("nhwc,cd->nhwd", y, p["wp"]) + p["bp"][0]
        mean = jnp.mean(y, axis=(1, 2), keepdims=True)
        var = jnp.mean((y - mean) ** 2, axis=(1, 2), keepdims=True)
        y = (y - mean) / jnp.sqrt(var + 1e-5)
        y = y * p["gamma"][0] + p["beta"][0]
        y = jnp.where(y >= 0, y, p["alpha"][0] * y)
        out = y
        skip = jnp.concatenate([out, skip], axis=-1)
    return jnp.transpose(out, (0, 3, 1, 2))


if __name__ == "__main__":
    key = jax.random.PRNGKey(0)
    N, C, H, W = 2, 4, 16, 16          # batch, dense_channel, spatial
    depth = 4
    kx, kp = jax.random.split(key)
    x = jax.random.normal(kx, (N, C, H, W), jnp.float32)   # NCHW like PyTorch
    params = init_params(kp, C, depth=depth)

    fwd = jax.jit(ds_ddb_forward)
    out = fwd(x, params)
    out = jax.block_until_ready(out)
    assert out.shape == (N, C, H, W)

    ref = ref_forward(x, params)
    np.testing.assert_allclose(np.asarray(out), np.asarray(ref),
                               rtol=1e-2, atol=1e-2)
    print("KERNEL_OK")
</pallas_src>

<mosaic_0001>
module attributes {stable_mosaic.version = 11 : i64} {
  func.func @_ds_ddb_fused_kernel(%arg0: i32, %arg1: memref<1x4x272xf32, #tpu.memory_space<vmem>>, %arg2: memref<16x64xf32, #tpu.memory_space<vmem>>, %arg3: memref<16x16xf32, #tpu.memory_space<vmem>>, %arg4: memref<1x4x272xf32, #tpu.memory_space<vmem>>, %arg5: memref<16x578xf32, #tpu.memory_space<vmem>>) attributes {dimension_semantics = [#tpu.dimension_semantics<parallel>], iteration_bounds = array<i64: 2>, scalar_prefetch = 0 : i64, scratch_operands = 1 : i64, tpu.core_type = #tpu.core_type<tc>, window_params = [{transform_indices = @transform_0, window_bounds = array<i64: 1, 4, 272>}, {pipeline_mode = #tpu.pipeline_mode<synchronous>, transform_indices = @transform_1, window_bounds = array<i64: 16, 64>}, {pipeline_mode = #tpu.pipeline_mode<synchronous>, transform_indices = @transform_2, window_bounds = array<i64: 16, 16>}, {transform_indices = @transform_3, window_bounds = array<i64: 1, 4, 272>}]} {
    %cst = arith.constant 0.000000e+00 : f32
    %0 = vector.broadcast %cst : f32 to vector<16x153xf32>
    %c0 = arith.constant 0 : index
    %c0_0 = arith.constant 0 : index
    %1 = vector.load %arg5[%c0, %c0_0] : memref<16x578xf32, #tpu.memory_space<vmem>>, vector<16x153xf32>
    tpu.vector_store %arg5[%c0, %c0_0], %0 {strides = array<i32>} : memref<16x578xf32, #tpu.memory_space<vmem>>, vector<16x153xf32>,
    %cst_1 = arith.constant 0.000000e+00 : f32
    %2 = vector.broadcast %cst_1 : f32 to vector<16x153xf32>
    %c0_2 = arith.constant 0 : index
    %c425 = arith.constant 425 : index
    %3 = vector.load %arg5[%c0_2, %c425] : memref<16x578xf32, #tpu.memory_space<vmem>>, vector<16x153xf32>
    tpu.vector_store %arg5[%c0_2, %c425], %2 {strides = array<i32>} : memref<16x578xf32, #tpu.memory_space<vmem>>, vector<16x153xf32>,
    %c0_3 = arith.constant 0 : index
    %c0_4 = arith.constant 0 : index
    %c0_5 = arith.constant 0 : index
    %4 = vector.load %arg1[%c0_3, %c0_4, %c0_5] : memref<1x4x272xf32, #tpu.memory_space<vmem>>, vector<1x4x272xf32>
    %5 = vector.shape_cast %4 : vector<1x4x272xf32> to vector<4x272xf32>
    %c12 = arith.constant 12 : index
    %c153 = arith.constant 153 : index
    %6 = vector.load %arg5[%c12, %c153] : memref<16x578xf32, #tpu.memory_space<vmem>>, vector<4x272xf32>
    tpu.vector_store %arg5[%c12, %c153], %5 {strides = array<i32>} : memref<16x578xf32, #tpu.memory_space<vmem>>, vector<4x272xf32>,
    %7 = tpu.iota {dimensions = array<i32: 1>} : vector<1x272xi32>
    %c17_i32 = arith.constant 17 : i32
    %c0_i32 = arith.constant 0 : i32
    %8 = arith.cmpi eq, %c17_i32, %c0_i32 : i32
    %c1_i32 = arith.constant 1 : i32
    %9 = arith.select %8, %c1_i32, %c17_i32 : i32
    %10 = vector.broadcast %9 : i32 to vector<1x272xi32>
    %11 = arith.remsi %7, %10 : vector<1x272xi32>
    %c0_i32_6 = arith.constant 0 : i32
    %12 = vector.broadcast %c0_i32_6 : i32 to vector<1x272xi32>
    %13 = arith.cmpi ne, %11, %12 : vector<1x272xi32>
    %c0_i32_7 = arith.constant 0 : i32
    %14 = vector.broadcast %c0_i32_7 : i32 to vector<1x272xi32>
    %15 = arith.cmpi slt, %11, %14 : vector<1x272xi32>
    %c0_i32_8 = arith.constant 0 : i32
    %16 = arith.cmpi slt, %9, %c0_i32_8 : i32
    %17 = vector.broadcast %16 : i1 to vector<1x272xi1>
    %18 = vector.broadcast %17 : vector<1x272xi1> to vector<1x272xi1>
    %19 = arith.xori %15, %18 : vector<1x272xi1>
    %20 = arith.andi %19, %13 : vector<1x272xi1>
    %21 = vector.broadcast %9 : i32 to vector<1x272xi32>
    %22 = arith.addi %11, %21 : vector<1x272xi32>
    %23 = arith.select %20, %22, %11 : vector<1x272xi1>, vector<1x272xi32>
    %c16_i32 = arith.constant 16 : i32
    %24 = vector.broadcast %c16_i32 : i32 to vector<1x272xi32>
    %25 = arith.cmpi slt, %23, %24 : vector<1x272xi32>
    %26 = arith.extui %25 : vector<1x272xi1> to vector<1x272xi32>
    %27 = arith.sitofp %26 : vector<1x272xi32> to vector<1x272xf32>
    %c12_9 = arith.constant 12 : index
    %c0_10 = arith.constant 0 : index
    %28 = vector.load %arg2[%c12_9, %c0_10] : memref<16x64xf32, #tpu.memory_space<vmem>>, vector<4x10xf32>
    %c0_11 = arith.constant 0 : index
    %c10 = arith.constant 10 : index
    %29 = vector.load %arg2[%c0_11, %c10] : memref<16x64xf32, #tpu.memory_space<vmem>>, vector<4x4xf32>
    %c12_12 = arith.constant 12 : index
    %c135 = arith.constant 135 : index
    %30 = vector.load %arg5[%c12_12, %c135] : memref<16x578xf32, #tpu.memory_space<vmem>>, vector<4x272xf32>
    %31 = vector.extract_strided_slice %28 {offsets = [0, 0], sizes = [4, 1], strides = [1, 1]} : vector<4x10xf32> to vector<4x1xf32>
    %32 = vector.broadcast %31 : vector<4x1xf32> to vector<4x272xf32>
    %33 = arith.mulf %30, %32 : vector<4x272xf32>
    %c12_13 = arith.constant 12 : index
    %c136 = arith.constant 136 : index
    %34 = vector.load %arg5[%c12_13, %c136] : memref<16x578xf32, #tpu.memory_space<vmem>>, vector<4x272xf32>
    %35 = vector.extract_strided_slice %28 {offsets = [0, 1], sizes = [4, 1], strides = [1, 1]} : vector<4x10xf32> to vector<4x1xf32>
    %36 = vector.broadcast %35 : vector<4x1xf32> to vector<4x272xf32>
    %37 = arith.mulf %34, %36 : vector<4x272xf32>
    %38 = arith.addf %33, %37 : vector<4x272xf32>
    %c12_14 = arith.constant 12 : index
    %c137 = arith.constant 137 : index
    %39 = vector.load %arg5[%c12_14, %c137] : memref<16x578xf32, #tpu.memory_space<vmem>>, vector<4x272xf32>
    %40 = vector.extract_strided_slice %28 {offsets = [0, 2], sizes = [4, 1], strides = [1, 1]} : vector<4x10xf32> to vector<4x1xf32>
    %41 = vector.broadcast %40 : vector<4x1xf32> to vector<4x272xf32>
    %42 = arith.mulf %39, %41 : vector<4x272xf32>
    %43 = arith.addf %38, %42 : vector<4x272xf32>
    %c12_15 = arith.constant 12 : index
    %c152 = arith.constant 152 : index
    %44 = vector.load %arg5[%c12_15, %c152] : memref<16x578xf32, #tpu.memory_space<vmem>>, vector<4x272xf32>
    %45 = vector.extract_strided_slice %28 {offsets = [0, 3], sizes = [4, 1], strides = [1, 1]} : vector<4x10xf32> to vector<4x1xf32>
    %46 = vector.broadcast %45 : vector<4x1xf32> to vector<4x272xf32>
    %47 = arith.mulf %44, %46 : vector<4x272xf32>
    %48 = arith.addf %43, %47 : vector<4x272xf32>
    %c12_16 = arith.constant 12 : index
    %c153_17 = arith.constant 153 : index
    %49 = vector.load %arg5[%c12_16, %c153_17] : memref<16x578xf32, #tpu.memory_space<vmem>>, vector<4x272xf32>
    %50 = vector.extract_strided_slice %28 {offsets = [0, 4], sizes = [4, 1], strides = [1, 1]} : vector<4x10xf32> to vector<4x1xf32>
    %51 = vector.broadcast %50 : vector<4x1xf32> to vector<4x272xf32>
    %52 = arith.mulf %49, %51 : vector<4x272xf32>
    %53 = arith.addf %48, %52 : vector<4x272xf32>
    %c12_18 = arith.constant 12 : index
    %c154 = arith.constant 154 : index
    %54 = vector.load %arg5[%c12_18, %c154] : memref<16x578xf32, #tpu.memory_space<vmem>>, vector<4x272xf32>
    %55 = vector.extract_strided_slice %28 {offsets = [0, 5], sizes = [4, 1], strides = [1, 1]} : vector<4x10xf32> to vector<4x1xf32>
    %56 = vector.broadcast %55 : vector<4x1xf32> to vector<4x272xf32>
    %57 = arith.mulf %54, %56 : vector<4x272xf32>
    %58 = arith.addf %53, %57 : vector<4x272xf32>
    %c12_19 = arith.constant 12 : index
    %c169 = arith.constant 169 : index
    %59 = vector.load %arg5[%c12_19, %c169] : memref<16x578xf32, #tpu.memory_space<vmem>>, vector<4x272xf32>
    %60 = vector.extract_strided_slice %28 {offsets = [0, 6], sizes = [4, 1], strides = [1, 1]} : vector<4x10xf32> to vector<4x1xf32>
    %61 = vector.broadcast %60 : vector<4x1xf32> to vector<4x272xf32>
    %62 = arith.mulf %59, %61 : vector<4x272xf32>
    %63 = arith.addf %58, %62 : vector<4x272xf32>
    %c12_20 = arith.constant 12 : index
    %c170 = arith.constant 170 : index
    %64 = vector.load %arg5[%c12_20, %c170] : memref<16x578xf32, #tpu.memory_space<vmem>>, vector<4x272xf32>
    %65 = vector.extract_strided_slice %28 {offsets = [0, 7], sizes = [4, 1], strides = [1, 1]} : vector<4x10xf32> to vector<4x1xf32>
    %66 = vector.broadcast %65 : vector<4x1xf32> to vector<4x272xf32>
    %67 = arith.mulf %64, %66 : vector<4x272xf32>
    %68 = arith.addf %63, %67 : vector<4x272xf32>
    %c12_21 = arith.constant 12 : index
    %c171 = arith.constant 171 : index
    %69 = vector.load %arg5[%c12_21, %c171] : memref<16x578xf32, #tpu.memory_space<vmem>>, vector<4x272xf32>
    %70 = vector.extract_strided_slice %28 {offsets = [0, 8], sizes = [4, 1], strides = [1, 1]} : vector<4x10xf32> to vector<4x1xf32>
    %71 = vector.broadcast %70 : vector<4x1xf32> to vector<4x272xf32>
    %72 = arith.mulf %69, %71 : vector<4x272xf32>
    %73 = arith.addf %68, %72 : vector<4x272xf32>
    %74 = vector.extract_strided_slice %28 {offsets = [0, 9], sizes = [4, 1], strides = [1, 1]} : vector<4x10xf32> to vector<4x1xf32>
    %75 = vector.broadcast %74 : vector<4x1xf32> to vector<4x272xf32>
    %76 = arith.addf %73, %75 : vector<4x272xf32>
    %c0_22 = arith.constant 0 : index
    %c12_23 = arith.constant 12 : index
    %77 = vector.load %arg3[%c0_22, %c12_23] : memref<16x16xf32, #tpu.memory_space<vmem>>, vector<4x4xf32>
    %cst_24 = arith.constant dense<0.000000e+00> : vector<4x272xf32>
    %78 = tpu.matmul %77, %76, %cst_24 {dimension_numbers = #tpu.dot_dimension_numbers<[1], [0], [0], [1], [0, 0, 1, 1], [], []>} : vector<4x4xf32>, vector<4x272xf32>, vector<4x272xf32> -> vector<4x272xf32>
    %79 = vector.extract_strided_slice %29 {offsets = [0, 0], sizes = [4, 1], strides = [1, 1]} : vector<4x4xf32> to vector<4x1xf32>
    %80 = vector.broadcast %79 : vector<4x1xf32> to vector<4x272xf32>
    %81 = arith.addf %78, %80 : vector<4x272xf32>
    %82 = vector.broadcast %27 : vector<1x272xf32> to vector<4x272xf32>
    %83 = arith.mulf %81, %82 : vector<4x272xf32>
    %cst_25 = arith.constant dense<0.000000e+00> : vector<4xf32>
    %84 = vector.multi_reduction <add>, %83, %cst_25 [1] : vector<4x272xf32> to vector<4xf32>
    %85 = vector.shape_cast %84 : vector<4xf32> to vector<4x1xf32>
    %cst_26 = arith.constant 3.906250e-03 : f32
    %86 = vector.broadcast %cst_26 : f32 to vector<4x1xf32>
    %87 = arith.mulf %85, %86 : vector<4x1xf32>
    %88 = vector.broadcast %87 : vector<4x1xf32> to vector<4x272xf32>
    %89 = arith.subf %83, %88 : vector<4x272xf32>
    %90 = arith.mulf %89, %89 : vector<4x272xf32>
    %cst_27 = arith.constant dense<0.000000e+00> : vector<4xf32>
    %91 = vector.multi_reduction <add>, %90, %cst_27 [1] : vector<4x272xf32> to vector<4xf32>
    %92 = vector.shape_cast %91 : vector<4xf32> to vector<4x1xf32>
    %cst_28 = arith.constant 1.600000e+01 : f32
    %93 = vector.broadcast %cst_28 : f32 to vector<4x1xf32>
    %94 = arith.mulf %93, %87 : vector<4x1xf32>
    %95 = arith.mulf %94, %87 : vector<4x1xf32>
    %96 = arith.subf %92, %95 : vector<4x1xf32>
    %cst_29 = arith.constant 3.906250e-03 : f32
    %97 = vector.broadcast %cst_29 : f32 to vector<4x1xf32>
    %98 = arith.mulf %96, %97 : vector<4x1xf32>
    %cst_30 = arith.constant 0.000000e+00 : f32
    %99 = vector.broadcast %cst_30 : f32 to vector<4x1xf32>
    %100 = arith.maximumf %98, %99 : vector<4x1xf32>
    %cst_31 = arith.constant 9.99999974E-6 : f32
    %101 = vector.broadcast %cst_31 : f32 to vector<4x1xf32>
    %102 = arith.addf %100, %101 : vector<4x1xf32>
    %103 = math.rsqrt %102 : vector<4x1xf32>
    %104 = vector.broadcast %103 : vector<4x1xf32> to vector<4x272xf32>
    %105 = arith.mulf %89, %104 : vector<4x272xf32>
    %106 = vector.extract_strided_slice %29 {offsets = [0, 1], sizes = [4, 1], strides = [1, 1]} : vector<4x4xf32> to vector<4x1xf32>
    %107 = vector.broadcast %106 : vector<4x1xf32> to vector<4x272xf32>
    %108 = arith.mulf %105, %107 : vector<4x272xf32>
    %109 = vector.extract_strided_slice %29 {offsets = [0, 2], sizes = [4, 1], strides = [1, 1]} : vector<4x4xf32> to vector<4x1xf32>
    %110 = vector.broadcast %109 : vector<4x1xf32> to vector<4x272xf32>
    %111 = arith.addf %108, %110 : vector<4x272xf32>
    %cst_32 = arith.constant 0.000000e+00 : f32
    %112 = vector.broadcast %cst_32 : f32 to vector<4x272xf32>
    %113 = arith.cmpf oge, %111, %112 : vector<4x272xf32>
    %114 = vector.extract_strided_slice %29 {offsets = [0, 3], sizes = [4, 1], strides = [1, 1]} : vector<4x4xf32> to vector<4x1xf32>
    %115 = vector.broadcast %114 : vector<4x1xf32> to vector<4x272xf32>
    %116 = arith.mulf %115, %111 : vector<4x272xf32>
    %117 = arith.select %113, %111, %116 : vector<4x272xi1>, vector<4x272xf32>
    %118 = vector.broadcast %27 : vector<1x272xf32> to vector<4x272xf32>
    %119 = arith.mulf %117, %118 : vector<4x272xf32>
    %c8 = arith.constant 8 : index
    %c153_33 = arith.constant 153 : index
    %120 = vector.load %arg5[%c8, %c153_33] : memref<16x578xf32, #tpu.memory_space<vmem>>, vector<4x272xf32>
    tpu.vector_store %arg5[%c8, %c153_33], %119 {strides = array<i32>} : memref<16x578xf32, #tpu.memory_space<vmem>>, vector<4x272xf32>,
    %c8_34 = arith.constant 8 : index
    %c16 = arith.constant 16 : index
    %121 = vector.load %arg2[%c8_34, %c16] : memref<16x64xf32, #tpu.memory_space<vmem>>, vector<8x10xf32>
    %c0_35 = arith.constant 0 : index
    %c26 = arith.constant 26 : index
    %122 = vector.load %arg2[%c0_35, %c26] : memref<16x64xf32, #tpu.memory_space<vmem>>, vector<4x4xf32>
    %c8_36 = arith.constant 8 : index
    %c118 = arith.constant 118 : index
    %123 = vector.load %arg5[%c8_36, %c118] : memref<16x578xf32, #tpu.memory_space<vmem>>, vector<8x272xf32>
    %124 = vector.extract_strided_slice %121 {offsets = [0, 0], sizes = [8, 1], strides = [1, 1]} : vector<8x10xf32> to vector<8x1xf32>
    %125 = vector.broadcast %124 : vector<8x1xf32> to vector<8x272xf32>
    %126 = arith.mulf %123, %125 : vector<8x272xf32>
    %c8_37 = arith.constant 8 : index
    %c119 = arith.constant 119 : index
    %127 = vector.load %arg5[%c8_37, %c119] : memref<16x578xf32, #tpu.memory_space<vmem>>, vector<8x272xf32>
    %128 = vector.extract_strided_slice %121 {offsets = [0, 1], sizes = [8, 1], strides = [1, 1]} : vector<8x10xf32> to vector<8x1xf32>
    %129 = vector.broadcast %128 : vector<8x1xf32> to vector<8x272xf32>
    %130 = arith.mulf %127, %129 : vector<8x272xf32>
    %131 = arith.addf %126, %130 : vector<8x272xf32>
    %c8_38 = arith.constant 8 : index
    %c120 = arith.constant 120 : index
    %132 = vector.load %arg5[%c8_38, %c120] : memref<16x578xf32, #tpu.memory_space<vmem>>, vector<8x272xf32>
    %133 = vector.extract_strided_slice %121 {offsets = [0, 2], sizes = [8, 1], strides = [1, 1]} : vector<8x10xf32> to vector<8x1xf32>
    %134 = vector.broadcast %133 : vector<8x1xf32> to vector<8x272xf32>
    %135 = arith.mulf %132, %134 : vector<8x272xf32>
    %136 = arith.addf %131, %135 : vector<8x272xf32>
    %c8_39 = arith.constant 8 : index
    %c152_40 = arith.constant 152 : index
    %137 = vector.load %arg5[%c8_39, %c152_40] : memref<16x578xf32, #tpu.memory_space<vmem>>, vector<8x272xf32>
    %138 = vector.extract_strided_slice %121 {offsets = [0, 3], sizes = [8, 1], strides = [1, 1]} : vector<8x10xf32> to vector<8x1xf32>
    %139 = vector.broadcast %138 : vector<8x1xf32> to vector<8x272xf32>
    %140 = arith.mulf %137, %139 : vector<8x272xf32>
    %141 = arith.addf %136, %140 : vector<8x272xf32>
    %c8_41 = arith.constant 8 : index
    %c153_42 = arith.constant 153 : index
    %142 = vector.load %arg5[%c8_41, %c153_42] : memref<16x578xf32, #tpu.memory_space<vmem>>, vector<8x272xf32>
    %143 = vector.extract_strided_slice %121 {offsets = [0, 4], sizes = [8, 1], strides = [1, 1]} : vector<8x10xf32> to vector<8x1xf32>
    %144 = vector.broadcast %143 : vector<8x1xf32> to vector<8x272xf32>
    %145 = arith.mulf %142, %144 : vector<8x272xf32>
    %146 = arith.addf %141, %145 : vector<8x272xf32>
    %c8_43 = arith.constant 8 : index
    %c154_44 = arith.constant 154 : index
    %147 = vector.load %arg5[%c8_43, %c154_44] : memref<16x578xf32, #tpu.memory_space<vmem>>, vector<8x272xf32>
    %148 = vector.extract_strided_slice %121 {offsets = [0, 5], sizes = [8, 1], strides = [1, 1]} : vector<8x10xf32> to vector<8x1xf32>
    %149 = vector.broadcast %148 : vector<8x1xf32> to vector<8x272xf32>
    %150 = arith.mulf %147, %149 : vector<8x272xf32>
    %151 = arith.addf %146, %150 : vector<8x272xf32>
    %c8_45 = arith.constant 8 : index
    %c186 = arith.constant 186 : index
    %152 = vector.load %arg5[%c8_45, %c186] : memref<16x578xf32, #tpu.memory_space<vmem>>, vector<8x272xf32>
    %153 = vector.extract_strided_slice %121 {offsets = [0, 6], sizes = [8, 1], strides = [1, 1]} : vector<8x10xf32> to vector<8x1xf32>
    %154 = vector.broadcast %153 : vector<8x1xf32> to vector<8x272xf32>
    %155 = arith.mulf %152, %154 : vector<8x272xf32>
    %156 = arith.addf %151, %155 : vector<8x272xf32>
    %c8_46 = arith.constant 8 : index
    %c187 = arith.constant 187 : index
    %157 = vector.load %arg5[%c8_46, %c187] : memref<16x578xf32, #tpu.memory_space<vmem>>, vector<8x272xf32>
    %158 = vector.extract_strided_slice %121 {offsets = [0, 7], sizes = [8, 1], strides = [1, 1]} : vector<8x10xf32> to vector<8x1xf32>
    %159 = vector.broadcast %158 : vector<8x1xf32> to vector<8x272xf32>
    %160 = arith.mulf %157, %159 : vector<8x272xf32>
    %161 = arith.addf %156, %160 : vector<8x272xf32>
    %c8_47 = arith.constant 8 : index
    %c188 = arith.constant 188 : index
    %162 = vector.load %arg5[%c8_47, %c188] : memref<16x578xf32, #tpu.memory_space<vmem>>, vector<8x272xf32>
    %163 = vector.extract_strided_slice %121 {offsets = [0, 8], sizes = [8, 1], strides = [1, 1]} : vector<8x10xf32> to vector<8x1xf32>
    %164 = vector.broadcast %163 : vector<8x1xf32> to vector<8x272xf32>
    %165 = arith.mulf %162, %164 : vector<8x272xf32>
    %166 = arith.addf %161, %165 : vector<8x272xf32>
    %167 = vector.extract_strided_slice %121 {offsets = [0, 9], sizes = [8, 1], strides = [1, 1]} : vector<8x10xf32> to vector<8x1xf32>
    %168 = vector.broadcast %167 : vector<8x1xf32> to vector<8x272xf32>
    %169 = arith.addf %166, %168 : vector<8x272xf32>
    %c4 = arith.constant 4 : index
    %c8_48 = arith.constant 8 : index
    %170 = vector.load %arg3[%c4, %c8_48] : memref<16x16xf32, #tpu.memory_space<vmem>>, vector<4x8xf32>
    %cst_49 = arith.constant dense<0.000000e+00> : vector<4x272xf32>
    %171 = tpu.matmul %170, %169, %cst_49 {dimension_numbers = #tpu.dot_dimension_numbers<[1], [0], [0], [1], [0, 0, 1, 1], [], []>} : vector<4x8xf32>, vector<8x272xf32>, vector<4x272xf32> -> vector<4x272xf32>
    %172 = vector.extract_strided_slice %122 {offsets = [0, 0], sizes = [4, 1], strides = [1, 1]} : vector<4x4xf32> to vector<4x1xf32>
    %173 = vector.broadcast %172 : vector<4x1xf32> to vector<4x272xf32>
    %174 = arith.addf %171, %173 : vector<4x272xf32>
    %175 = vector.broadcast %27 : vector<1x272xf32> to vector<4x272xf32>
    %176 = arith.mulf %174, %175 : vector<4x272xf32>
    %cst_50 = arith.constant dense<0.000000e+00> : vector<4xf32>
    %177 = vector.multi_reduction <add>, %176, %cst_50 [1] : vector<4x272xf32> to vector<4xf32>
    %178 = vector.shape_cast %177 : vector<4xf32> to vector<4x1xf32>
    %cst_51 = arith.constant 3.906250e-03 : f32
    %179 = vector.broadcast %cst_51 : f32 to vector<4x1xf32>
    %180 = arith.mulf %178, %179 : vector<4x1xf32>
    %181 = vector.broadcast %180 : vector<4x1xf32> to vector<4x272xf32>
    %182 = arith.subf %176, %181 : vector<4x272xf32>
    %183 = arith.mulf %182, %182 : vector<4x272xf32>
    %cst_52 = arith.constant dense<0.000000e+00> : vector<4xf32>
    %184 = vector.multi_reduction <add>, %183, %cst_52 [1] : vector<4x272xf32> to vector<4xf32>
    %185 = vector.shape_cast %184 : vector<4xf32> to vector<4x1xf32>
    %cst_53 = arith.constant 1.600000e+01 : f32
    %186 = vector.broadcast %cst_53 : f32 to vector<4x1xf32>
    %187 = arith.mulf %186, %180 : vector<4x1xf32>
    %188 = arith.mulf %187, %180 : vector<4x1xf32>
    %189 = arith.subf %185, %188 : vector<4x1xf32>
    %cst_54 = arith.constant 3.906250e-03 : f32
    %190 = vector.broadcast %cst_54 : f32 to vector<4x1xf32>
    %191 = arith.mulf %189, %190 : vector<4x1xf32>
    %cst_55 = arith.constant 0.000000e+00 : f32
    %192 = vector.broadcast %cst_55 : f32 to vector<4x1xf32>
    %193 = arith.maximumf %191, %192 : vector<4x1xf32>
    %cst_56 = arith.constant 9.99999974E-6 : f32
    %194 = vector.broadcast %cst_56 : f32 to vector<4x1xf32>
    %195 = arith.addf %193, %194 : vector<4x1xf32>
    %196 = math.rsqrt %195 : vector<4x1xf32>
    %197 = vector.broadcast %196 : vector<4x1xf32> to vector<4x272xf32>
    %198 = arith.mulf %182, %197 : vector<4x272xf32>
    %199 = vector.extract_strided_slice %122 {offsets = [0, 1], sizes = [4, 1], strides = [1, 1]} : vector<4x4xf32> to vector<4x1xf32>
    %200 = vector.broadcast %199 : vector<4x1xf32> to vector<4x272xf32>
    %201 = arith.mulf %198, %200 : vector<4x272xf32>
    %202 = vector.extract_strided_slice %122 {offsets = [0, 2], sizes = [4, 1], strides = [1, 1]} : vector<4x4xf32> to vector<4x1xf32>
    %203 = vector.broadcast %202 : vector<4x1xf32> to vector<4x272xf32>
    %204 = arith.addf %201, %203 : vector<4x272xf32>
    %cst_57 = arith.constant 0.000000e+00 : f32
    %205 = vector.broadcast %cst_57 : f32 to vector<4x272xf32>
    %206 = arith.cmpf oge, %204, %205 : vector<4x272xf32>
    %207 = vector.extract_strided_slice %122 {offsets = [0, 3], sizes = [4, 1], strides = [1, 1]} : vector<4x4xf32> to vector<4x1xf32>
    %208 = vector.broadcast %207 : vector<4x1xf32> to vector<4x272xf32>
    %209 = arith.mulf %208, %204 : vector<4x272xf32>
    %210 = arith.select %206, %204, %209 : vector<4x272xi1>, vector<4x272xf32>
    %211 = vector.broadcast %27 : vector<1x272xf32> to vector<4x272xf32>
    %212 = arith.mulf %210, %211 : vector<4x272xf32>
    %c4_58 = arith.constant 4 : index
    %c153_59 = arith.constant 153 : index
    %213 = vector.load %arg5[%c4_58, %c153_59] : memref<16x578xf32, #tpu.memory_space<vmem>>, vector<4x272xf32>
    tpu.vector_store %arg5[%c4_58, %c153_59], %212 {strides = array<i32>} : memref<16x578xf32, #tpu.memory_space<vmem>>, vector<4x272xf32>,
    %c4_60 = arith.constant 4 : index
    %c32 = arith.constant 32 : index
    %214 = vector.load %arg2[%c4_60, %c32] : memref<16x64xf32, #tpu.memory_space<vmem>>, vector<12x10xf32>
    %c0_61 = arith.constant 0 : index
    %c42 = arith.constant 42 : index
    %215 = vector.load %arg2[%c0_61, %c42] : memref<16x64xf32, #tpu.memory_space<vmem>>, vector<4x4xf32>
    %c4_62 = arith.constant 4 : index
    %c84 = arith.constant 84 : index
    %216 = vector.load %arg5[%c4_62, %c84] : memref<16x578xf32, #tpu.memory_space<vmem>>, vector<12x272xf32>
    %217 = vector.extract_strided_slice %214 {offsets = [0, 0], sizes = [12, 1], strides = [1, 1]} : vector<12x10xf32> to vector<12x1xf32>
    %218 = vector.broadcast %217 : vector<12x1xf32> to vector<12x272xf32>
    %219 = arith.mulf %216, %218 : vector<12x272xf32>
    %c4_63 = arith.constant 4 : index
    %c85 = arith.constant 85 : index
    %220 = vector.load %arg5[%c4_63, %c85] : memref<16x578xf32, #tpu.memory_space<vmem>>, vector<12x272xf32>
    %221 = vector.extract_strided_slice %214 {offsets = [0, 1], sizes = [12, 1], strides = [1, 1]} : vector<12x10xf32> to vector<12x1xf32>
    %222 = vector.broadcast %221 : vector<12x1xf32> to vector<12x272xf32>
    %223 = arith.mulf %220, %222 : vector<12x272xf32>
    %224 = arith.addf %219, %223 : vector<12x272xf32>
    %c4_64 = arith.constant 4 : index
    %c86 = arith.constant 86 : index
    %225 = vector.load %arg5[%c4_64, %c86] : memref<16x578xf32, #tpu.memory_space<vmem>>, vector<12x272xf32>
    %226 = vector.extract_strided_slice %214 {offsets = [0, 2], sizes = [12, 1], strides = [1, 1]} : vector<12x10xf32> to vector<12x1xf32>
    %227 = vector.broadcast %226 : vector<12x1xf32> to vector<12x272xf32>
    %228 = arith.mulf %225, %227 : vector<12x272xf32>
    %229 = arith.addf %224, %228 : vector<12x272xf32>
    %c4_65 = arith.constant 4 : index
    %c152_66 = arith.constant 152 : index
    %230 = vector.load %arg5[%c4_65, %c152_66] : memref<16x578xf32, #tpu.memory_space<vmem>>, vector<12x272xf32>
    %231 = vector.extract_strided_slice %214 {offsets = [0, 3], sizes = [12, 1], strides = [1, 1]} : vector<12x10xf32> to vector<12x1xf32>
    %232 = vector.broadcast %231 : vector<12x1xf32> to vector<12x272xf32>
    %233 = arith.mulf %230, %232 : vector<12x272xf32>
    %234 = arith.addf %229, %233 : vector<12x272xf32>
    %c4_67 = arith.constant 4 : index
    %c153_68 = arith.constant 153 : index
    %235 = vector.load %arg5[%c4_67, %c153_68] : memref<16x578xf32, #tpu.memory_space<vmem>>, vector<12x272xf32>
    %236 = vector.extract_strided_slice %214 {offsets = [0, 4], sizes = [12, 1], strides = [1, 1]} : vector<12x10xf32> to vector<12x1xf32>
    %237 = vector.broadcast %236 : vector<12x1xf32> to vector<12x272xf32>
    %238 = arith.mulf %235, %237 : vector<12x272xf32>
    %239 = arith.addf %234, %238 : vector<12x272xf32>
    %c4_69 = arith.constant 4 : index
    %c154_70 = arith.constant 154 : index
    %240 = vector.load %arg5[%c4_69, %c154_70] : memref<16x578xf32, #tpu.memory_space<vmem>>, vector<12x272xf32>
    %241 = vector.extract_strided_slice %214 {offsets = [0, 5], sizes = [12, 1], strides = [1, 1]} : vector<12x10xf32> to vector<12x1xf32>
    %242 = vector.broadcast %241 : vector<12x1xf32> to vector<12x272xf32>
    %243 = arith.mulf %240, %242 : vector<12x272xf32>
    %244 = arith.addf %239, %243 : vector<12x272xf32>
    %c4_71 = arith.constant 4 : index
    %c220 = arith.constant 220 : index
    %245 = vector.load %arg5[%c4_71, %c220] : memref<16x578xf32, #tpu.memory_space<vmem>>, vector<12x272xf32>
    %246 = vector.extract_strided_slice %214 {offsets = [0, 6], sizes = [12, 1], strides = [1, 1]} : vector<12x10xf32> to vector<12x1xf32>
    %247 = vector.broadcast %246 : vector<12x1xf32> to vector<12x272xf32>
    %248 = arith.mulf %245, %247 : vector<12x272xf32>
    %249 = arith.addf %244, %248 : vector<12x272xf32>
    %c4_72 = arith.constant 4 : index
    %c221 = arith.constant 221 : index
    %250 = vector.load %arg5[%c4_72, %c221] : memref<16x578xf32, #tpu.memory_space<vmem>>, vector<12x272xf32>
    %251 = vector.extract_strided_slice %214 {offsets = [0, 7], sizes = [12, 1], strides = [1, 1]} : vector<12x10xf32> to vector<12x1xf32>
    %252 = vector.broadcast %251 : vector<12x1xf32> to vector<12x272xf32>
    %253 = arith.mulf %250, %252 : vector<12x272xf32>
    %254 = arith.addf %249, %253 : vector<12x272xf32>
    %c4_73 = arith.constant 4 : index
    %c222 = arith.constant 222 : index
    %255 = vector.load %arg5[%c4_73, %c222] : memref<16x578xf32, #tpu.memory_space<vmem>>, vector<12x272xf32>
    %256 = vector.extract_strided_slice %214 {offsets = [0, 8], sizes = [12, 1], strides = [1, 1]} : vector<12x10xf32> to vector<12x1xf32>
    %257 = vector.broadcast %256 : vector<12x1xf32> to vector<12x272xf32>
    %258 = arith.mulf %255, %257 : vector<12x272xf32>
    %259 = arith.addf %254, %258 : vector<12x272xf32>
    %260 = vector.extract_strided_slice %214 {offsets = [0, 9], sizes = [12, 1], strides = [1, 1]} : vector<12x10xf32> to vector<12x1xf32>
    %261 = vector.broadcast %260 : vector<12x1xf32> to vector<12x272xf32>
    %262 = arith.addf %259, %261 : vector<12x272xf32>
    %c8_74 = arith.constant 8 : index
    %c4_75 = arith.constant 4 : index
    %263 = vector.load %arg3[%c8_74, %c4_75] : memref<16x16xf32, #tpu.memory_space<vmem>>, vector<4x12xf32>
    %cst_76 = arith.constant dense<0.000000e+00> : vector<4x272xf32>
    %264 = tpu.matmul %263, %262, %cst_76 {dimension_numbers = #tpu.dot_dimension_numbers<[1], [0], [0], [1], [0, 0, 1, 1], [], []>} : vector<4x12xf32>, vector<12x272xf32>, vector<4x272xf32> -> vector<4x272xf32>
    %265 = vector.extract_strided_slice %215 {offsets = [0, 0], sizes = [4, 1], strides = [1, 1]} : vector<4x4xf32> to vector<4x1xf32>
    %266 = vector.broadcast %265 : vector<4x1xf32> to vector<4x272xf32>
    %267 = arith.addf %264, %266 : vector<4x272xf32>
    %268 = vector.broadcast %27 : vector<1x272xf32> to vector<4x272xf32>
    %269 = arith.mulf %267, %268 : vector<4x272xf32>
    %cst_77 = arith.constant dense<0.000000e+00> : vector<4xf32>
    %270 = vector.multi_reduction <add>, %269, %cst_77 [1] : vector<4x272xf32> to vector<4xf32>
    %271 = vector.shape_cast %270 : vector<4xf32> to vector<4x1xf32>
    %cst_78 = arith.constant 3.906250e-03 : f32
    %272 = vector.broadcast %cst_78 : f32 to vector<4x1xf32>
    %273 = arith.mulf %271, %272 : vector<4x1xf32>
    %274 = vector.broadcast %273 : vector<4x1xf32> to vector<4x272xf32>
    %275 = arith.subf %269, %274 : vector<4x272xf32>
    %276 = arith.mulf %275, %275 : vector<4x272xf32>
    %cst_79 = arith.constant dense<0.000000e+00> : vector<4xf32>
    %277 = vector.multi_reduction <add>, %276, %cst_79 [1] : vector<4x272xf32> to vector<4xf32>
    %278 = vector.shape_cast %277 : vector<4xf32> to vector<4x1xf32>
    %cst_80 = arith.constant 1.600000e+01 : f32
    %279 = vector.broadcast %cst_80 : f32 to vector<4x1xf32>
    %280 = arith.mulf %279, %273 : vector<4x1xf32>
    %281 = arith.mulf %280, %273 : vector<4x1xf32>
    %282 = arith.subf %278, %281 : vector<4x1xf32>
    %cst_81 = arith.constant 3.906250e-03 : f32
    %283 = vector.broadcast %cst_81 : f32 to vector<4x1xf32>
    %284 = arith.mulf %282, %283 : vector<4x1xf32>
    %cst_82 = arith.constant 0.000000e+00 : f32
    %285 = vector.broadcast %cst_82 : f32 to vector<4x1xf32>
    %286 = arith.maximumf %284, %285 : vector<4x1xf32>
    %cst_83 = arith.constant 9.99999974E-6 : f32
    %287 = vector.broadcast %cst_83 : f32 to vector<4x1xf32>
    %288 = arith.addf %286, %287 : vector<4x1xf32>
    %289 = math.rsqrt %288 : vector<4x1xf32>
    %290 = vector.broadcast %289 : vector<4x1xf32> to vector<4x272xf32>
    %291 = arith.mulf %275, %290 : vector<4x272xf32>
    %292 = vector.extract_strided_slice %215 {offsets = [0, 1], sizes = [4, 1], strides = [1, 1]} : vector<4x4xf32> to vector<4x1xf32>
    %293 = vector.broadcast %292 : vector<4x1xf32> to vector<4x272xf32>
    %294 = arith.mulf %291, %293 : vector<4x272xf32>
    %295 = vector.extract_strided_slice %215 {offsets = [0, 2], sizes = [4, 1], strides = [1, 1]} : vector<4x4xf32> to vector<4x1xf32>
    %296 = vector.broadcast %295 : vector<4x1xf32> to vector<4x272xf32>
    %297 = arith.addf %294, %296 : vector<4x272xf32>
    %cst_84 = arith.constant 0.000000e+00 : f32
    %298 = vector.broadcast %cst_84 : f32 to vector<4x272xf32>
    %299 = arith.cmpf oge, %297, %298 : vector<4x272xf32>
    %300 = vector.extract_strided_slice %215 {offsets = [0, 3], sizes = [4, 1], strides = [1, 1]} : vector<4x4xf32> to vector<4x1xf32>
    %301 = vector.broadcast %300 : vector<4x1xf32> to vector<4x272xf32>
    %302 = arith.mulf %301, %297 : vector<4x272xf32>
    %303 = arith.select %299, %297, %302 : vector<4x272xi1>, vector<4x272xf32>
    %304 = vector.broadcast %27 : vector<1x272xf32> to vector<4x272xf32>
    %305 = arith.mulf %303, %304 : vector<4x272xf32>
    %c0_85 = arith.constant 0 : index
    %c153_86 = arith.constant 153 : index
    %306 = vector.load %arg5[%c0_85, %c153_86] : memref<16x578xf32, #tpu.memory_space<vmem>>, vector<4x272xf32>
    tpu.vector_store %arg5[%c0_85, %c153_86], %305 {strides = array<i32>} : memref<16x578xf32, #tpu.memory_space<vmem>>, vector<4x272xf32>,
    %c0_87 = arith.constant 0 : index
    %c48 = arith.constant 48 : index
    %307 = vector.load %arg2[%c0_87, %c48] : memref<16x64xf32, #tpu.memory_space<vmem>>, vector<16x10xf32>
    %c0_88 = arith.constant 0 : index
    %c58 = arith.constant 58 : index
    %308 = vector.load %arg2[%c0_88, %c58] : memref<16x64xf32, #tpu.memory_space<vmem>>, vector<4x4xf32>
    %c0_89 = arith.constant 0 : index
    %c16_90 = arith.constant 16 : index
    %309 = vector.load %arg5[%c0_89, %c16_90] : memref<16x578xf32, #tpu.memory_space<vmem>>, vector<16x272xf32>
    %310 = vector.extract_strided_slice %307 {offsets = [0, 0], sizes = [16, 1], strides = [1, 1]} : vector<16x10xf32> to vector<16x1xf32>
    %311 = vector.broadcast %310 : vector<16x1xf32> to vector<16x272xf32>
    %312 = arith.mulf %309, %311 : vector<16x272xf32>
    %c0_91 = arith.constant 0 : index
    %c17 = arith.constant 17 : index
    %313 = vector.load %arg5[%c0_91, %c17] : memref<16x578xf32, #tpu.memory_space<vmem>>, vector<16x272xf32>
    %314 = vector.extract_strided_slice %307 {offsets = [0, 1], sizes = [16, 1], strides = [1, 1]} : vector<16x10xf32> to vector<16x1xf32>
    %315 = vector.broadcast %314 : vector<16x1xf32> to vector<16x272xf32>
    %316 = arith.mulf %313, %315 : vector<16x272xf32>
    %317 = arith.addf %312, %316 : vector<16x272xf32>
    %c0_92 = arith.constant 0 : index
    %c18 = arith.constant 18 : index
    %318 = vector.load %arg5[%c0_92, %c18] : memref<16x578xf32, #tpu.memory_space<vmem>>, vector<16x272xf32>
    %319 = vector.extract_strided_slice %307 {offsets = [0, 2], sizes = [16, 1], strides = [1, 1]} : vector<16x10xf32> to vector<16x1xf32>
    %320 = vector.broadcast %319 : vector<16x1xf32> to vector<16x272xf32>
    %321 = arith.mulf %318, %320 : vector<16x272xf32>
    %322 = arith.addf %317, %321 : vector<16x272xf32>
    %c0_93 = arith.constant 0 : index
    %c152_94 = arith.constant 152 : index
    %323 = vector.load %arg5[%c0_93, %c152_94] : memref<16x578xf32, #tpu.memory_space<vmem>>, vector<16x272xf32>
    %324 = vector.extract_strided_slice %307 {offsets = [0, 3], sizes = [16, 1], strides = [1, 1]} : vector<16x10xf32> to vector<16x1xf32>
    %325 = vector.broadcast %324 : vector<16x1xf32> to vector<16x272xf32>
    %326 = arith.mulf %323, %325 : vector<16x272xf32>
    %327 = arith.addf %322, %326 : vector<16x272xf32>
    %c0_95 = arith.constant 0 : index
    %c153_96 = arith.constant 153 : index
    %328 = vector.load %arg5[%c0_95, %c153_96] : memref<16x578xf32, #tpu.memory_space<vmem>>, vector<16x272xf32>
    %329 = vector.extract_strided_slice %307 {offsets = [0, 4], sizes = [16, 1], strides = [1, 1]} : vector<16x10xf32> to vector<16x1xf32>
    %330 = vector.broadcast %329 : vector<16x1xf32> to vector<16x272xf32>
    %331 = arith.mulf %328, %330 : vector<16x272xf32>
    %332 = arith.addf %327, %331 : vector<16x272xf32>
    %c0_97 = arith.constant 0 : index
    %c154_98 = arith.constant 154 : index
    %333 = vector.load %arg5[%c0_97, %c154_98] : memref<16x578xf32, #tpu.memory_space<vmem>>, vector<16x272xf32>
    %334 = vector.extract_strided_slice %307 {offsets = [0, 5], sizes = [16, 1], strides = [1, 1]} : vector<16x10xf32> to vector<16x1xf32>
    %335 = vector.broadcast %334 : vector<16x1xf32> to vector<16x272xf32>
    %336 = arith.mulf %333, %335 : vector<16x272xf32>
    %337 = arith.addf %332, %336 : vector<16x272xf32>
    %c0_99 = arith.constant 0 : index
    %c288 = arith.constant 288 : index
    %338 = vector.load %arg5[%c0_99, %c288] : memref<16x578xf32, #tpu.memory_space<vmem>>, vector<16x272xf32>
    %339 = vector.extract_strided_slice %307 {offsets = [0, 6], sizes = [16, 1], strides = [1, 1]} : vector<16x10xf32> to vector<16x1xf32>
    %340 = vector.broadcast %339 : vector<16x1xf32> to vector<16x272xf32>
    %341 = arith.mulf %338, %340 : vector<16x272xf32>
    %342 = arith.addf %337, %341 : vector<16x272xf32>
    %c0_100 = arith.constant 0 : index
    %c289 = arith.constant 289 : index
    %343 = vector.load %arg5[%c0_100, %c289] : memref<16x578xf32, #tpu.memory_space<vmem>>, vector<16x272xf32>
    %344 = vector.extract_strided_slice %307 {offsets = [0, 7], sizes = [16, 1], strides = [1, 1]} : vector<16x10xf32> to vector<16x1xf32>
    %345 = vector.broadcast %344 : vector<16x1xf32> to vector<16x272xf32>
    %346 = arith.mulf %343, %345 : vector<16x272xf32>
    %347 = arith.addf %342, %346 : vector<16x272xf32>
    %c0_101 = arith.constant 0 : index
    %c290 = arith.constant 290 : index
    %348 = vector.load %arg5[%c0_101, %c290] : memref<16x578xf32, #tpu.memory_space<vmem>>, vector<16x272xf32>
    %349 = vector.extract_strided_slice %307 {offsets = [0, 8], sizes = [16, 1], strides = [1, 1]} : vector<16x10xf32> to vector<16x1xf32>
    %350 = vector.broadcast %349 : vector<16x1xf32> to vector<16x272xf32>
    %351 = arith.mulf %348, %350 : vector<16x272xf32>
    %352 = arith.addf %347, %351 : vector<16x272xf32>
    %353 = vector.extract_strided_slice %307 {offsets = [0, 9], sizes = [16, 1], strides = [1, 1]} : vector<16x10xf32> to vector<16x1xf32>
    %354 = vector.broadcast %353 : vector<16x1xf32> to vector<16x272xf32>
    %355 = arith.addf %352, %354 : vector<16x272xf32>
    %c12_102 = arith.constant 12 : index
    %c0_103 = arith.constant 0 : index
    %356 = vector.load %arg3[%c12_102, %c0_103] : memref<16x16xf32, #tpu.memory_space<vmem>>, vector<4x16xf32>
    %cst_104 = arith.constant dense<0.000000e+00> : vector<4x272xf32>
    %357 = tpu.matmul %356, %355, %cst_104 {dimension_numbers = #tpu.dot_dimension_numbers<[1], [0], [0], [1], [0, 0, 1, 1], [], []>} : vector<4x16xf32>, vector<16x272xf32>, vector<4x272xf32> -> vector<4x272xf32>
    %358 = vector.extract_strided_slice %308 {offsets = [0, 0], sizes = [4, 1], strides = [1, 1]} : vector<4x4xf32> to vector<4x1xf32>
    %359 = vector.broadcast %358 : vector<4x1xf32> to vector<4x272xf32>
    %360 = arith.addf %357, %359 : vector<4x272xf32>
    %361 = vector.broadcast %27 : vector<1x272xf32> to vector<4x272xf32>
    %362 = arith.mulf %360, %361 : vector<4x272xf32>
    %cst_105 = arith.constant dense<0.000000e+00> : vector<4xf32>
    %363 = vector.multi_reduction <add>, %362, %cst_105 [1] : vector<4x272xf32> to vector<4xf32>
    %364 = vector.shape_cast %363 : vector<4xf32> to vector<4x1xf32>
    %cst_106 = arith.constant 3.906250e-03 : f32
    %365 = vector.broadcast %cst_106 : f32 to vector<4x1xf32>
    %366 = arith.mulf %364, %365 : vector<4x1xf32>
    %367 = vector.broadcast %366 : vector<4x1xf32> to vector<4x272xf32>
    %368 = arith.subf %362, %367 : vector<4x272xf32>
    %369 = arith.mulf %368, %368 : vector<4x272xf32>
    %cst_107 = arith.constant dense<0.000000e+00> : vector<4xf32>
    %370 = vector.multi_reduction <add>, %369, %cst_107 [1] : vector<4x272xf32> to vector<4xf32>
    %371 = vector.shape_cast %370 : vector<4xf32> to vector<4x1xf32>
    %cst_108 = arith.constant 1.600000e+01 : f32
    %372 = vector.broadcast %cst_108 : f32 to vector<4x1xf32>
    %373 = arith.mulf %372, %366 : vector<4x1xf32>
    %374 = arith.mulf %373, %366 : vector<4x1xf32>
    %375 = arith.subf %371, %374 : vector<4x1xf32>
    %cst_109 = arith.constant 3.906250e-03 : f32
    %376 = vector.broadcast %cst_109 : f32 to vector<4x1xf32>
    %377 = arith.mulf %375, %376 : vector<4x1xf32>
    %cst_110 = arith.constant 0.000000e+00 : f32
    %378 = vector.broadcast %cst_110 : f32 to vector<4x1xf32>
    %379 = arith.maximumf %377, %378 : vector<4x1xf32>
    %cst_111 = arith.constant 9.99999974E-6 : f32
    %380 = vector.broadcast %cst_111 : f32 to vector<4x1xf32>
    %381 = arith.addf %379, %380 : vector<4x1xf32>
    %382 = math.rsqrt %381 : vector<4x1xf32>
    %383 = vector.broadcast %382 : vector<4x1xf32> to vector<4x272xf32>
    %384 = arith.mulf %368, %383 : vector<4x272xf32>
    %385 = vector.extract_strided_slice %308 {offsets = [0, 1], sizes = [4, 1], strides = [1, 1]} : vector<4x4xf32> to vector<4x1xf32>
    %386 = vector.broadcast %385 : vector<4x1xf32> to vector<4x272xf32>
    %387 = arith.mulf %384, %386 : vector<4x272xf32>
    %388 = vector.extract_strided_slice %308 {offsets = [0, 2], sizes = [4, 1], strides = [1, 1]} : vector<4x4xf32> to vector<4x1xf32>
    %389 = vector.broadcast %388 : vector<4x1xf32> to vector<4x272xf32>
    %390 = arith.addf %387, %389 : vector<4x272xf32>
    %cst_112 = arith.constant 0.000000e+00 : f32
    %391 = vector.broadcast %cst_112 : f32 to vector<4x272xf32>
    %392 = arith.cmpf oge, %390, %391 : vector<4x272xf32>
    %393 = vector.extract_strided_slice %308 {offsets = [0, 3], sizes = [4, 1], strides = [1, 1]} : vector<4x4xf32> to vector<4x1xf32>
    %394 = vector.broadcast %393 : vector<4x1xf32> to vector<4x272xf32>
    %395 = arith.mulf %394, %390 : vector<4x272xf32>
    %396 = arith.select %392, %390, %395 : vector<4x272xi1>, vector<4x272xf32>
    %397 = vector.broadcast %27 : vector<1x272xf32> to vector<4x272xf32>
    %398 = arith.mulf %396, %397 : vector<4x272xf32>
    %c0_113 = arith.constant 0 : index
    %c0_114 = arith.constant 0 : index
    %c0_115 = arith.constant 0 : index
    %399 = vector.load %arg4[%c0_113, %c0_114, %c0_115] : memref<1x4x272xf32, #tpu.memory_space<vmem>>, vector<1x4x272xf32>
    %400 = vector.shape_cast %399 : vector<1x4x272xf32> to vector<4x272xf32>
    %401 = vector.shape_cast %398 : vector<4x272xf32> to vector<1x4x272xf32>
    tpu.vector_store %arg4[%c0_113, %c0_114, %c0_115], %401 {strides = array<i32>} : memref<1x4x272xf32, #tpu.memory_space<vmem>>, vector<1x4x272xf32>,
    return
  }
  func.func @transform_0(%arg0: i32) -> (i32, i32, i32) {
    %c0_i32 = arith.constant 0 : i32
    %c0_i32_0 = arith.constant 0 : i32
    %c0_i32_1 = arith.constant 0 : i32
    return %arg0, %c0_i32, %c0_i32_0 : i32, i32, i32
  }
  func.func @transform_1(%arg0: i32) -> (i32, i32) {
    %c0_i32 = arith.constant 0 : i32
    %c0_i32_0 = arith.constant 0 : i32
    %c0_i32_1 = arith.constant 0 : i32
    return %c0_i32, %c0_i32_0 : i32, i32
  }
  func.func @transform_2(%arg0: i32) -> (i32, i32) {
    %c0_i32 = arith.constant 0 : i32
    %c0_i32_0 = arith.constant 0 : i32
    %c0_i32_1 = arith.constant 0 : i32
    return %c0_i32, %c0_i32_0 : i32, i32
  }
  func.func @transform_3(%arg0: i32) -> (i32, i32, i32) {
    %c0_i32 = arith.constant 0 : i32
    %c0_i32_0 = arith.constant 0 : i32
    %c0_i32_1 = arith.constant 0 : i32
    return %arg0, %c0_i32, %c0_i32_0 : i32, i32, i32
  }
}

</mosaic_0001>

<bundles_post_ra>
// kernel: ds_ddb_forward.1
= control target key start
LH: loop header
LB: loop body
LE: loop exit
PB: predicated region body
PF: predicated region fallthrough
CT: control target
= control target key end

     0   :  { %s3073_s12 = smov 0   ;;  %s4143_s0 = inlined_call_operand.vmem [shape: f32[2,4,272], index: 0, kind: input, shape index: {}]   ;;  %s4144_s1 = inlined_call_operand.vmem [shape: f32[16,64], index: 1, kind: input, shape index: {}]   ;;  %s4145_s2 = inlined_call_operand.vmem [shape: f32[16,16], index: 2, kind: input, shape index: {}]   ;;  %s4146_s3 = inlined_call_operand.vmem [shape: f32[2,4,272], index: 3, kind: output, shape index: {}]  }
   0x1 LB: > { %s2731_s13 = sadd.s32 4294967295, %s2972_s12   ;;  %p2735_p0 = scmp.ge.s32.totalorder %s2972_s12, 1  ;;  %s2972_s12 = sphi %s3073_s12, %s13_s12  }
   0x2   : > { %p137_p1 = scmp.lt.s32.totalorder %s2972_s12, 3 }
   0x4   : > { %p138_p2 = pnand %p2735_p0, %p137_p1 }
   0x5   : > { %p161_p3 = scmp.lt.s32.totalorder (!%p138_p2), %s2731_s13, 1  ;;  %s2978_s20 = smov (!%p138_p2), 25  }
   0x6   : > { %141 = sbr.rel (%p138_p2) target bundleno = 3798 (0xed6), region = 32  ;;  %s2986_s21 = smov (!%p138_p2), 127  }
   0x7   : > { %s2987_s22 = smov (!%p138_p2), 111   ;;  %s2988_s23 = smov (!%p138_p2), 126  }
   0x8   : > { %s2989_s24 = smov (!%p138_p2), 110   ;;  %s2990_s25 = smov (!%p138_p2), 109  }
   0x9   : > { %s2991_s26 = smov (!%p138_p2), 94   ;;  %s2992_s27 = smov (!%p138_p2), 93  }
   0xa   : > { %s2993_s28 = smov (!%p138_p2), 92   ;;  %s2996_s29 = smov (!%p138_p2), 121  }
   0xb   : > { %v265_v0 = vld [vmem:[%s4144_s1 + $0xc] sm:$0xf]  ;;  %v2974_v1 = vmov 1   ;;  %s4174_s13 = smov (!%p161_p3, %s2731_s13), 1  ;;  %v2975_v2 = vmov 2   ;;  %vm172_vm0 = vcmask 203776  }
   0xc   : > { %2885 = vset.pattern.permute.xlu1 %v2974_v1  ;;  %2886 = vset.pattern.permute.xlu0 %v2975_v2  ;;  %v2976_v3 = vmov 0.0   ;;  %vm176_vm1 = vcmask 1047880   ;;  %s2791_s16 = smul.u32 12, %s4174_s13  ;;  %v2977_v4 = vmov 3   ;;  %v2979_v8 = vmov 4   ;;  %s2997_s5 = smov 116  }
   0xd   : > { %280 = vperm.xlu1 %2885, %v265_v0   ;;  %171 = vst [vmem:[#allocation2] sm:$0xff] %v2976_v3  ;;  %2767 = vmatprep.subr.mxu1 %v2976_v3  ;;  %175 = vst.msk [vmem:[#allocation2 + $0x30] sm:$0xff] %vm172_vm0, %v2976_v3  ;;  %v2980_v9 = vmov 5   ;;  %v2981_v10 = vmov 6   ;;  %v2982_v11 = vmov 8   ;;  %v2983_v12 = vmov 7  }
   0xe   : > { %593 = vmatprep.mubr.f32.mxu0 %v2976_v3  ;;  %173 = vst.msk [vmem:[#allocation2 + $0x8] sm:$0xff] %vm172_vm0, %v2976_v3  ;;  %s165_s19 = scalar_lea.vmem %s4143_s0, %s2791_s16  ;;  %v2984_v13 = vmov 9   ;;  %v2985_v14 = vmov 0   ;;  %vm4150_vm2 = vcmask 1047756   ;;  %vm4149_vm3 = vcmask 334852   ;;  %s3011_s10 = smov 59  }
   0xf   : > { %180 = vst.msk [vmem:[#allocation2 + $0x40] sm:$0xff] %vm176_vm1, %v2976_v3  ;;  %177 = vst.msk [vmem:[#allocation2 + $0x18] sm:$0xff] %vm176_vm1, %v2976_v3  ;;  %v182_v5 = vld [vmem:[%s165_s19] sm:$0xff]  ;;  %v2953_v6 = vld [vmem:[%s165_s19 + $0x8] ss:$0 sps:$4 sm:$0xff]   ;;  %vm296_vm4 = vcmask 1039360  }
  0x10   : > { %190 = vrot.lane.b32.xlu0 %v182_v5, %s2978_s20  ;;  %v186_v7 = vcombine.low %v182_v5, %v182_v5  ;;  %vm322_vm5 = vcmask 1031168   ;;  %vm4148_vm6 = vcmask 908288   ;;  %vm4147_vm7 = vcmask 900096   ;;  %s3012_s11 = smov 60   ;;  %s3013_s14 = smov 58  }
  0x11   : > { %2887 = vset.pattern.permute.xlu1 %v2977_v4  ;;  %vm400_vm8 = vcmask 891904   ;;  %vm4155_vm9 = vcmask 769024   ;;  %vm4154_vm10 = vcmask 760832   ;;  %vm4151_vm11 = vmmov 0   ;;  %s3015_s15 = smov 10   ;;  %s3016_s19 = smov 120  }
  0x12   : > { %192 = vrot.lane.b32.xlu1 %v2953_v6, %s2978_s20  ;;  %2769 = vmatprep.mubr.msk.f32.mxu1 %vm4151_vm11, %v2976_v3  ;;  %vm4153_vm12 = vcmask 752640   ;;  %vm522_vm13 = vcmask 1043456   ;;  %vm516_vm14 = vcmask 990208   ;;  %vm519_vm15 = vcmask 31744   ;;  %s3030_s4 = smov 119   ;;  %s3032_s6 = smov 44  }
  0x14   : > { %188 = vrot.lane.b32.xlu0 %v186_v7, %s2978_s20 }
  0x16   : > { %332 = vperm.xlu1 %2887, %v265_v0  }
  0x18   : > { %306 = vperm.xlu0 %2886, %v265_v0  }
  0x1a   : > { %2888 = vset.pattern.permute.xlu1 %v2979_v8 }
  0x1b   : > { %358 = vperm.xlu1 %2888, %v265_v0  }
  0x1c   : > { %2889 = vset.pattern.permute.xlu0 %v2980_v9 }
  0x1d   : > { %384 = vperm.xlu0 %2889, %v265_v0  }
  0x1f   : > { %2890 = vset.pattern.permute.xlu1 %v2981_v10 }
  0x20   : > { %410 = vperm.xlu1 %2890, %v265_v0  }
  0x21   : > { %2892 = vset.pattern.permute.xlu0 %v2982_v11 }
  0x22   : > { %462 = vperm.xlu0 %2892, %v265_v0  }
  0x24   : > { %2891 = vset.pattern.permute.xlu1 %v2983_v12 }
  0x25   : > { %436 = vperm.xlu1 %2891, %v265_v0  }
  0x26   : > { %2894 = vset.pattern.permute.xlu0 %v2984_v13 }
  0x27   : > { %488 = vperm.xlu0 %2894, %v265_v0  }
  0x29   : > { %2893 = vset.pattern.permute.xlu1 %v2985_v14 }
  0x2a   : > { %272 = vperm.xlu1 %2893, %v265_v0  }
  0x82   : > { %v191_v15 = vpop.permute.xlu0 %190 }
  0x86   : > { %v189_v17 = vpop.permute.xlu0 %188 }
  0x87   : > { %v194_v18 = vsel %vm172_vm0, %v189_v17, %v191_v15  ;;  %200 = vst.msk [vmem:[#allocation2 + $0x30] sm:$0xf0] %vm4150_vm2, %v189_v17 }
  0x88   : > { %v281_v16 = vpop.permute.xlu1 %280  ;;  %201 = vst [vmem:[#allocation2 + $0x38] sm:$0xf0] %v194_v18 }
  0x89   : > { %v282_v21 = vrot.slane %v281_v16, 4 }
  0x8c   : > { %v193_v19 = vpop.permute.xlu1 %192 }
  0x8d   : > { %v195_v20 = vsel %vm172_vm0, %v191_v15, %v193_v19 }
  0x8e   : > { %203 = vst.msk [vmem:[#allocation2 + $0x40] sm:$0xf0] %vm4149_vm3, %v195_v20  ;;  %v3108_v22 = vld [vmem:[#allocation2 + $0x30] sm:$0xf0] }
  0x8f   : > { %v284_v23 = vmul.f32 %v282_v21, %v3108_v22  ;;  %v3126_v43 = vld [vmem:[#allocation2 + $0x38] sm:$0xf0] }
  0x90   : > { %v285_v47 = vmul.f32 %v282_v21, %v3126_v43 }
  0x91   : > { %v333_v24 = vpop.permute.xlu1 %332  ;;  %290 = vrot.lane.b32.xlu1 %v284_v23, %s2986_s21 }
  0x92   : > { %v334_v25 = vrot.slane %v333_v24, 4 }
  0x93   : > { %v307_v26 = vpop.permute.xlu0 %306 }
  0x94   : > { %v336_v27 = vmul.f32 %v334_v25, %v3108_v22  ;;  %v308_v28 = vrot.slane %v307_v26, 4  ;;  %v337_v51 = vmul.f32 %v334_v25, %v3126_v43 }
  0x95   : > { %v3118_v38 = vld [vmem:[#allocation2 + $0x40] sm:$0xf0] }
  0x96   : > { %v359_v29 = vpop.permute.xlu1 %358  ;;  %342 = vrot.lane.b32.xlu1 %v336_v27, %s2987_s22  ;;  %v310_v31 = vmul.f32 %v308_v28, %v3108_v22  ;;  %v286_v39 = vmul.f32 %v282_v21, %v3118_v38  ;;  %v311_v44 = vmul.f32 %v308_v28, %v3126_v43  ;;  %v338_v46 = vmul.f32 %v334_v25, %v3118_v38 }
  0x97   : > { %v360_v30 = vrot.slane %v359_v29, 4  ;;  %v312_v49 = vmul.f32 %v308_v28, %v3118_v38 }
  0x98   : > { %316 = vrot.lane.b32.xlu0 %v310_v31, %s2988_s23  ;;  %v385_v32 = vpop.permute.xlu0 %384 }
  0x99   : > { %v386_v33 = vrot.slane %v385_v32, 4  ;;  %v362_v35 = vmul.f32 %v360_v30, %v3108_v22  ;;  %v363_v48 = vmul.f32 %v360_v30, %v3126_v43  ;;  %v364_v54 = vmul.f32 %v360_v30, %v3118_v38 }
  0x9b   : > { %v411_v34 = vpop.permute.xlu1 %410  ;;  %v388_v37 = vmul.f32 %v386_v33, %v3108_v22  ;;  %v390_v50 = vmul.f32 %v386_v33, %v3118_v38  ;;  %v389_v57 = vmul.f32 %v386_v33, %v3126_v43 }
  0x9c   : > { %v412_v36 = vrot.slane %v411_v34, 4  ;;  %368 = vrot.lane.b32.xlu0 %v362_v35, %s2989_s24 }
  0x9d   : > { %394 = vrot.lane.b32.xlu1 %v388_v37, %s2990_s25  ;;  %v463_v53 = vpop.permute.xlu0 %462 }
  0x9e   : > { %v414_v41 = vmul.f32 %v412_v36, %v3108_v22  ;;  %v415_v52 = vmul.f32 %v412_v36, %v3126_v43  ;;  %v464_v55 = vrot.slane %v463_v53, 4  ;;  %v416_v59 = vmul.f32 %v412_v36, %v3118_v38 }
  0xa0   : > { %v437_v40 = vpop.permute.xlu1 %436  ;;  %294 = vrot.lane.b32.xlu0 %v286_v39, %s2986_s21  ;;  %v467_v58 = vmul.f32 %v464_v55, %v3126_v43  ;;  %v466_v60 = vmul.f32 %v464_v55, %v3108_v22  ;;  %v468_v62 = vmul.f32 %v464_v55, %v3118_v38 }
  0xa1   : > { %v438_v42 = vrot.slane %v437_v40, 4  ;;  %420 = vrot.lane.b32.xlu1 %v414_v41, %s2991_s26 }
  0xa2   : > { %v3162_v0 = vpop.permute.xlu0 %488 }
  0xa3   : > { %v440_v45 = vmul.f32 %v438_v42, %v3108_v22  ;;  %v442_v56 = vmul.f32 %v438_v42, %v3118_v38  ;;  %v441_v61 = vmul.f32 %v438_v42, %v3126_v43 }
  0xa4   : > { %318 = vrot.lane.b32.xlu0 %v311_v44, %s2988_s23 }
  0xa5   : > { %446 = vrot.lane.b32.xlu1 %v440_v45, %s2992_s27  ;;  %v273_v63 = vpop.permute.xlu1 %272 }
  0xa6   : > { %v274_v13 = vrot.slane %v273_v63, 4  ;;  %v490_v63 = vrot.slane %v3162_v0, 4  ;;  %v495_v0 = vld [vmem:[%s4145_s2] sm:$0xf] }
  0xa8   : > { %346 = vrot.lane.b32.xlu0 %v338_v46, %s2987_s22  ;;  %v276_v17 = vmul.f32 %v274_v13, %v3108_v22  ;;  %v278_v18 = vmul.f32 %v274_v13, %v3118_v38  ;;  %v277_v22 = vmul.f32 %v274_v13, %v3126_v43 }
  0xa9   : > { %292 = vrot.lane.b32.xlu1 %v285_v47, %s2986_s21 }
  0xac   : > { %370 = vrot.lane.b32.xlu0 %v363_v48, %s2989_s24 }
  0xad   : > { %320 = vrot.lane.b32.xlu1 %v312_v49, %s2988_s23 }
  0xb0   : > { %398 = vrot.lane.b32.xlu0 %v390_v50, %s2990_s25 }
  0xb1   : > { %344 = vrot.lane.b32.xlu1 %v337_v51, %s2987_s22 }
  0xb4   : > { %422 = vrot.lane.b32.xlu0 %v415_v52, %s2991_s26 }
  0xb5   : > { %372 = vrot.lane.b32.xlu1 %v364_v54, %s2989_s24 }
  0xb8   : > { %450 = vrot.lane.b32.xlu0 %v442_v56, %s2992_s27 }
  0xb9   : > { %396 = vrot.lane.b32.xlu1 %v389_v57, %s2990_s25  ;;  %s3048_s25 = smov 112  }
  0xbc   : > { %474 = vrot.lane.b32.xlu0 %v467_v58, %s2993_s28 }
  0xbd   : > { %424 = vrot.lane.b32.xlu1 %v416_v59, %s2991_s26 }
  0xc0   : > { %472 = vrot.lane.b32.xlu0 %v466_v60, %s2993_s28 }
  0xc1   : > { %448 = vrot.lane.b32.xlu1 %v441_v61, %s2992_s27 }
  0xc5   : > { %476 = vrot.lane.b32.xlu1 %v468_v62, %s2993_s28 }
 0x103   : > { %v291_v1 = vpop.permute.xlu1 %290 }
 0x108   : > { %v343_v4 = vpop.permute.xlu1 %342 }
 0x10a   : > { %v317_v2 = vpop.permute.xlu0 %316 }
 0x10e   : > { %v369_v5 = vpop.permute.xlu0 %368 }
 0x10f   : > { %v395_v6 = vpop.permute.xlu1 %394 }
 0x112   : > { %v295_v7 = vpop.permute.xlu0 %294 }
 0x113   : > { %v421_v8 = vpop.permute.xlu1 %420  ;;  %v304_v23 = vadd.f32 %v295_v7, %v278_v18 }
 0x116   : > { %v319_v9 = vpop.permute.xlu0 %318 }
 0x117   : > { %v447_v10 = vpop.permute.xlu1 %446  ;;  %v323_v24 = vsel %vm322_vm5, %v317_v2, %v319_v9 }
 0x11a   : > { %v347_v11 = vpop.permute.xlu0 %346 }
 0x11b   : > { %v293_v12 = vpop.permute.xlu1 %292 }
 0x11c   : > { %v297_v16 = vsel %vm296_vm4, %v291_v1, %v293_v12  ;;  %v298_v30 = vsel %vm296_vm4, %v293_v12, %v295_v7 }
 0x11d   : > { %v302_v20 = vadd.f32 %v297_v16, %v276_v17  ;;  %v303_v35 = vadd.f32 %v298_v30, %v277_v22  ;;  %v3192_v16 = vld [vmem:[%s4144_s1] sm:$0xf] }
 0x11e   : > { %v371_v14 = vpop.permute.xlu0 %370 }
 0x11f   : > { %v321_v15 = vpop.permute.xlu1 %320  ;;  %v328_v28 = vadd.f32 %v323_v24, %v302_v20  ;;  %v375_v37 = vsel %vm4147_vm7, %v369_v5, %v371_v14  ;;  %v2998_v24 = vmov 12  }
 0x120   : > { %v330_v25 = vadd.f32 %v321_v15, %v304_v23  ;;  %v324_v32 = vsel %vm322_vm5, %v319_v9, %v321_v15  ;;  %v2995_v9 = vmov 10  }
 0x121   : > { %v329_v41 = vadd.f32 %v324_v32, %v303_v35  ;;  %2895 = vset.pattern.permute.xlu1 %v2995_v9 }
 0x122   : > { %v399_v19 = vpop.permute.xlu0 %398  ;;  %v356_v33 = vadd.f32 %v347_v11, %v330_v25  ;;  %v204_v25 = vlaneseq }
 0x123   : > { %v345_v21 = vpop.permute.xlu1 %344 }
 0x124   : > { %v349_v26 = vsel %vm4148_vm6, %v343_v4, %v345_v21  ;;  %v350_v38 = vsel %vm4148_vm6, %v345_v21, %v347_v11 }
 0x125   : > { %v354_v31 = vadd.f32 %v349_v26, %v328_v28  ;;  %v355_v44 = vadd.f32 %v350_v38, %v329_v41  ;;  %v205_v26 = vand.u32 127, %v204_v25  ;;  %v3004_v25 = vmov 16  }
 0x126   : > { %v423_v27 = vpop.permute.xlu0 %422 }
 0x127   : > { %v373_v29 = vpop.permute.xlu1 %372  ;;  %v380_v42 = vadd.f32 %v375_v37, %v354_v31  ;;  %v427_v51 = vsel %vm4155_vm9, %v421_v8, %v423_v27  ;;  %v206_v28 = vadd.s32 128, %v205_v26 }
 0x128   : > { %v382_v39 = vadd.f32 %v373_v29, %v356_v33  ;;  %v376_v43 = vsel %vm4147_vm7, %v371_v14, %v373_v29  ;;  %v3203_v29 = vmul.u32.u64.low 4042322161, %v205_v26  ;;  %v3204_v30 = vmul.u32.u64.high 4042322161, %v205_v26, %v3203_v29 }
 0x129   : > { %v381_v50 = vadd.f32 %v376_v43, %v355_v44  ;;  %v3209_v32 = vmul.u32.u64.low 4042322161, %v206_v28  ;;  %v3210_v33 = vmul.u32.u64.high 4042322161, %v206_v28, %v3209_v32 }
 0x12a   : > { %v451_v34 = vpop.permute.xlu0 %450  ;;  %v408_v49 = vadd.f32 %v399_v19, %v382_v39 }
 0x12b   : > { %v397_v36 = vpop.permute.xlu1 %396 }
 0x12c   : > { %v401_v40 = vsel %vm400_vm8, %v395_v6, %v397_v36  ;;  %v402_v48 = vsel %vm400_vm8, %v397_v36, %v399_v19  ;;  %v225_v36 = vshrl.u32 %v3210_v33, 4 }
 0x12d   : > { %v406_v45 = vadd.f32 %v401_v40, %v380_v42  ;;  %v407_v54 = vadd.f32 %v402_v48, %v381_v50 }
 0x12e   : > { %v475_v46 = vpop.permute.xlu0 %474  ;;  %v226_v39 = vmul.u32 17, %v225_v36 }
 0x12f   : > { %v425_v47 = vpop.permute.xlu1 %424  ;;  %v432_v56 = vadd.f32 %v427_v51, %v406_v45 }
 0x130   : > { %v428_v52 = vsel %vm4155_vm9, %v423_v27, %v425_v47  ;;  %v434_v53 = vadd.f32 %v425_v47, %v408_v49  ;;  %v207_v27 = vadd.s32 256, %v205_v26  ;;  %v227_v42 = vsub.s32 %v206_v28, %v226_v39 }
 0x131   : > { %v433_v59 = vadd.f32 %v428_v52, %v407_v54 }
 0x132   : > { %v473_v60 = vpop.permute.xlu0 %472  ;;  %v460_v62 = vadd.f32 %v451_v34, %v434_v53  ;;  %v3206_v22 = vmul.u32.u64.low 4042322161, %v207_v27  ;;  %v3207_v31 = vmul.u32.u64.high 4042322161, %v207_v27, %v3206_v22  ;;  %vm242_vm7 = vcmp.ne.s32.totalorder %v227_v42, 0 }
 0x133   : > { %v449_v55 = vpop.permute.xlu1 %448  ;;  %v479_v4 = vsel %vm4153_vm12, %v473_v60, %v475_v46  ;;  %vm245_vm6 = vcmp.lt.s32.totalorder %v227_v42, 0  ;;  %v251_v44 = vadd.s32 17, %v227_v42 }
 0x134   : > { %v453_v57 = vsel %vm4154_vm10, %v447_v10, %v449_v55  ;;  %v454_v58 = vsel %vm4154_vm10, %v449_v55, %v451_v34  ;;  %v214_v34 = vshrl.u32 %v3204_v30, 4  ;;  %v236_v35 = vshrl.u32 %v3207_v31, 4 }
 0x135   : > { %v458_v61 = vadd.f32 %v453_v57, %v432_v56  ;;  %v459_v1 = vadd.f32 %v454_v58, %v433_v59 }
 0x136   : > { %v215_v37 = vmul.u32 17, %v214_v34  ;;  %v237_v38 = vmul.u32 17, %v236_v35 }
 0x137   : > { %v477_v2 = vpop.permute.xlu1 %476  ;;  %v484_v8 = vadd.f32 %v479_v4, %v458_v61 }
 0x138   : > { %v480_v5 = vsel %vm4153_vm12, %v475_v46, %v477_v2  ;;  %v486_v6 = vadd.f32 %v477_v2, %v460_v62  ;;  %v216_v40 = vsub.s32 %v205_v26, %v215_v37  ;;  %v238_v41 = vsub.s32 %v207_v27, %v237_v38 }
 0x139   : > { %v485_v7 = vadd.f32 %v480_v5, %v459_v1  ;;  %v492_v14 = vadd.f32 %v490_v63, %v484_v8 }
 0x13a   : > { %v494_v10 = vadd.f32 %v490_v63, %v486_v6  ;;  %vm241_vm1 = vcmp.ne.s32.totalorder %v216_v40, 0  ;;  %vm244_vm8 = vcmp.lt.s32.totalorder %v216_v40, 0  ;;  %v250_v43 = vadd.s32 17, %v216_v40 }
 0x13b   : > { %v493_v11 = vadd.f32 %v490_v63, %v485_v7  ;;  %v507_v15 = vrot.slane %v492_v14, 4  ;;  %vm247_vm3 = vmand %vm244_vm8, %vm241_vm1  ;;  %v252_v45 = vadd.s32 17, %v238_v41  ;;  %v2999_v6 = vmov 11  }
 0x13c   : > { %v509_v12 = vrot.slane %v494_v10, 4  ;;  %v253_v46 = vsel %vm247_vm3, %v250_v43, %v216_v40  ;;  %2896 = vset.pattern.permute.xlu0 %v2999_v6  ;;  %vm4158_vm1 = vcmask 760832  }
 0x13d   : > { %v508_v13 = vrot.slane %v493_v11, 4  ;;  %vm256_vm12 = vcmp.lt.s32.totalorder %v253_v46, 16  ;;  %vm4159_vm8 = vmmov %vm4158_vm1 }
 0x13e   : > { %514 = vrot.lane.b32.xlu0 %v509_v12, %s2996_s29  ;;  %v3216_v52 = vsel %vm256_vm12, 1.0, %v2976_v3 }
 0x13f   : > { %512 = vrot.lane.b32.xlu1 %v508_v13, %s2996_s29 }
 0x142   : > { %502 = vrot.lane.b32.xlu0 %v495_v0, %s2997_s5  ;;  %s3031_s5 = smov 118  }
 0x143   : > { %510 = vrot.lane.b32.xlu1 %v507_v15, %s2996_s29 }
 0x147   : > { %498 = vperm.xlu1 %2895, %v3192_v16  }
 0x14b   : > { %2897 = vset.pattern.permute.xlu1 %v2998_v24  ;;  %v3003_v24 = vmov 22  }
 0x14c   : > { %713 = vperm.xlu1 %2897, %v3192_v16  }
 0x1b0   : > { %v515_v17 = vpop.permute.xlu0 %514 }
 0x1b1   : > { %v513_v18 = vpop.permute.xlu1 %512  ;;  %2768 = vmatpush3.msk.msra.mxu1 %vm522_vm13, %v515_v17 }
 0x1b2   : > { %v518_v19 = vsel %vm516_vm14, %v513_v18, %v515_v17  ;;  %2772 = vmatprep.subr.mxu1 %v2976_v3 }
 0x1b3   : > { %2741 = vmatprep.subr.msk.mxu0 %vm522_vm13, %v518_v19 }
 0x1b4   : > { %v503_v20 = vpop.permute.xlu0 %502 }
 0x1b5   : > { %v511_v21 = vpop.permute.xlu1 %510  ;;  %2770 = vmatmul.mubr.msk.f32.vlgmr.msra.gmra.mxu1 %vm519_vm15, %v503_v20 }
 0x1b6   : > { %v517_v23 = vsel %vm516_vm14, %v511_v21, %v513_v18  ;;  %2774 = vmatprep.mubr.msk.f32.mxu1 %vm4151_vm11, %v2976_v3  ;;  %vm243_vm14 = vcmp.ne.s32.totalorder %v238_v41, 0  ;;  %vm248_vm11 = vmand %vm245_vm6, %vm242_vm7  ;;  %v3001_v21 = vmov 19  }
 0x1b7   : > { %2742 = vmatpush1.msk.msra.mxu0 %vm522_vm13, %v517_v23  ;;  %v254_v47 = vsel %vm248_vm11, %v251_v44, %v227_v42  ;;  %v3002_v23 = vmov 17   ;;  %vm4156_vm11 = vcmask 769024  }
 0x1b8   : > { %2743 = vmatmul.mubr.msk.f32.vlgmr.msra.gmra.mxu0 %vm519_vm15, %v503_v20  ;;  %vm246_vm15 = vcmp.lt.s32.totalorder %v238_v41, 0  ;;  %vm257_vm10 = vcmp.lt.s32.totalorder %v254_v47, 16  ;;  %v3238_v20 = vld [vmem:[%s4144_s1 + $0x8] sm:$0xff]  ;;  %vm4157_vm12 = vmmov %vm4156_vm11 }
 0x1b9   : > { %1093 = vmatprep.mubr.f32.mxu0 %v2976_v3  ;;  %vm249_vm2 = vmand %vm246_vm15, %vm243_vm14  ;;  %v3219_v56 = vsel %vm257_vm10, 1.0, %v2976_v3  ;;  %vm752_vm10 = vcmask 330752   ;;  %vm4160_vm14 = vcmask 752640   ;;  %vm925_vm15 = vcmask 490496  }
 0x1ba   : > { %v255_v48 = vsel %vm249_vm2, %v252_v45, %v238_v41  ;;  %vm676_vm2 = vcmask 125952  }
 0x1bb   : > { %vm258_vm9 = vcmp.lt.s32.totalorder %v255_v48, 16 }
 0x1bc   : > { %v3222_v58 = vsel %vm258_vm9, 1.0, %v2976_v3  ;;  %v3000_v3 = vmov 13   ;;  %vm749_vm9 = vcmask 1043656  }
 0x1bd   : > { %2898 = vset.pattern.permute.xlu1 %v3000_v3 }
 0x1c2   : > { %v499_v50 = vpop.permute.xlu1 %498 }
 0x1c7   : > { %v714_v27 = vpop.permute.xlu1 %713 }
 0x275   : > { %v666_v49 = vpop.f32.mrf.mxu1 }
 0x276   : > { %v667_v54 = vadd.f32 %v666_v49, %v499_v50 }
 0x277   : > { %v2771_v51 = vpop.f32.mrf.mxu1 }
 0x278   : > { %v595_v53 = vpop.f32.mrf.mxu0  ;;  %v672_v62 = vmul.f32 %v3222_v58, %v667_v54 }
 0x279   : > { %v596_v55 = vadd.f32 %v595_v53, %v499_v50 }
 0x27a   : > { %v597_v57 = vpop.f32.mrf.mxu0  ;;  %v677_v4 = vsel %vm676_vm2, %v672_v62, 0.0 }
 0x27b   : > { %v670_v59 = vmul.f32 %v3216_v52, %v596_v55  ;;  %v598_v60 = vadd.f32 %v597_v57, %v499_v50  ;;  %v3006_v55 = vmov 20   ;;  %v3007_v57 = vmov 21  }
 0x27d   : > { %v671_v61 = vmul.f32 %v3219_v56, %v598_v60  ;;  %v673_v63 = vsel %vm522_vm13, %v670_v59, 0.0  ;;  %v3009_v60 = vmov 24  }
 0x27f   : > { %v674_v1 = vsel %vm522_vm13, %v671_v61, 0.0 }
 0x280   : > { %v675_v2 = vadd.f32 %v674_v1, %v673_v63  ;;  %v3010_v63 = vmov 25  }
 0x282   : > { %v678_v5 = vadd.f32 %v677_v4, %v675_v2 }
 0x284   : > { %679 = vadd.xlane.f32.xlu0 %v678_v5 }
 0x29a   : > { %706 = vperm.xlu0 %2896, %v3192_v16  }
 0x29e   : > { %2901 = vset.pattern.permute.xlu0 %v3001_v21 }
 0x29f   : > { %832 = vperm.xlu0 %2901, %v3238_v20  }
 0x2a3   : > { %2904 = vset.pattern.permute.xlu0 %v3003_v24 }
 0x2a4   : > { %910 = vperm.xlu0 %2904, %v3238_v20  }
 0x2a8   : > { %2907 = vset.pattern.permute.xlu0 %v3004_v25 }
 0x2a9   : > { %762 = vperm.xlu0 %2907, %v3238_v20  }
 0x30d   : > { %v680_v7 = vpop.xlane.xlu0 %679 }
 0x30e   : > { %v681_v8 = vmul.f32 0.00390625, %v680_v7 }
 0x310   : > { %v682_v9 = vsub.f32 %v670_v59, %v681_v8  ;;  %v683_v10 = vsub.f32 %v671_v61, %v681_v8  ;;  %v684_v11 = vsub.f32 %v672_v62, %v681_v8  ;;  %v695_v26 = vmul.f32 16.0, %v681_v8 }
 0x311   : > { %v3008_v59 = vmov 23  }
 0x312   : > { %v685_v12 = vmul.f32 %v682_v9, %v682_v9  ;;  %v686_v13 = vmul.f32 %v683_v10, %v683_v10  ;;  %v687_v14 = vmul.f32 %v684_v11, %v684_v11  ;;  %v696_v28 = vmul.f32 %v695_v26, %v681_v8 }
 0x314   : > { %v688_v0 = vsel %vm522_vm13, %v685_v12, 0.0  ;;  %v689_v15 = vsel %vm522_vm13, %v686_v13, 0.0  ;;  %v691_v18 = vsel %vm676_vm2, %v687_v14, 0.0 }
 0x315   : > { %v690_v17 = vadd.f32 %v689_v15, %v688_v0  ;;  %v707_v34 = vpop.permute.xlu0 %706 }
 0x317   : > { %v692_v19 = vadd.f32 %v691_v18, %v690_v17 }
 0x319   : > { %693 = vadd.xlane.f32.xlu1 %v692_v19 }
 0x32a   : > { %723 = vperm.xlu1 %2898, %v3192_v16   ;;  %v3005_v16 = vmov 18  }
 0x32e   : > { %2899 = vset.pattern.permute.xlu1 %v3002_v23 }
 0x32f   : > { %770 = vperm.xlu1 %2899, %v3238_v20  }
 0x333   : > { %2900 = vset.pattern.permute.xlu1 %v3005_v16 }
 0x3a2   : > { %v694_v29 = vpop.xlane.xlu1 %693 }
 0x3a3   : > { %v697_v30 = vsub.f32 %v694_v29, %v696_v28 }
 0x3a5   : > { %v698_v22 = vmul.f32 0.00390625, %v697_v30 }
 0x3a6   : > { %v724_v41 = vpop.permute.xlu1 %723 }
 0x3a7   : > { %v699_v31 = vmax.f32 %v698_v22, 0.0 }
 0x3a9   : > { %v700_v32 = vadd.f32 1e-05, %v699_v31 }
 0x3aa   : > { %v771_v61 = vpop.permute.xlu1 %770 }
 0x3ab   : > { %2955 = vrsqrt.f32 %v700_v32  ;;  %v773_v62 = vmul.f32 0.0, %v771_v61 }
 0x3b8   : > { %v2956_v33 = vpop.eup %2955 }
 0x3b9   : > { %v702_v35 = vmul.f32 %v2956_v33, %v682_v9  ;;  %v703_v36 = vmul.f32 %v2956_v33, %v683_v10  ;;  %v704_v37 = vmul.f32 %v2956_v33, %v684_v11  ;;  %v833_v10 = vpop.permute.xlu0 %832 }
 0x3bb   : > { %v709_v38 = vmul.f32 %v707_v34, %v702_v35  ;;  %v710_v39 = vmul.f32 %v707_v34, %v703_v36  ;;  %v711_v40 = vmul.f32 %v707_v34, %v704_v37 }
 0x3bd   : > { %v716_v42 = vadd.f32 %v714_v27, %v709_v38  ;;  %v717_v43 = vadd.f32 %v714_v27, %v710_v39  ;;  %v718_v44 = vadd.f32 %v714_v27, %v711_v40  ;;  %v911_v18 = vpop.permute.xlu0 %910 }
 0x3bf   : > { %v726_v45 = vmul.f32 %v724_v41, %v716_v42  ;;  %v727_v46 = vmul.f32 %v724_v41, %v717_v43  ;;  %vm719_vm3 = vcmp.ge.f32.partialorder %v716_v42, 0.0  ;;  %vm720_vm6 = vcmp.ge.f32.partialorder %v717_v43, 0.0 }
 0x3c0   : > { %v728_v49 = vmul.f32 %v724_v41, %v718_v44  ;;  %vm721_vm7 = vcmp.ge.f32.partialorder %v718_v44, 0.0 }
 0x3c1   : > { %v729_v47 = vsel %vm719_vm3, %v716_v42, %v726_v45  ;;  %v730_v50 = vsel %vm720_vm6, %v717_v43, %v727_v46  ;;  %v763_v40 = vpop.permute.xlu0 %762  ;;  %vm4161_vm3 = vmmov %vm4160_vm14  ;;  %vm952_vm6 = vcmask 482304  }
 0x3c2   : > { %v732_v48 = vmul.f32 %v3216_v52, %v729_v47  ;;  %v733_v51 = vmul.f32 %v3219_v56, %v730_v50  ;;  %v731_v53 = vsel %vm721_vm7, %v718_v44, %v728_v49  ;;  %vm979_vm7 = vcmask 474112  }
 0x3c3   : > { %v734_v54 = vmul.f32 %v3222_v58, %v731_v53 }
 0x3c4   : > { %738 = vrot.lane.b32.xlu1 %v732_v48, %s2978_s20 }
 0x3c8   : > { %740 = vrot.lane.b32.xlu1 %v733_v51, %s2978_s20 }
 0x3cc   : > { %742 = vrot.lane.b32.xlu1 %v734_v54, %s2978_s20 }
 0x3d0   : > { %801 = vperm.xlu1 %2900, %v3238_v20  }
 0x3d4   : > { %2902 = vset.pattern.permute.xlu1 %v3006_v55 }
 0x3d5   : > { %858 = vperm.xlu1 %2902, %v3238_v20  }
 0x3d9   : > { %2903 = vset.pattern.permute.xlu1 %v3007_v57 }
 0x3da   : > { %884 = vperm.xlu1 %2903, %v3238_v20  }
 0x3de   : > { %2905 = vset.pattern.permute.xlu1 %v3008_v59  ;;  %v765_v59 = vmul.f32 0.0, %v763_v40 }
 0x3df   : > { %937 = vperm.xlu1 %2905, %v3238_v20  }
 0x3e3   : > { %2906 = vset.pattern.permute.xlu1 %v3009_v60 }
 0x3e4   : > { %964 = vperm.xlu1 %2906, %v3238_v20  }
 0x3e8   : > { %781 = vrot.lane.b32.xlu1 %v773_v62, %s2986_s21 }
 0x3e9   : > { %2908 = vset.pattern.permute.xlu1 %v3010_v63 }
 0x436   : > { %v739_v1 = vpop.permute.xlu1 %738 }
 0x437   : > { %750 = vst.msk [vmem:[#allocation2 + $0x30] sm:$0xf] %vm749_vm9, %v739_v1 }
 0x43a   : > { %v741_v2 = vpop.permute.xlu1 %740 }
 0x43b   : > { %v744_v4 = vsel %vm172_vm0, %v739_v1, %v741_v2 }
 0x43c   : > { %751 = vst [vmem:[#allocation2 + $0x38] sm:$0xf] %v744_v4 }
 0x43e   : > { %v743_v5 = vpop.permute.xlu1 %742  ;;  %v3260_v7 = vld [vmem:[#allocation2 + $0x30] sm:$0xff] }
 0x43f   : > { %v745_v6 = vsel %vm172_vm0, %v741_v2, %v743_v5  ;;  %v835_v12 = vmul.f32 %v833_v10, %v3260_v7  ;;  %v774_v13 = vmul.f32 %v771_v61, %v3260_v7 }
 0x440   : > { %753 = vst.msk [vmem:[#allocation2 + $0x40] sm:$0xf] %vm752_vm10, %v745_v6  ;;  %v766_v6 = vmul.f32 %v763_v40, %v3260_v7 }
 0x443   : > { %v3277_v21 = vld [vmem:[#allocation2 + $0x38] sm:$0xff] }
 0x444   : > { %v775_v25 = vmul.f32 %v771_v61, %v3277_v21  ;;  %v836_v29 = vmul.f32 %v833_v10, %v3277_v21  ;;  %v914_v35 = vmul.f32 %v911_v18, %v3277_v21 }
 0x447   : > { %v3282_v16 = vld [vmem:[#allocation2 + $0x40] sm:$0xff] }
 0x448   : > { %v776_v26 = vmul.f32 %v771_v61, %v3282_v16  ;;  %v837_v30 = vmul.f32 %v833_v10, %v3282_v16  ;;  %v915_v34 = vmul.f32 %v911_v18, %v3282_v16 }
 0x44b   : > { %v802_v3 = vpop.permute.xlu1 %801 }
 0x44c   : > { %v805_v8 = vmul.f32 %v802_v3, %v3260_v7  ;;  %v804_v9 = vmul.f32 0.0, %v802_v3  ;;  %v806_v27 = vmul.f32 %v802_v3, %v3277_v21  ;;  %v807_v28 = vmul.f32 %v802_v3, %v3282_v16 }
 0x44e   : > { %814 = vrot.lane.b32.xlu0 %v805_v8, %s2988_s23  ;;  %812 = vrot.lane.b32.xlu1 %v804_v9, %s2988_s23 }
 0x450   : > { %v859_v11 = vpop.permute.xlu1 %858 }
 0x451   : > { %v861_v15 = vmul.f32 %v859_v11, %v3260_v7  ;;  %v863_v22 = vmul.f32 %v859_v11, %v3282_v16  ;;  %v862_v31 = vmul.f32 %v859_v11, %v3277_v21 }
 0x452   : > { %991 = vperm.xlu1 %2908, %v3238_v20   ;;  %841 = vrot.lane.b32.xlu0 %v835_v12, %s2991_s26  ;;  %v913_v20 = vmul.f32 %v911_v18, %v3260_v7 }
 0x455   : > { %v885_v14 = vpop.permute.xlu1 %884 }
 0x456   : > { %783 = vrot.lane.b32.xlu1 %v774_v13, %s2986_s21  ;;  %v887_v0 = vmul.f32 %v885_v14, %v3260_v7  ;;  %v888_v32 = vmul.f32 %v885_v14, %v3277_v21  ;;  %v889_v33 = vmul.f32 %v885_v14, %v3282_v16  ;;  %v768_v14 = vmul.f32 %v763_v40, %v3282_v16 }
 0x458   : > { %893 = vrot.lane.b32.xlu0 %v887_v0, %s2993_s28  ;;  %v767_v0 = vmul.f32 %v763_v40, %v3277_v21 }
 0x45a   : > { %867 = vrot.lane.b32.xlu1 %v861_v15, %s2992_s27  ;;  %v938_v17 = vpop.permute.xlu1 %937 }
 0x45b   : > { %v940_v19 = vmul.f32 %v938_v17, %v3260_v7  ;;  %v941_v36 = vmul.f32 %v938_v17, %v3277_v21  ;;  %v942_v37 = vmul.f32 %v938_v17, %v3282_v16 }
 0x45d   : > { %946 = vrot.lane.b32.xlu0 %v940_v19, %s3011_s10 }
 0x45e   : > { %919 = vrot.lane.b32.xlu1 %v913_v20, %s3012_s11 }
 0x45f   : > { %v965_v23 = vpop.permute.xlu1 %964 }
 0x460   : > { %v967_v24 = vmul.f32 %v965_v23, %v3260_v7  ;;  %v968_v38 = vmul.f32 %v965_v23, %v3277_v21  ;;  %v969_v39 = vmul.f32 %v965_v23, %v3282_v16 }
 0x462   : > { %973 = vrot.lane.b32.xlu0 %v967_v24, %s3013_s14  ;;  %785 = vrot.lane.b32.xlu1 %v775_v25, %s2986_s21 }
 0x463   : > { %v782_v42 = vpop.permute.xlu1 %781 }
 0x466   : > { %787 = vrot.lane.b32.xlu0 %v776_v26, %s2986_s21  ;;  %816 = vrot.lane.b32.xlu1 %v806_v27, %s2988_s23 }
 0x46a   : > { %818 = vrot.lane.b32.xlu0 %v807_v28, %s2988_s23  ;;  %843 = vrot.lane.b32.xlu1 %v836_v29, %s2991_s26 }
 0x46e   : > { %845 = vrot.lane.b32.xlu0 %v837_v30, %s2991_s26  ;;  %871 = vrot.lane.b32.xlu1 %v863_v22, %s2992_s27  ;;  %s170_s26 = scalar_lea.vmem %s4146_s3, %s2791_s16 }
 0x472   : > { %869 = vrot.lane.b32.xlu0 %v862_v31, %s2992_s27  ;;  %895 = vrot.lane.b32.xlu1 %v888_v32, %s2993_s28 }
 0x476   : > { %897 = vrot.lane.b32.xlu0 %v889_v33, %s2993_s28  ;;  %923 = vrot.lane.b32.xlu1 %v915_v34, %s3012_s11 }
 0x47a   : > { %921 = vrot.lane.b32.xlu0 %v914_v35, %s3012_s11  ;;  %948 = vrot.lane.b32.xlu1 %v941_v36, %s3011_s10 }
 0x47e   : > { %950 = vrot.lane.b32.xlu0 %v942_v37, %s3011_s10  ;;  %975 = vrot.lane.b32.xlu1 %v968_v38, %s3013_s14 }
 0x482   : > { %977 = vrot.lane.b32.xlu0 %v969_v39, %s3013_s14 }
 0x4c0   : > { %v815_v41 = vpop.permute.xlu0 %814  ;;  %v813_v44 = vpop.permute.xlu1 %812 }
 0x4c1   : > { %v820_v63 = vsel %vm322_vm5, %v813_v44, %v815_v41 }
 0x4c4   : > { %v842_v43 = vpop.permute.xlu0 %841 }
 0x4ca   : > { %v894_v45 = vpop.permute.xlu0 %893 }
 0x4cd   : > { %v3316_v46 = vpop.permute.xlu1 %991 }
 0x4cf   : > { %v3318_v47 = vpop.permute.xlu0 %946 }
 0x4d1   : > { %v784_v48 = vpop.permute.xlu1 %783 }
 0x4d2   : > { %v789_v57 = vsel %vm296_vm4, %v782_v42, %v784_v48 }
 0x4d3   : > { %v796_v61 = vadd.f32 %v789_v57, %v765_v59 }
 0x4d4   : > { %v3320_v49 = vpop.permute.xlu0 %973 }
 0x4d5   : > { %v868_v50 = vpop.permute.xlu1 %867  ;;  %v827_v2 = vadd.f32 %v820_v63, %v796_v61 }
 0x4d7   : > { %v853_v9 = vadd.f32 %v842_v43, %v827_v2 }
 0x4d8   : > { %v788_v51 = vpop.permute.xlu0 %787 }
 0x4d9   : > { %v920_v53 = vpop.permute.xlu1 %919  ;;  %v879_v18 = vadd.f32 %v868_v50, %v853_v9  ;;  %v799_v19 = vadd.f32 %v788_v51, %v768_v14  ;;  %v998_v9 = vld [vmem:[%s4145_s2 + $0x4] sm:$0xf] }
 0x4db   : > { %v905_v31 = vadd.f32 %v894_v45, %v879_v18 }
 0x4dc   : > { %v819_v54 = vpop.permute.xlu0 %818 }
 0x4dd   : > { %v786_v55 = vpop.permute.xlu1 %785  ;;  %v830_v27 = vadd.f32 %v819_v54, %v799_v19  ;;  %v932_v42 = vadd.f32 %v920_v53, %v905_v31 }
 0x4de   : > { %v790_v5 = vsel %vm296_vm4, %v784_v48, %v786_v55  ;;  %v791_v12 = vsel %vm296_vm4, %v786_v55, %v788_v51 }
 0x4df   : > { %v797_v10 = vadd.f32 %v790_v5, %v766_v6  ;;  %v798_v20 = vadd.f32 %v791_v12, %v767_v0  ;;  %v959_v57 = vadd.f32 %v3318_v47, %v932_v42  ;;  %v3384_v42 = vld [vmem:[%s4144_s1 + $0xc] sm:$0xf] }
 0x4e0   : > { %v846_v60 = vpop.permute.xlu0 %845 }
 0x4e1   : > { %v817_v62 = vpop.permute.xlu1 %816  ;;  %v856_v32 = vadd.f32 %v846_v60, %v830_v27  ;;  %v986_v5 = vadd.f32 %v3320_v49, %v959_v57  ;;  %v3028_v57 = vmov 32  }
 0x4e2   : > { %v821_v3 = vsel %vm322_vm5, %v815_v41, %v817_v62  ;;  %v822_v17 = vsel %vm322_vm5, %v817_v62, %v819_v54 }
 0x4e3   : > { %v828_v15 = vadd.f32 %v821_v3, %v797_v10  ;;  %v829_v28 = vadd.f32 %v822_v17, %v798_v20  ;;  %v3361_v20 = vld [vmem:[#allocation2] sm:$0xff] }
 0x4e4   : > { %v870_v1 = vpop.permute.xlu0 %869 }
 0x4e5   : > { %v844_v4 = vpop.permute.xlu1 %843  ;;  %v873_v29 = vsel %vm4158_vm1, %v868_v50, %v870_v1  ;;  %vm4162_vm1 = vmmov 0  }
 0x4e6   : > { %v847_v13 = vsel %vm4156_vm11, %v842_v43, %v844_v4  ;;  %v848_v26 = vsel %vm4157_vm12, %v844_v4, %v846_v60  ;;  %vm1019_vm11 = vcmask 80896   ;;  %vm1026_vm12 = vcmask 64512  }
 0x4e7   : > { %v854_v23 = vadd.f32 %v847_v13, %v828_v15  ;;  %v855_v33 = vadd.f32 %v848_v26, %v829_v28 }
 0x4e8   : > { %v898_v8 = vpop.permute.xlu0 %897 }
 0x4e9   : > { %v872_v11 = vpop.permute.xlu1 %871  ;;  %v880_v34 = vadd.f32 %v873_v29, %v854_v23  ;;  %v3017_v23 = vmov 27  }
 0x4ea   : > { %v874_v30 = vsel %vm4159_vm8, %v870_v1, %v872_v11  ;;  %v882_v38 = vadd.f32 %v872_v11, %v856_v32  ;;  %v994_v11 = vadd.f32 %v3316_v46, %v986_v5  ;;  %2910 = vset.pattern.permute.xlu1 %v3017_v23 }
 0x4eb   : > { %v881_v37 = vadd.f32 %v874_v30, %v855_v33 }
 0x4ec   : > { %v922_v24 = vpop.permute.xlu0 %921  ;;  %v908_v51 = vadd.f32 %v898_v8, %v882_v38 }
 0x4ed   : > { %v896_v25 = vpop.permute.xlu1 %895  ;;  %v926_v48 = vsel %vm925_vm15, %v920_v53, %v922_v24 }
 0x4ee   : > { %v899_v22 = vsel %vm4160_vm14, %v894_v45, %v896_v25  ;;  %v900_v36 = vsel %vm4161_vm3, %v896_v25, %v898_v8 }
 0x4ef   : > { %v906_v39 = vadd.f32 %v899_v22, %v880_v34  ;;  %v907_v43 = vadd.f32 %v900_v36, %v881_v37 }
 0x4f0   : > { %v951_v40 = vpop.permute.xlu0 %950 }
 0x4f1   : > { %v924_v35 = vpop.permute.xlu1 %923  ;;  %v933_v55 = vadd.f32 %v926_v48, %v906_v39  ;;  %v3018_v39 = vmov 29   ;;  %v3022_v48 = vmov 35  }
 0x4f2   : > { %v927_v41 = vsel %vm925_vm15, %v922_v24, %v924_v35  ;;  %v935_v59 = vadd.f32 %v924_v35, %v908_v51  ;;  %v3025_v51 = vmov 38  }
 0x4f3   : > { %v934_v54 = vadd.f32 %v927_v41, %v907_v43  ;;  %v3019_v41 = vmov 33   ;;  %v3020_v43 = vmov 34  }
 0x4f4   : > { %v978_v60 = vpop.permute.xlu0 %977  ;;  %v962_v6 = vadd.f32 %v951_v40, %v935_v59 }
 0x4f5   : > { %v949_v44 = vpop.permute.xlu1 %948 }
 0x4f6   : > { %v953_v45 = vsel %vm952_vm6, %v3318_v47, %v949_v44  ;;  %v954_v50 = vsel %vm952_vm6, %v949_v44, %v951_v40  ;;  %v3014_v47 = vmov 26   ;;  %v989_v10 = vadd.f32 %v978_v60, %v962_v6  ;;  %v3378_v40 = vld [vmem:[%s4144_s1 + $0x4] sm:$0xff] }
 0x4f7   : > { %v960_v61 = vadd.f32 %v953_v45, %v933_v55  ;;  %v961_v62 = vadd.f32 %v954_v50, %v934_v54  ;;  %2909 = vset.pattern.permute.xlu0 %v3014_v47  ;;  %v3021_v44 = vmov 28   ;;  %v3023_v45 = vmov 36  }
 0x4f8   : > { %v997_v12 = vadd.f32 %v3316_v46, %v989_v10  ;;  %v3024_v50 = vmov 37   ;;  %v3026_v54 = vmov 39   ;;  %v3027_v55 = vmov 40  }
 0x4f9   : > { %v976_v63 = vpop.permute.xlu1 %975 }
 0x4fa   : > { %v980_v1 = vsel %vm979_vm7, %v3320_v49, %v976_v63  ;;  %v981_v53 = vsel %vm979_vm7, %v976_v63, %v978_v60  ;;  %v3357_v49 = vld [vmem:[%s4144_s1] sm:$0xf] }
 0x4fb   : > { %v987_v2 = vadd.f32 %v980_v1, %v960_v61  ;;  %v988_v4 = vadd.f32 %v981_v53, %v961_v62 }
 0x4fd   : > { %v995_v3 = vadd.f32 %v3316_v46, %v987_v2  ;;  %v996_v8 = vadd.f32 %v3316_v46, %v988_v4 }
 0x4ff   : > { %1013 = vrot.lane.b32.xlu1 %v995_v3, %s3015_s15  ;;  %1015 = vrot.lane.b32.xlu0 %v996_v8, %s3015_s15 }
 0x503   : > { %1011 = vrot.lane.b32.xlu1 %v994_v11, %s3015_s15  ;;  %1005 = vrot.lane.b32.xlu0 %v998_v9, %s3016_s19 }
 0x507   : > { %1017 = vrot.lane.b32.xlu1 %v997_v12, %s3015_s15  ;;  %1001 = vperm.xlu0 %2909, %v3357_v49  }
 0x50b   : > { %2911 = vset.pattern.permute.xlu0 %v3021_v44 }
 0x571   : > { %v1014_v13 = vpop.permute.xlu1 %1013  ;;  %v1016_v14 = vpop.permute.xlu0 %1015 }
 0x572   : > { %v1021_v0 = vsel %vm1019_vm11, %v1014_v13, %v1016_v14 }
 0x573   : > { %1059 = vmatprep.subr.mxu0 %v1021_v0 }
 0x575   : > { %v1012_v15 = vpop.permute.xlu1 %1011  ;;  %v1006_v17 = vpop.permute.xlu0 %1005 }
 0x576   : > { %v1020_v18 = vsel %vm1019_vm11, %v1012_v15, %v1014_v13 }
 0x577   : > { %1060 = vmatpush1.msra.mxu0 %v1020_v18 }
 0x578   : > { %2746 = vmatmul.mubr.msk.f32.vlgmr.msra.gmra.mxu0 %vm1026_vm12, %v1006_v17 }
 0x579   : > { %v1018_v19 = vpop.permute.xlu1 %1017  ;;  %1833 = vmatprep.mubr.f32.mxu0 %v3361_v20 }
 0x57a   : > { %v1022_v46 = vsel %vm1019_vm11, %v1016_v14, %v1018_v19  ;;  %vm4163_vm11 = vcmask 1047756  }
 0x57b   : > { %2773 = vmatpush3.msra.mxu1 %v1022_v46 }
 0x57c   : > { %2775 = vmatmul.mubr.msk.f32.vlgmr.msra.gmra.mxu1 %vm1026_vm12, %v1006_v17  ;;  %2777 = vmatprep.subr.mxu1 %v3361_v20  ;;  %v3423_v17 = vld [vmem:[#allocation2] sm:$0xf0]  ;;  %vm4164_vm12 = vcmask 334852  }
 0x57d   : > { %2781 = vmatprep.mubr.msk.f32.mxu1 %vm4162_vm1, %v3361_v20 }
 0x582   : > { %v1002_v24 = vpop.permute.xlu0 %1001 }
 0x638   : > { %v1095_v25 = vpop.f32.mrf.mxu0 }
 0x639   : > { %v1096_v26 = vadd.f32 %v1095_v25, %v1002_v24 }
 0x63a   : > { %v1097_v27 = vpop.f32.mrf.mxu0 }
 0x63b   : > { %v1098_v28 = vadd.f32 %v1097_v27, %v1002_v24  ;;  %v1170_v29 = vmul.f32 %v3216_v52, %v1096_v26 }
 0x63c   : > { %v1166_v30 = vpop.f32.mrf.mxu1 }
 0x63d   : > { %v1171_v22 = vmul.f32 %v3219_v56, %v1098_v28  ;;  %v1167_v31 = vadd.f32 %v1166_v30, %v1002_v24  ;;  %v1173_v34 = vsel %vm522_vm13, %v1170_v29, 0.0  ;;  %v3029_v30 = vmov 41  }
 0x63e   : > { %v2776_v32 = vpop.f32.mrf.mxu1 }
 0x63f   : > { %v1172_v33 = vmul.f32 %v3222_v58, %v1167_v31  ;;  %v1174_v35 = vsel %vm522_vm13, %v1171_v22, 0.0 }
 0x640   : > { %v1175_v36 = vadd.f32 %v1174_v35, %v1173_v34 }
 0x641   : > { %v1176_v37 = vsel %vm676_vm2, %v1172_v33, 0.0 }
 0x642   : > { %v1177_v38 = vadd.f32 %v1176_v37, %v1175_v36 }
 0x644   : > { %1178 = vadd.xlane.f32.xlu1 %v1177_v38 }
 0x655   : > { %1205 = vperm.xlu1 %2910, %v3357_v49  }
 0x659   : > { %2912 = vset.pattern.permute.xlu1 %v3018_v39 }
 0x65a   : > { %1222 = vperm.xlu1 %2912, %v3357_v49  }
 0x65e   : > { %2913 = vset.pattern.permute.xlu1 %v3019_v41 }
 0x65f   : > { %1283 = vperm.xlu1 %2913, %v3378_v40  }
 0x663   : > { %1286 = vperm.xlu1 %2913, %v3384_v42  }
 0x667   : > { %2914 = vset.pattern.permute.xlu1 %v3020_v43 }
 0x668   : > { %1334 = vperm.xlu1 %2914, %v3378_v40  }
 0x66c   : > { %1337 = vperm.xlu1 %2914, %v3384_v42  }
 0x670   : > { %2915 = vset.pattern.permute.xlu1 %v3022_v48 }
 0x671   : > { %1391 = vperm.xlu1 %2915, %v3378_v40  }
 0x675   : > { %2917 = vset.pattern.permute.xlu1 %v3023_v45 }
 0x676   : > { %1442 = vperm.xlu1 %2917, %v3378_v40  }
 0x67a   : > { %1445 = vperm.xlu1 %2917, %v3384_v42  }
 0x67e   : > { %2919 = vset.pattern.permute.xlu1 %v3024_v50 }
 0x67f   : > { %1496 = vperm.xlu1 %2919, %v3384_v42  }
 0x683   : > { %2920 = vset.pattern.permute.xlu1 %v3025_v51 }
 0x684   : > { %1544 = vperm.xlu1 %2920, %v3378_v40  }
 0x688   : > { %2922 = vset.pattern.permute.xlu1 %v3026_v54 }
 0x689   : > { %1596 = vperm.xlu1 %2922, %v3378_v40  }
 0x68d   : > { %1599 = vperm.xlu1 %2922, %v3384_v42  }
 0x691   : > { %2924 = vset.pattern.permute.xlu1 %v3027_v55 }
 0x692   : > { %1651 = vperm.xlu1 %2924, %v3384_v42  }
 0x696   : > { %2925 = vset.pattern.permute.xlu1 %v3028_v57 }
 0x697   : > { %1265 = vperm.xlu1 %2925, %v3378_v40  }
 0x69b   : > { %2928 = vset.pattern.permute.xlu1 %v3029_v30 }
 0x6cd   : > { %v1179_v59 = vpop.xlane.xlu1 %1178 }
 0x6ce   : > { %v1180_v60 = vmul.f32 0.00390625, %v1179_v59 }
 0x6d0   : > { %v3398_v61 = vsub.f32 %v1170_v29, %v1180_v60  ;;  %v3400_v62 = vsub.f32 %v1171_v22, %v1180_v60  ;;  %v3402_v63 = vsub.f32 %v1172_v33, %v1180_v60  ;;  %v1194_v22 = vmul.f32 16.0, %v1180_v60 }
 0x6d1   : > { %v3404_v1 = vpop.permute.xlu1 %1205 }
 0x6d2   : > { %v1184_v53 = vmul.f32 %v3398_v61, %v3398_v61  ;;  %v1185_v2 = vmul.f32 %v3400_v62, %v3400_v62  ;;  %v1186_v4 = vmul.f32 %v3402_v63, %v3402_v63  ;;  %v1195_v31 = vmul.f32 %v1194_v22, %v1180_v60 }
 0x6d4   : > { %v1187_v5 = vsel %vm522_vm13, %v1184_v53, 0.0  ;;  %v1188_v6 = vsel %vm522_vm13, %v1185_v2, 0.0  ;;  %v1190_v47 = vsel %vm676_vm2, %v1186_v4, 0.0 }
 0x6d5   : > { %v3414_v3 = vpop.permute.xlu1 %1222  ;;  %v1189_v8 = vadd.f32 %v1188_v6, %v1187_v5 }
 0x6d7   : > { %v1191_v9 = vadd.f32 %v1190_v47, %v1189_v8 }
 0x6d9   : > { %1192 = vadd.xlane.f32.xlu0 %v1191_v9 }
 0x6da   : > { %v1284_v10 = vpop.permute.xlu1 %1283 }
 0x6db   : > { %v3417_v11 = vrot.slane %v1284_v10, 4 }
 0x6dd   : > { %v1293_v24 = vmul.f32 %v3417_v11, %v3423_v17 }
 0x6de   : > { %v1287_v12 = vpop.permute.xlu1 %1286 }
 0x6df   : > { %v1289_v13 = vrot.slane %v1287_v12, 4 }
 0x6e1   : > { %v1290_v14 = vsel %vm522_vm13, %v3417_v11, %v1289_v13 }
 0x6e2   : > { %v1297_v0 = vmul.f32 %v1290_v14, %v3260_v7  ;;  %v1298_v18 = vmul.f32 %v1290_v14, %v3277_v21 }
 0x6e3   : > { %v1335_v15 = vpop.permute.xlu1 %1334 }
 0x6e4   : > { %1313 = vrot.lane.b32.xlu1 %v1297_v0, %s2986_s21  ;;  %v3426_v19 = vrot.slane %v1335_v15, 4 }
 0x6e6   : > { %v1344_v27 = vmul.f32 %v3426_v19, %v3423_v17 }
 0x6e7   : > { %v1338_v46 = vpop.permute.xlu1 %1337 }
 0x6e8   : > { %v1340_v23 = vrot.slane %v1338_v46, 4  ;;  %1315 = vrot.lane.b32.xlu1 %v1298_v18, %s2986_s21 }
 0x6ea   : > { %v1341_v25 = vsel %vm522_vm13, %v3426_v19, %v1340_v23 }
 0x6eb   : > { %v1349_v26 = vmul.f32 %v1341_v25, %v3277_v21  ;;  %v1348_v28 = vmul.f32 %v1341_v25, %v3260_v7  ;;  %v1347_v29 = vmul.f32 %v3361_v20, %v1341_v25 }
 0x6ec   : > { %1305 = vrot.lane.b32.xlu1 %v1293_v24, %s2986_s21  ;;  %v1392_v38 = vpop.permute.xlu1 %1391 }
 0x6ed   : > { %v3451_v39 = vrot.slane %v1392_v38, 4 }
 0x6ef   : > { %1212 = vperm.xlu0 %2911, %v3357_v49   ;;  %v1296_v49 = vmul.f32 %v3361_v20, %v1290_v14 }
 0x6f0   : > { %1366 = vrot.lane.b32.xlu1 %v1349_v26, %s2988_s23 }
 0x6f3   : > { %2916 = vset.pattern.permute.xlu0 %v3022_v48 }
 0x6f4   : > { %1394 = vperm.xlu0 %2916, %v3384_v42   ;;  %1356 = vrot.lane.b32.xlu1 %v1344_v27, %s2988_s23 }
 0x6f8   : > { %2918 = vset.pattern.permute.xlu0 %v3024_v50 }
 0x6f9   : > { %1493 = vperm.xlu0 %2918, %v3378_v40  }
 0x6fd   : > { %2921 = vset.pattern.permute.xlu0 %v3025_v51  ;;  %v1443_v51 = vpop.permute.xlu1 %1442 }
 0x6fe   : > { %1547 = vperm.xlu0 %2921, %v3384_v42   ;;  %v3468_v8 = vrot.slane %v1443_v51, 4 }
 0x701   : > { %v1446_v6 = vpop.permute.xlu1 %1445 }
 0x702   : > { %2923 = vset.pattern.permute.xlu0 %v3027_v55  ;;  %v1448_v9 = vrot.slane %v1446_v6, 4 }
 0x703   : > { %1648 = vperm.xlu0 %2923, %v3378_v40  }
 0x704   : > { %v1449_v46 = vsel %vm522_vm13, %v3468_v8, %v1448_v9 }
 0x705   : > { %v1497_v15 = vpop.permute.xlu1 %1496  ;;  %v1455_v24 = vmul.f32 %v1449_v46, %v3260_v7 }
 0x706   : > { %v1499_v25 = vrot.slane %v1497_v15, 4 }
 0x707   : > { %2926 = vset.pattern.permute.xlu0 %v3028_v57 }
 0x708   : > { %1269 = vperm.xlu0 %2926, %v3384_v42  }
 0x709   : > { %v1545_v27 = vpop.permute.xlu1 %1544 }
 0x70c   : > { %1311 = vrot.lane.b32.xlu0 %v1296_v49, %s2986_s21 }
 0x70d   : > { %2927 = vset.pattern.permute.xlu0 %v3029_v30  ;;  %v1456_v30 = vmul.f32 %v1449_v46, %v3277_v21  ;;  %v1597_v22 = vpop.permute.xlu1 %1596 }
 0x710   : > { %1364 = vrot.lane.b32.xlu0 %v1348_v28, %s2988_s23  ;;  %v1457_v28 = vmul.f32 %v1449_v46, %v3282_v16 }
 0x714   : > { %1362 = vrot.lane.b32.xlu0 %v1347_v29, %s2988_s23 }
 0x762   : > { %v1193_v32 = vpop.xlane.xlu0 %1192 }
 0x763   : > { %v1196_v33 = vsub.f32 %v1193_v32, %v1195_v31 }
 0x765   : > { %v1197_v34 = vmul.f32 0.00390625, %v1196_v33 }
 0x767   : > { %v1198_v35 = vmax.f32 %v1197_v34, 0.0  ;;  %v3493_v34 = vrot.slane %v1545_v27, 4 }
 0x769   : > { %v1199_v36 = vadd.f32 1e-05, %v1198_v35 }
 0x76a   : > { %v1213_v37 = vpop.permute.xlu0 %1212 }
 0x76b   : > { %2957 = vrsqrt.f32 %v1199_v36 }
 0x76f   : > { %v1395_v41 = vpop.permute.xlu0 %1394 }
 0x770   : > { %v1397_v43 = vrot.slane %v1395_v41, 4  ;;  %v3500_v41 = vrot.slane %v1597_v22, 4 }
 0x772   : > { %v1398_v44 = vsel %vm522_vm13, %v3451_v39, %v1397_v43 }
 0x773   : > { %v1404_v48 = vmul.f32 %v1398_v44, %v3260_v7  ;;  %v1406_v45 = vmul.f32 %v1398_v44, %v3282_v16  ;;  %v1405_v49 = vmul.f32 %v1398_v44, %v3277_v21 }
 0x775   : > { %1419 = vrot.lane.b32.xlu0 %v1404_v48, %s3012_s11 }
 0x778   : > { %v2958_v50 = vpop.eup %2957 }
 0x779   : > { %v1201_v54 = vmul.f32 %v2958_v50, %v3398_v61  ;;  %v1202_v55 = vmul.f32 %v2958_v50, %v3400_v62  ;;  %v1203_v57 = vmul.f32 %v2958_v50, %v3402_v63  ;;  %1423 = vrot.lane.b32.xlu0 %v1406_v45, %s3012_s11 }
 0x77b   : > { %v1208_v59 = vmul.f32 %v3404_v1, %v1201_v54  ;;  %v1209_v60 = vmul.f32 %v3404_v1, %v1202_v55  ;;  %v1210_v53 = vmul.f32 %v3404_v1, %v1203_v57 }
 0x77d   : > { %v1215_v2 = vadd.f32 %v1213_v37, %v1208_v59  ;;  %v1216_v4 = vadd.f32 %v1213_v37, %v1209_v60  ;;  %v1217_v5 = vadd.f32 %v1213_v37, %v1210_v53  ;;  %v1600_v37 = vpop.permute.xlu1 %1599 }
 0x77e   : > { %v1602_v43 = vrot.slane %v1600_v37, 4 }
 0x77f   : > { %vm1218_vm8 = vcmp.ge.f32.partialorder %v1215_v2, 0.0  ;;  %vm1219_vm14 = vcmp.ge.f32.partialorder %v1216_v4, 0.0  ;;  %vm1220_vm3 = vcmp.ge.f32.partialorder %v1217_v5, 0.0  ;;  %v1225_v61 = vmul.f32 %v3414_v3, %v1215_v2 }
 0x780   : > { %v1226_v62 = vmul.f32 %v3414_v3, %v1216_v4  ;;  %v1227_v63 = vmul.f32 %v3414_v3, %v1217_v5  ;;  %v1494_v3 = vpop.permute.xlu0 %1493  ;;  %v1603_v51 = vsel %vm522_vm13, %v3500_v41, %v1602_v43 }
 0x781   : > { %v1228_v47 = vsel %vm1218_vm8, %v1215_v2, %v1225_v61  ;;  %v3478_v26 = vrot.slane %v1494_v3, 4  ;;  %v1652_v45 = vpop.permute.xlu1 %1651  ;;  %v1611_v57 = vmul.f32 %v1603_v51, %v3282_v16  ;;  %v1610_v59 = vmul.f32 %v1603_v51, %v3277_v21 }
 0x782   : > { %v1231_v10 = vmul.f32 %v3216_v52, %v1228_v47  ;;  %v1230_v1 = vsel %vm1220_vm3, %v1217_v5, %v1227_v63  ;;  %v1229_v12 = vsel %vm1219_vm14, %v1216_v4, %v1226_v62  ;;  %v1654_v54 = vrot.slane %v1652_v45, 4 }
 0x783   : > { %v1233_v13 = vmul.f32 %v3222_v58, %v1230_v1  ;;  %v1232_v0 = vmul.f32 %v3219_v56, %v1229_v12  ;;  %v1500_v29 = vsel %vm522_vm13, %v3478_v26, %v1499_v25  ;;  %v1609_v53 = vmul.f32 %v1603_v51, %v3260_v7 }
 0x784   : > { %v1237_v14 = vrot.slane %v1231_v10, 4  ;;  %v1506_v31 = vmul.f32 %v1500_v29, %v3260_v7  ;;  %v1548_v32 = vpop.permute.xlu0 %1547  ;;  %v1507_v33 = vmul.f32 %v1500_v29, %v3277_v21  ;;  %v1508_v36 = vmul.f32 %v1500_v29, %v3282_v16 }
 0x785   : > { %v1239_v18 = vrot.slane %v1233_v13, 4  ;;  %v1238_v23 = vrot.slane %v1232_v0, 4  ;;  %v1550_v35 = vrot.slane %v1548_v32, 4  ;;  %v1266_v4 = vpop.permute.xlu1 %1265  ;;  %vm1578_vm8 = vcmask 982016  }
 0x786   : > { %1240 = vrot.lane.b32.xlu1 %v1237_v14, %s2978_s20  ;;  %vm1630_vm14 = vcmask 973824   ;;  %vm1682_vm3 = vcmask 965632  }
 0x787   : > { %1244 = vrot.lane.b32.xlu0 %v1239_v18, %s2978_s20  ;;  %v1551_v38 = vsel %vm522_vm13, %v3493_v34, %v1550_v35 }
 0x788   : > { %v1649_v44 = vpop.permute.xlu0 %1648  ;;  %v1558_v48 = vmul.f32 %v1551_v38, %v3277_v21  ;;  %v1559_v50 = vmul.f32 %v1551_v38, %v3282_v16 }
 0x789   : > { %v3508_v55 = vrot.slane %v1649_v44, 4  ;;  %v3530_v6 = vpop.permute.xlu1 %1313 }
 0x78a   : > { %1242 = vrot.lane.b32.xlu1 %v1238_v23, %s2978_s20 }
 0x78b   : > { %1470 = vrot.lane.b32.xlu0 %v1455_v24, %s3011_s10 }
 0x78c   : > { %v1270_v5 = vpop.permute.xlu0 %1269 }
 0x78d   : > { %v1272_v32 = vrot.slane %v1270_v5, 4 }
 0x78e   : > { %1421 = vrot.lane.b32.xlu1 %v1405_v49, %s3012_s11 }
 0x78f   : > { %1474 = vrot.lane.b32.xlu0 %v1457_v28, %s3011_s10 }
 0x790   : > { %v3532_v61 = vpop.permute.xlu0 %1311 }
 0x792   : > { %1472 = vrot.lane.b32.xlu1 %v1456_v30, %s3011_s10 }
 0x793   : > { %1521 = vrot.lane.b32.xlu0 %v1506_v31, %s3013_s14  ;;  %v3574_v31 = vrot.slane %v1266_v4, 4 }
 0x794   : > { %v3536_v62 = vpop.permute.xlu0 %1364 }
 0x795   : > { %v3588_v43 = vsel %vm522_vm13, %v3574_v31, %v1272_v32 }
 0x796   : > { %1523 = vrot.lane.b32.xlu1 %v1507_v33, %s3013_s14 }
 0x797   : > { %1525 = vrot.lane.b32.xlu0 %v1508_v36, %s3013_s14 }
 0x798   : > { %v3540_v47 = vpop.permute.xlu0 %1362 }
 0x79a   : > { %1703 = vperm.xlu1 %2928, %v3384_v42   ;;  %v1557_v42 = vmul.f32 %v1551_v38, %v3260_v7 }
 0x79b   : > { %1700 = vperm.xlu0 %2927, %v3378_v40   ;;  %v3517_v40 = vsel %vm522_vm13, %v3508_v55, %v1654_v54 }
 0x79c   : > { %v1663_v60 = vmul.f32 %v3517_v40, %v3282_v16  ;;  %v1662_v2 = vmul.f32 %v3517_v40, %v3277_v21  ;;  %v3534_v16 = vpop.permute.xlu1 %1315 }
 0x79e   : > { %1574 = vrot.lane.b32.xlu1 %v1558_v48, %s3016_s19  ;;  %v1281_v48 = vmul.f32 %v3588_v43, %v3277_v21 }
 0x79f   : > { %1576 = vrot.lane.b32.xlu0 %v1559_v50, %s3016_s19 }
 0x7a0   : > { %v3538_v63 = vpop.permute.xlu1 %1305 }
 0x7a2   : > { %1572 = vrot.lane.b32.xlu1 %v1557_v42, %s3016_s19  ;;  %v1332_v42 = vadd.f32 %v3534_v16, %v1281_v48 }
 0x7a3   : > { %1628 = vrot.lane.b32.xlu0 %v1611_v57, %s3030_s4 }
 0x7a4   : > { %v3542_v9 = vpop.permute.xlu1 %1366 }
 0x7a6   : > { %1626 = vrot.lane.b32.xlu1 %v1610_v59, %s3030_s4 }
 0x7a7   : > { %1680 = vrot.lane.b32.xlu0 %v1663_v60, %s3031_s5 }
 0x7a8   : > { %v3546_v1 = vpop.permute.xlu1 %1356 }
 0x7aa   : > { %1624 = vrot.lane.b32.xlu1 %v1609_v53, %s3030_s4  ;;  %v1280_v53 = vmul.f32 %v3588_v43, %v3260_v7  ;;  %v1320_v7 = vsel %vm296_vm4, %v3530_v6, %v3534_v16 }
 0x7ae   : > { %1678 = vrot.lane.b32.xlu1 %v1662_v2, %s3031_s5  ;;  %v1383_v2 = vadd.f32 %v3542_v9, %v1332_v42 }
 0x7e7   : > { %v3544_v10 = vpop.permute.xlu0 %1419 }
 0x7eb   : > { %v1424_v12 = vpop.permute.xlu0 %1423 }
 0x7f8   : > { %v1241_v13 = vpop.permute.xlu1 %1240 }
 0x7f9   : > { %1251 = vst.msk [vmem:[#allocation2 + $0x8] sm:$0xf0] %vm4163_vm11, %v1241_v13  ;;  %v1245_v14 = vpop.permute.xlu0 %1244 }
 0x7fc   : > { %v1243_v0 = vpop.permute.xlu1 %1242 }
 0x7fd   : > { %v1246_v15 = vsel %vm172_vm0, %v1241_v13, %v1243_v0  ;;  %v1247_v18 = vsel %vm172_vm0, %v1243_v0, %v1245_v14  ;;  %v3552_v46 = vpop.permute.xlu0 %1470 }
 0x7fe   : > { %1252 = vst [vmem:[#allocation2 + $0x10] sm:$0xf0] %v1246_v15  ;;  %1253 = vst.msk [vmem:[#allocation2 + $0x18] sm:$0xf0] %vm4164_vm12, %v1247_v18  ;;  %v1331_v18 = vadd.f32 %v1320_v7, %v1280_v53 }
 0x800   : > { %v3554_v3 = vld [vmem:[#allocation2 + $0x8] sm:$0xf0]  ;;  %v1422_v27 = vpop.permute.xlu1 %1421 }
 0x801   : > { %v3556_v23 = vld [vmem:[#allocation2 + $0x8] sm:$0xf0]  ;;  %v1401_v24 = vmul.f32 %v3451_v39, %v3554_v3  ;;  %v1452_v49 = vmul.f32 %v3468_v8, %v3554_v3  ;;  %v1475_v29 = vpop.permute.xlu0 %1474  ;;  %v1503_v30 = vmul.f32 %v3478_v26, %v3554_v3  ;;  %v1554_v22 = vmul.f32 %v3493_v34, %v3554_v3 }
 0x802   : > { %v1294_v25 = vmul.f32 %v3417_v11, %v3556_v23  ;;  %v1345_v28 = vmul.f32 %v3426_v19, %v3556_v23  ;;  %v1606_v37 = vmul.f32 %v3500_v41, %v3554_v3 }
 0x803   : > { %1413 = vrot.lane.b32.xlu1 %v1401_v24, %s3012_s11 }
 0x804   : > { %1307 = vrot.lane.b32.xlu0 %v1294_v25, %s2986_s21  ;;  %v1473_v35 = vpop.permute.xlu1 %1472 }
 0x805   : > { %v3576_v33 = vld [vmem:[#allocation2 + $0x10] sm:$0xf0]  ;;  %v3580_v36 = vpop.permute.xlu0 %1521  ;;  %v1386_v54 = vld [vmem:[#allocation2 + $0x18] sm:$0xf0] }
 0x806   : > { %v1295_v38 = vmul.f32 %v3417_v11, %v3576_v33  ;;  %v3590_v44 = vld [vmem:[#allocation2 + $0x10] sm:$0xf0]  ;;  %v1346_v11 = vmul.f32 %v3426_v19, %v3576_v33  ;;  %v1403_v21 = vmul.f32 %v3451_v39, %v1386_v54  ;;  %v1428_v19 = vsel %vm925_vm15, %v1422_v27, %v1424_v12 }
 0x807   : > { %1464 = vrot.lane.b32.xlu1 %v1452_v49, %s3011_s10  ;;  %v1402_v50 = vmul.f32 %v3451_v39, %v3590_v44  ;;  %v1453_v59 = vmul.f32 %v3468_v8, %v3590_v44  ;;  %v1504_v5 = vmul.f32 %v3478_v26, %v3590_v44  ;;  %v1454_v13 = vmul.f32 %v3468_v8, %v1386_v54 }
 0x808   : > { %1358 = vrot.lane.b32.xlu0 %v1345_v28, %s2988_s23  ;;  %v1524_v45 = vpop.permute.xlu1 %1523  ;;  %v1479_v39 = vsel %vm952_vm6, %v1473_v35, %v1475_v29  ;;  %v1440_v0 = vadd.f32 %v1428_v19, %v1383_v2  ;;  %v1371_v12 = vsel %vm322_vm5, %v3536_v62, %v3542_v9  ;;  %v1556_v25 = vmul.f32 %v3493_v34, %v1386_v54 }
 0x809   : > { %v1526_v51 = vpop.permute.xlu0 %1525  ;;  %v1505_v49 = vmul.f32 %v3478_v26, %v1386_v54  ;;  %v1427_v28 = vsel %vm925_vm15, %v3544_v10, %v1422_v27  ;;  %v1478_v9 = vsel %vm952_vm6, %v3552_v46, %v1473_v35  ;;  %v1608_v26 = vmul.f32 %v3500_v41, %v1386_v54 }
 0x80a   : > { %v1530_v15 = vsel %vm979_vm7, %v1524_v45, %v1526_v51  ;;  %v1491_v8 = vadd.f32 %v1479_v39, %v1440_v0  ;;  %v1555_v27 = vmul.f32 %v3493_v34, %v3590_v44 }
 0x80b   : > { %1515 = vrot.lane.b32.xlu1 %v1503_v30, %s3013_s14  ;;  %v1382_v30 = vadd.f32 %v1371_v12, %v1331_v18  ;;  %v2964_v12 = vld [vmem:[#allocation2 + $0x30] sm:$0xff] }
 0x80c   : > { %1566 = vrot.lane.b32.xlu0 %v1554_v22, %s3016_s19  ;;  %v1542_v16 = vadd.f32 %v1530_v15, %v1491_v8  ;;  %v1661_v15 = vmul.f32 %v2964_v12, %v3517_v40  ;;  %v1370_v12 = vsel %vm322_vm5, %v3540_v47, %v3536_v62 }
 0x80d   : > { %v1439_v22 = vadd.f32 %v1427_v28, %v1382_v30 }
 0x80f   : > { %1309 = vrot.lane.b32.xlu1 %v1295_v38, %s2986_s21  ;;  %v1529_v38 = vsel %vm979_vm7, %v3580_v36, %v1524_v45  ;;  %v1490_v51 = vadd.f32 %v1478_v9, %v1439_v22  ;;  %v1660_v45 = vmul.f32 %v3508_v55, %v1386_v54  ;;  %v1276_v9 = vmul.f32 %v3574_v31, %v3423_v17 }
 0x810   : > { %1618 = vrot.lane.b32.xlu0 %v1606_v37, %s3030_s4 }
 0x813   : > { %1360 = vrot.lane.b32.xlu1 %v1346_v11, %s2988_s23 }
 0x814   : > { %1415 = vrot.lane.b32.xlu0 %v1402_v50, %s3012_s11 }
 0x815   : > { %v1704_v57 = vpop.permute.xlu1 %1703 }
 0x816   : > { %v1701_v60 = vpop.permute.xlu0 %1700  ;;  %v1706_v50 = vrot.slane %v1704_v57, 4  ;;  %v1607_v57 = vmul.f32 %v3500_v41, %v3590_v44  ;;  %v1658_v41 = vmul.f32 %v3508_v55, %v3554_v3 }
 0x817   : > { %1417 = vrot.lane.b32.xlu1 %v1403_v21, %s3012_s11  ;;  %v3644_v48 = vrot.slane %v1701_v60, 4  ;;  %s3034_s11 = smov 124  }
 0x818   : > { %1466 = vrot.lane.b32.xlu0 %v1453_v59, %s3011_s10  ;;  %v1541_v59 = vadd.f32 %v1529_v38, %v1490_v51 }
 0x819   : > { %v3612_v4 = vpop.permute.xlu1 %1574  ;;  %v3657_v60 = vsel %vm522_vm13, %v3644_v48, %v1706_v50 }
 0x81a   : > { %v1577_v14 = vpop.permute.xlu0 %1576 }
 0x81b   : > { %1468 = vrot.lane.b32.xlu1 %v1454_v13, %s3011_s10  ;;  %v1594_v32 = vadd.f32 %v1577_v14, %v1542_v16  ;;  %v1582_v35 = vsel %vm1578_vm8, %v3612_v4, %v1577_v14  ;;  %v1659_v13 = vmul.f32 %v3508_v55, %v3590_v44 }
 0x81c   : > { %1517 = vrot.lane.b32.xlu0 %v1504_v5, %s3013_s14  ;;  %v1593_v53 = vadd.f32 %v1582_v35, %v1541_v59 }
 0x81d   : > { %v3627_v24 = vpop.permute.xlu1 %1572 }
 0x81e   : > { %v1629_v29 = vpop.permute.xlu0 %1628 }
 0x81f   : > { %1519 = vrot.lane.b32.xlu1 %v1505_v49, %s3013_s14  ;;  %v1646_v42 = vadd.f32 %v1629_v29, %v1594_v32 }
 0x820   : > { %1570 = vrot.lane.b32.xlu0 %v1556_v25, %s3016_s19 }
 0x821   : > { %v3637_v37 = vpop.permute.xlu1 %1626 }
 0x822   : > { %v1681_v11 = vpop.permute.xlu0 %1680  ;;  %v1634_v19 = vsel %vm1630_vm14, %v3637_v37, %v1629_v29 }
 0x823   : > { %1568 = vrot.lane.b32.xlu1 %v1555_v27, %s3016_s19  ;;  %v1698_v21 = vadd.f32 %v1681_v11, %v1646_v42  ;;  %v1645_v54 = vadd.f32 %v1634_v19, %v1593_v53  ;;  %v1278_v27 = vmul.f32 %v3574_v31, %v3576_v33  ;;  %v1279_v19 = vmul.f32 %v3361_v20, %v3588_v43 }
 0x824   : > { %1622 = vrot.lane.b32.xlu0 %v1608_v26, %s3030_s4 }
 0x825   : > { %v3650_v34 = vpop.permute.xlu1 %1624  ;;  %v3664_v2 = vadd.f32 %v3657_v60, %v1698_v21 }
 0x827   : > { %1620 = vrot.lane.b32.xlu1 %v1607_v57, %s3030_s4  ;;  %v1738_v0 = vrot.slane %v3664_v2, 4 }
 0x828   : > { %1674 = vrot.lane.b32.xlu0 %v1660_v45, %s3031_s5 }
 0x829   : > { %v3666_v5 = vpop.permute.xlu1 %1678 }
 0x82a   : > { %v1686_v39 = vsel %vm1682_vm3, %v3666_v5, %v1681_v11  ;;  %v1277_v11 = vmul.f32 %v3574_v31, %v3556_v23  ;;  %v1319_v31 = vsel %vm296_vm4, %v3532_v61, %v3530_v6 }
 0x82b   : > { %v1697_v14 = vadd.f32 %v1686_v39, %v1645_v54  ;;  %1672 = vrot.lane.b32.xlu1 %v1659_v13, %s3031_s5 }
 0x82c   : > { %1670 = vrot.lane.b32.xlu0 %v1658_v41, %s3031_s5 }
 0x82d   : > { %v3678_v7 = vadd.f32 %v3657_v60, %v1697_v14 }
 0x82f   : > { %1676 = vrot.lane.b32.xlu1 %v1661_v15, %s3031_s5  ;;  %v1735_v55 = vrot.slane %v3678_v7, 4 }
 0x830   : > { %1750 = vrot.lane.b32.xlu0 %v1738_v0, %s3032_s6 }
 0x833   : > { %1748 = vrot.lane.b32.xlu1 %v1735_v55, %s3032_s6 }
 0x875   : > { %v1414_v44 = vpop.permute.xlu1 %1413 }
 0x876   : > { %v1308_v3 = vpop.permute.xlu0 %1307 }
 0x877   : > { %v1317_v16 = vsel %vm296_vm4, %v3538_v63, %v1308_v3 }
 0x878   : > { %v1327_v50 = vadd.f32 %v1317_v16, %v1276_v9 }
 0x879   : > { %v1465_v8 = vpop.permute.xlu1 %1464 }
 0x87a   : > { %v1359_v18 = vpop.permute.xlu0 %1358 }
 0x87b   : > { %v1368_v26 = vsel %vm322_vm5, %v3546_v1, %v1359_v18 }
 0x87c   : > { %v1378_v42 = vadd.f32 %v1368_v26, %v1327_v50 }
 0x87d   : > { %v1516_v49 = vpop.permute.xlu1 %1515 }
 0x87e   : > { %v1567_v25 = vpop.permute.xlu0 %1566  ;;  %v1435_v53 = vadd.f32 %v1414_v44, %v1378_v42 }
 0x881   : > { %v1310_v28 = vpop.permute.xlu1 %1309 }
 0x882   : > { %v1619_v40 = vpop.permute.xlu0 %1618  ;;  %v1318_v38 = vsel %vm296_vm4, %v1308_v3, %v1310_v28  ;;  %v1329_v51 = vadd.f32 %v1310_v28, %v1278_v27  ;;  %v1330_v3 = vadd.f32 %v1319_v31, %v1279_v19 }
 0x883   : > { %v1328_v35 = vadd.f32 %v1318_v38, %v1277_v11 }
 0x884   : > { %v1381_v6 = vadd.f32 %v1370_v12, %v1330_v3 }
 0x885   : > { %v1361_v30 = vpop.permute.xlu1 %1360 }
 0x886   : > { %v1416_v29 = vpop.permute.xlu0 %1415  ;;  %v1369_v63 = vsel %vm322_vm5, %v1359_v18, %v1361_v30  ;;  %v1380_v45 = vadd.f32 %v1361_v30, %v1329_v51  ;;  %v1486_v18 = vadd.f32 %v1465_v8, %v1435_v53 }
 0x887   : > { %v1379_v1 = vadd.f32 %v1369_v63, %v1328_v35  ;;  %v1425_v41 = vsel %vm925_vm15, %v1414_v44, %v1416_v29 }
 0x888   : > { %v1537_v26 = vadd.f32 %v1516_v49, %v1486_v18 }
 0x889   : > { %v1418_v32 = vpop.permute.xlu1 %1417  ;;  %v1436_v14 = vadd.f32 %v1425_v41, %v1379_v1  ;;  %v3033_v41 = vmov 42  }
 0x88a   : > { %v1467_v22 = vpop.permute.xlu0 %1466  ;;  %v1426_v17 = vsel %vm925_vm15, %v1416_v29, %v1418_v32  ;;  %v1438_v32 = vadd.f32 %v3544_v10, %v1381_v6  ;;  %vm1752_vm15 = vcmask 359424   ;;  %2929 = vset.pattern.permute.xlu0 %v3033_v41 }
 0x88b   : > { %v1437_v33 = vadd.f32 %v1426_v17, %v1380_v45  ;;  %v1476_v15 = vsel %vm952_vm6, %v1465_v8, %v1467_v22 }
 0x88c   : > { %v1487_v61 = vadd.f32 %v1476_v15, %v1436_v14  ;;  %v1489_v38 = vadd.f32 %v3552_v46, %v1438_v32 }
 0x88d   : > { %v1469_v21 = vpop.permute.xlu1 %1468 }
 0x88e   : > { %v1518_v59 = vpop.permute.xlu0 %1517  ;;  %v1477_v57 = vsel %vm952_vm6, %v1467_v22, %v1469_v21  ;;  %v1540_v63 = vadd.f32 %v3580_v36, %v1489_v38  ;;  %vm1760_vm6 = vcmask 97280  }
 0x88f   : > { %v1488_v13 = vadd.f32 %v1477_v57, %v1437_v33  ;;  %v1527_v16 = vsel %vm979_vm7, %v1516_v49, %v1518_v59 }
 0x890   : > { %v1538_v62 = vadd.f32 %v1527_v16, %v1487_v61 }
 0x891   : > { %v1520_v23 = vpop.permute.xlu1 %1519 }
 0x892   : > { %v1571_v54 = vpop.permute.xlu0 %1570  ;;  %v1528_v39 = vsel %vm979_vm7, %v1518_v59, %v1520_v23  ;;  %vm178_vm7 = vcmask 539648  }
 0x893   : > { %v1539_v43 = vadd.f32 %v1528_v39, %v1488_v13 }
 0x895   : > { %v1569_v30 = vpop.permute.xlu1 %1568  ;;  %v1591_v44 = vadd.f32 %v1571_v54, %v1539_v43 }
 0x896   : > { %v1623_v28 = vpop.permute.xlu0 %1622  ;;  %v1579_v29 = vsel %vm1578_vm8, %v1567_v25, %v1569_v30  ;;  %v1580_v9 = vsel %vm1578_vm8, %v1569_v30, %v1571_v54  ;;  %v1581_v25 = vsel %vm1578_vm8, %v3627_v24, %v3612_v4  ;;  %v3035_v30 = vmov 43  }
 0x897   : > { %v1589_v50 = vadd.f32 %v1579_v29, %v1537_v26  ;;  %v1590_v11 = vadd.f32 %v1580_v9, %v1538_v62  ;;  %v1643_v51 = vadd.f32 %v1623_v28, %v1591_v44  ;;  %v1592_v59 = vadd.f32 %v1581_v25, %v1540_v63  ;;  %2930 = vset.pattern.permute.xlu1 %v3035_v30  ;;  %v3779_v25 = vld [vmem:[%s4144_s1 + $0x8] sm:$0xff]  ;;  %v3785_v63 = vld [vmem:[%s4144_s1] sm:$0xff] }
 0x899   : > { %v1621_v22 = vpop.permute.xlu1 %1620 }
 0x89a   : > { %v1675_v47 = vpop.permute.xlu0 %1674  ;;  %v1631_v27 = vsel %vm1630_vm14, %v1619_v40, %v1621_v22  ;;  %v1632_v8 = vsel %vm1630_vm14, %v1621_v22, %v1623_v28  ;;  %v1633_v40 = vsel %vm1630_vm14, %v3650_v34, %v3637_v37 }
 0x89b   : > { %v1641_v10 = vadd.f32 %v1631_v27, %v1589_v50  ;;  %v1642_v49 = vadd.f32 %v1632_v8, %v1590_v11  ;;  %v1695_v1 = vadd.f32 %v1675_v47, %v1643_v51  ;;  %v1644_v4 = vadd.f32 %v1633_v40, %v1592_v59 }
 0x89c   : > { %v3036_v11 = vmov 45   ;;  %v3037_v51 = vmov 49   ;;  %v3042_v40 = vmov 53   ;;  %v3044_v59 = vmov 55  }
 0x89d   : > { %v1673_v35 = vpop.permute.xlu1 %1672  ;;  %v1712_v53 = vadd.f32 %v3644_v48, %v1695_v1 }
 0x89e   : > { %v1671_v42 = vpop.permute.xlu0 %1670  ;;  %v1684_v46 = vsel %vm1682_vm3, %v1673_v35, %v1675_v47 }
 0x89f   : > { %v1683_v17 = vsel %vm1682_vm3, %v1671_v42, %v1673_v35  ;;  %v1694_v45 = vadd.f32 %v1684_v46, %v1642_v49  ;;  %v1737_v14 = vrot.slane %v1712_v53, 4  ;;  %v3039_v49 = vmov 44  }
 0x8a0   : > { %v1693_v21 = vadd.f32 %v1683_v17, %v1641_v10  ;;  %v3038_v10 = vmov 50   ;;  %v3040_v42 = vmov 51   ;;  %v3041_v35 = vmov 52   ;;  %v3794_v17 = vld [vmem:[#allocation2] sm:$0xff] }
 0x8a1   : > { %v1711_v24 = vadd.f32 %v3644_v48, %v1694_v45  ;;  %v1677_v57 = vpop.permute.xlu1 %1676  ;;  %v1739_v7 = vsel %vm522_vm13, %v1737_v14, %v1738_v0  ;;  %179 = vst.msk [vmem:[#allocation2 + $0x20] sm:$0xff] %vm178_vm7, %v3794_v17  ;;  %181 = vst.msk [vmem:[#allocation2 + $0x48] sm:$0xff] %vm178_vm7, %v3794_v17  ;;  %v3043_v46 = vmov 54   ;;  %v3046_v45 = vmov 48  }
 0x8a2   : > { %v1751_v36 = vpop.permute.xlu0 %1750  ;;  %v1685_v33 = vsel %vm1682_vm3, %v1677_v57, %v3666_v5  ;;  %v1710_v37 = vadd.f32 %v3644_v48, %v1693_v21  ;;  %v3045_v21 = vmov 56  }
 0x8a3   : > { %2778 = vmatpush3.msk.msra.mxu1 %vm522_vm13, %v1751_v36  ;;  %v1734_v34 = vrot.slane %v1711_v24, 4  ;;  %v1696_v19 = vadd.f32 %v1685_v33, %v1644_v4 }
 0x8a4   : > { %2779 = vmatprep.subr.mxu1 %v3361_v20  ;;  %v1731_v13 = vrot.slane %v1710_v37, 4 }
 0x8a5   : > { %v1713_v54 = vadd.f32 %v3657_v60, %v1696_v19  ;;  %v1749_v23 = vpop.permute.xlu1 %1748  ;;  %v1736_v31 = vsel %vm522_vm13, %v1734_v34, %v1735_v55  ;;  %v3750_v60 = vld [vmem:[%s4144_s1] sm:$0xf]  ;;  %v1716_v55 = vld [vmem:[%s4145_s2 + $0x8] sm:$0xf] }
 0x8a6   : > { %1742 = vrot.lane.b32.xlu0 %v1736_v31, %s3032_s6  ;;  %v1756_v5 = vsel %vm1752_vm15, %v1749_v23, %v1751_v36 }
 0x8a7   : > { %v1732_v39 = vrot.slane %v1713_v54, 4  ;;  %2748 = vmatprep.subr.msk.mxu0 %vm522_vm13, %v1756_v5 }
 0x8a9   : > { %1746 = vrot.lane.b32.xlu1 %v1732_v39, %s3032_s6  ;;  %v1733_v48 = vsel %vm522_vm13, %v1731_v13, %v1732_v39  ;;  %v3822_v13 = vld [vmem:[#allocation2 + $0x30] sm:$0xff] }
 0x8aa   : > { %1740 = vrot.lane.b32.xlu0 %v1733_v48, %s3032_s6 }
 0x8ad   : > { %1744 = vrot.lane.b32.xlu1 %v1739_v7, %s3032_s6 }
 0x8ae   : > { %1719 = vperm.xlu0 %2929, %v3750_v60  }
 0x8b1   : > { %1723 = vrot.lane.b32.xlu1 %v1716_v55, %s3034_s11  ;;  %v3830_v55 = vld [vmem:[#allocation2 + $0x38] sm:$0xff] }
 0x8b2   : > { %2931 = vset.pattern.permute.xlu0 %v3039_v49 }
 0x918   : > { %v1743_v12 = vpop.permute.xlu0 %1742 }
 0x91b   : > { %v1747_v15 = vpop.permute.xlu1 %1746 }
 0x91c   : > { %v1755_v43 = vsel %vm1752_vm15, %v1747_v15, %v1749_v23  ;;  %v1741_v3 = vpop.permute.xlu0 %1740 }
 0x91d   : > { %2749 = vmatpush1.msk.msra.mxu0 %vm522_vm13, %v1755_v43  ;;  %v1753_v18 = vsel %vm1752_vm15, %v1741_v3, %v1743_v12 }
 0x91f   : > { %v1745_v2 = vpop.permute.xlu1 %1744 }
 0x920   : > { %2780 = vmatpush3.msra.mxu1 %v1745_v2  ;;  %v1754_v0 = vsel %vm1752_vm15, %v1743_v12, %v1745_v2  ;;  %vm4167_vm15 = vcmask 900096  }
 0x921   : > { %1799 = vmatprep.subr.mxu0 %v1754_v0  ;;  %2784 = vmatprep.subr.mxu1 %v3361_v20 }
 0x922   : > { %1800 = vmatpush1.msra.mxu0 %v1753_v18 }
 0x923   : > { %v1724_v28 = vpop.permute.xlu1 %1723 }
 0x924   : > { %2750 = vmatmul.mubr.msk.f32.vlgmr.msra.gmra.mxu0 %vm1760_vm6, %v1724_v28  ;;  %2782 = vmatmul.mubr.msk.f32.vlgmr.msra.gmra.mxu1 %vm1760_vm6, %v1724_v28  ;;  %vm4168_vm6 = vmmov %vm4167_vm15 }
 0x925   : > { %2529 = vmatprep.mubr.f32.mxu0 %v3361_v20  ;;  %2788 = vmatprep.mubr.msk.f32.mxu1 %vm4162_vm1, %v3361_v20 }
 0x929   : > { %v1720_v16 = vpop.permute.xlu0 %1719 }
 0x9e4   : > { %v1835_v6 = vpop.f32.mrf.mxu0  ;;  %v1906_v61 = vpop.f32.mrf.mxu1 }
 0x9e5   : > { %v1836_v44 = vadd.f32 %v1835_v6, %v1720_v16  ;;  %v1907_v29 = vadd.f32 %v1906_v61, %v1720_v16 }
 0x9e6   : > { %v1837_v9 = vpop.f32.mrf.mxu0  ;;  %v2783_v32 = vpop.f32.mrf.mxu1 }
 0x9e7   : > { %v1910_v26 = vmul.f32 %v3216_v52, %v1836_v44  ;;  %v1838_v62 = vadd.f32 %v1837_v9, %v1720_v16  ;;  %v1912_v47 = vmul.f32 %v3222_v58, %v1907_v29 }
 0x9e9   : > { %v1911_v22 = vmul.f32 %v3219_v56, %v1838_v62  ;;  %v1913_v27 = vsel %vm522_vm13, %v1910_v26, 0.0  ;;  %v1916_v38 = vsel %vm676_vm2, %v1912_v47, 0.0  ;;  %v2117_v62 = vld [vmem:[#allocation2 + $0x40] sm:$0xff] }
 0x9eb   : > { %v1914_v20 = vsel %vm522_vm13, %v1911_v22, 0.0 }
 0x9ec   : > { %v1915_v8 = vadd.f32 %v1914_v20, %v1913_v27 }
 0x9ee   : > { %v1917_v50 = vadd.f32 %v1916_v38, %v1915_v8 }
 0x9f0   : > { %1918 = vadd.xlane.f32.xlu1 %v1917_v50 }
 0xa01   : > { %1945 = vperm.xlu1 %2930, %v3750_v60  }
 0xa05   : > { %2932 = vset.pattern.permute.xlu1 %v3036_v11 }
 0xa06   : > { %1962 = vperm.xlu1 %2932, %v3750_v60  }
 0xa0a   : > { %2933 = vset.pattern.permute.xlu1 %v3037_v51 }
 0xa0b   : > { %2021 = vperm.xlu1 %2933, %v3779_v25  }
 0xa0f   : > { %2017 = vperm.xlu1 %2933, %v3785_v63  }
 0xa13   : > { %2934 = vset.pattern.permute.xlu1 %v3038_v10 }
 0xa14   : > { %2069 = vperm.xlu1 %2934, %v3779_v25  }
 0xa18   : > { %2065 = vperm.xlu1 %2934, %v3785_v63  }
 0xa1c   : > { %2936 = vset.pattern.permute.xlu1 %v3040_v42 }
 0xa1d   : > { %2119 = vperm.xlu1 %2936, %v3785_v63  }
 0xa21   : > { %2937 = vset.pattern.permute.xlu1 %v3041_v35 }
 0xa22   : > { %2171 = vperm.xlu1 %2937, %v3779_v25  }
 0xa26   : > { %2939 = vset.pattern.permute.xlu1 %v3042_v40 }
 0xa27   : > { %2219 = vperm.xlu1 %2939, %v3779_v25  }
 0xa2b   : > { %2215 = vperm.xlu1 %2939, %v3785_v63  }
 0xa2f   : > { %2941 = vset.pattern.permute.xlu1 %v3043_v46 }
 0xa30   : > { %2269 = vperm.xlu1 %2941, %v3785_v63  }
 0xa34   : > { %2942 = vset.pattern.permute.xlu1 %v3044_v59 }
 0xa35   : > { %2322 = vperm.xlu1 %2942, %v3779_v25  }
 0xa39   : > { %2944 = vset.pattern.permute.xlu1 %v3045_v21 }
 0xa3a   : > { %2370 = vperm.xlu1 %2944, %v3779_v25  }
 0xa3e   : > { %2366 = vperm.xlu1 %2944, %v3785_v63  }
 0xa42   : > { %2946 = vset.pattern.permute.xlu1 %v3046_v45 }
 0xa43   : > { %2002 = vperm.xlu1 %2946, %v3785_v63  }
 0xa79   : > { %v1919_v1 = vpop.xlane.xlu1 %1918 }
 0xa7a   : > { %v1920_v4 = vmul.f32 0.00390625, %v1919_v1 }
 0xa7c   : > { %v3803_v24 = vsub.f32 %v1910_v26, %v1920_v4  ;;  %v3805_v36 = vsub.f32 %v1911_v22, %v1920_v4  ;;  %v3807_v57 = vsub.f32 %v1912_v47, %v1920_v4  ;;  %v1934_v18 = vmul.f32 16.0, %v1920_v4 }
 0xa7d   : > { %v3809_v33 = vpop.permute.xlu1 %1945 }
 0xa7e   : > { %v1924_v37 = vmul.f32 %v3803_v24, %v3803_v24  ;;  %v1925_v34 = vmul.f32 %v3805_v36, %v3805_v36  ;;  %v1926_v19 = vmul.f32 %v3807_v57, %v3807_v57  ;;  %v1935_v30 = vmul.f32 %v1934_v18, %v1920_v4 }
 0xa80   : > { %v1927_v53 = vsel %vm522_vm13, %v1924_v37, 0.0  ;;  %v1928_v54 = vsel %vm522_vm13, %v1925_v34, 0.0  ;;  %v1930_v41 = vsel %vm676_vm2, %v1926_v19, 0.0 }
 0xa81   : > { %v3819_v23 = vpop.permute.xlu1 %1962  ;;  %v1929_v31 = vadd.f32 %v1928_v54, %v1927_v53 }
 0xa83   : > { %v1931_v5 = vadd.f32 %v1930_v41, %v1929_v31 }
 0xa85   : > { %1932 = vadd.xlane.f32.xlu0 %v1931_v5 }
 0xa86   : > { %v2022_v39 = vpop.permute.xlu1 %2021 }
 0xa87   : > { %v2028_v14 = vmul.f32 %v2022_v39, %v3822_v13  ;;  %v2027_v48 = vmul.f32 %v3794_v17, %v2022_v39  ;;  %v2029_v3 = vmul.f32 %v2022_v39, %v3830_v55 }
 0xa89   : > { %2044 = vrot.lane.b32.xlu1 %v2028_v14, %s2986_s21 }
 0xa8a   : > { %v3827_v7 = vpop.permute.xlu1 %2017 }
 0xa8b   : > { %v2024_v0 = vmul.f32 %v3794_v17, %v3827_v7 }
 0xa8d   : > { %2042 = vrot.lane.b32.xlu1 %v2027_v48, %s2986_s21 }
 0xa8f   : > { %v2070_v12 = vpop.permute.xlu1 %2069 }
 0xa90   : > { %v2077_v15 = vmul.f32 %v2070_v12, %v3830_v55  ;;  %v2075_v43 = vmul.f32 %v3794_v17, %v2070_v12  ;;  %v2076_v2 = vmul.f32 %v2070_v12, %v3822_v13 }
 0xa92   : > { %2094 = vrot.lane.b32.xlu1 %v2077_v15, %s2988_s23 }
 0xa93   : > { %v3849_v28 = vpop.permute.xlu1 %2065 }
 0xa94   : > { %v2072_v8 = vmul.f32 %v3794_v17, %v3849_v28 }
 0xa96   : > { %2090 = vrot.lane.b32.xlu1 %v2075_v43, %s2988_s23 }
 0xa98   : > { %v3851_v61 = vpop.permute.xlu1 %2119 }
 0xa9b   : > { %1952 = vperm.xlu0 %2931, %v3750_v60   ;;  %v3047_v60 = vmov 57  }
 0xa9d   : > { %v2172_v26 = vpop.permute.xlu1 %2171 }
 0xa9e   : > { %v2178_v10 = vmul.f32 %v2172_v26, %v3830_v55  ;;  %v2177_v15 = vmul.f32 %v2172_v26, %v3822_v13 }
 0xa9f   : > { %2935 = vset.pattern.permute.xlu0 %v3040_v42 }
 0xaa0   : > { %2123 = vperm.xlu0 %2935, %v3779_v25  }
 0xaa2   : > { %v2220_v20 = vpop.permute.xlu1 %2219 }
 0xaa4   : > { %2938 = vset.pattern.permute.xlu0 %v3041_v35 }
 0xaa5   : > { %2167 = vperm.xlu0 %2938, %v3785_v63  }
 0xaa6   : > { %v3859_v50 = vpop.permute.xlu1 %2215 }
 0xaa9   : > { %2940 = vset.pattern.permute.xlu0 %v3043_v46 }
 0xaaa   : > { %2273 = vperm.xlu0 %2940, %v3779_v25  }
 0xaab   : > { %v3870_v40 = vpop.permute.xlu1 %2269 }
 0xaae   : > { %2943 = vset.pattern.permute.xlu0 %v3044_v59 }
 0xaaf   : > { %2318 = vperm.xlu0 %2943, %v3785_v63  }
 0xab0   : > { %v2323_v19 = vpop.permute.xlu1 %2322 }
 0xab1   : > { %v2329_v41 = vmul.f32 %v2323_v19, %v2117_v62 }
 0xab3   : > { %2945 = vset.pattern.permute.xlu0 %v3046_v45  ;;  %v2226_v45 = vmul.f32 %v2220_v20, %v3830_v55 }
 0xab4   : > { %2007 = vperm.xlu0 %2945, %v3779_v25  }
 0xab5   : > { %v2371_v14 = vpop.permute.xlu1 %2370 }
 0xab6   : > { %v2377_v12 = vmul.f32 %v2371_v14, %v2117_v62  ;;  %v2376_v43 = vmul.f32 %v2371_v14, %v3830_v55 }
 0xab8   : > { %2046 = vrot.lane.b32.xlu0 %v2029_v3, %s2986_s21  ;;  %v2227_v3 = vmul.f32 %v2220_v20, %v2117_v62 }
 0xab9   : > { %2947 = vset.pattern.permute.xlu0 %v3047_v60  ;;  %v2225_v60 = vmul.f32 %v2220_v20, %v3822_v13 }
 0xabc   : > { %2092 = vrot.lane.b32.xlu0 %v2076_v2, %s2988_s23 }
 0xac0   : > { %2036 = vrot.lane.b32.xlu0 %v2024_v0, %s2986_s21  ;;  %v3900_v0 = vld [vmem:[#allocation2 + $0x20] sm:$0xff] }
 0xac1   : > { %v2278_v18 = vmul.f32 %v3870_v40, %v3900_v0 }
 0xb0e   : > { %v1933_v16 = vpop.xlane.xlu0 %1932 }
 0xb0f   : > { %v1936_v6 = vsub.f32 %v1933_v16, %v1935_v30  ;;  %v2328_v16 = vmul.f32 %v2323_v19, %v3830_v55 }
 0xb11   : > { %v1937_v44 = vmul.f32 0.00390625, %v1936_v6 }
 0xb13   : > { %v1938_v29 = vmax.f32 %v1937_v44, 0.0 }
 0xb15   : > { %v1939_v9 = vadd.f32 1e-05, %v1938_v29 }
 0xb16   : > { %v1953_v32 = vpop.permute.xlu0 %1952 }
 0xb17   : > { %2959 = vrsqrt.f32 %v1939_v9  ;;  %v3916_v9 = vpop.permute.xlu1 %2366 }
 0xb1b   : > { %v2124_v47 = vpop.permute.xlu0 %2123 }
 0xb1c   : > { %v2130_v22 = vmul.f32 %v2124_v47, %v3830_v55  ;;  %v2131_v27 = vmul.f32 %v2124_v47, %v2117_v62  ;;  %v2129_v38 = vmul.f32 %v2124_v47, %v3822_v13 }
 0xb1e   : > { %2146 = vrot.lane.b32.xlu0 %v2130_v22, %s3016_s19  ;;  %2148 = vrot.lane.b32.xlu1 %v2131_v27, %s3016_s19 }
 0xb20   : > { %v3863_v11 = vpop.permute.xlu0 %2167 }
 0xb22   : > { %2144 = vrot.lane.b32.xlu1 %v2129_v38, %s3016_s19  ;;  %2084 = vrot.lane.b32.xlu0 %v2072_v8, %s2988_s23 }
 0xb24   : > { %v2960_v51 = vpop.eup %2959 }
 0xb25   : > { %v1941_v49 = vmul.f32 %v2960_v51, %v3803_v24  ;;  %v1942_v42 = vmul.f32 %v2960_v51, %v3805_v36  ;;  %v1943_v35 = vmul.f32 %v2960_v51, %v3807_v57  ;;  %v2274_v37 = vpop.permute.xlu0 %2273 }
 0xb26   : > { %2194 = vrot.lane.b32.xlu0 %v2178_v10, %s3030_s4  ;;  %v2280_v34 = vmul.f32 %v2274_v37, %v2117_v62 }
 0xb27   : > { %v1948_v46 = vmul.f32 %v3809_v33, %v1941_v49  ;;  %v1949_v59 = vmul.f32 %v3809_v33, %v1942_v42  ;;  %v1950_v21 = vmul.f32 %v3809_v33, %v1943_v35 }
 0xb29   : > { %v1955_v1 = vadd.f32 %v1953_v32, %v1948_v46  ;;  %v1956_v4 = vadd.f32 %v1953_v32, %v1949_v59  ;;  %v1957_v24 = vadd.f32 %v1953_v32, %v1950_v21  ;;  %v3918_v32 = vpop.permute.xlu1 %2002 }
 0xb2a   : > { %2242 = vrot.lane.b32.xlu0 %v2226_v45, %s3031_s5  ;;  %v3909_v6 = vpop.permute.xlu0 %2318 }
 0xb2b   : > { %vm1958_vm1 = vcmp.ge.f32.partialorder %v1955_v1, 0.0  ;;  %v1965_v36 = vmul.f32 %v3819_v23, %v1955_v1  ;;  %vm1959_vm11 = vcmp.ge.f32.partialorder %v1956_v4, 0.0  ;;  %v1966_v57 = vmul.f32 %v3819_v23, %v1956_v4 }
 0xb2c   : > { %v1967_v54 = vmul.f32 %v3819_v23, %v1957_v24  ;;  %vm1960_vm12 = vcmp.ge.f32.partialorder %v1957_v24, 0.0  ;;  %v2179_v23 = vmul.f32 %v2172_v26, %v2117_v62  ;;  %v2327_v44 = vmul.f32 %v3909_v6, %v3900_v0 }
 0xb2d   : > { %v1968_v53 = vsel %vm1958_vm1, %v1955_v1, %v1965_v36  ;;  %v1969_v31 = vsel %vm1959_vm11, %v1956_v4, %v1966_v57  ;;  %v3920_v26 = vpop.permute.xlu1 %2044 }
 0xb2e   : > { %2296 = vrot.lane.b32.xlu0 %v2280_v34, %s3048_s25  ;;  %v1971_v33 = vmul.f32 %v3216_v52, %v1968_v53  ;;  %v1972_v5 = vmul.f32 %v3219_v56, %v1969_v31  ;;  %v1970_v39 = vsel %vm1960_vm12, %v1957_v24, %v1967_v54 }
 0xb2f   : > { %v1973_v48 = vmul.f32 %v3222_v58, %v1970_v39  ;;  %v3924_v47 = vpop.permute.xlu0 %2007 }
 0xb30   : > { %1977 = vrot.lane.b32.xlu1 %v1971_v33, %s2978_s20 }
 0xb31   : > { %v3922_v62 = vpop.permute.xlu1 %2042 }
 0xb32   : > { %2345 = vrot.lane.b32.xlu0 %v2329_v41, %s2987_s22 }
 0xb33   : > { %v2047_v27 = vpop.permute.xlu0 %2046 }
 0xb34   : > { %1979 = vrot.lane.b32.xlu1 %v1972_v5, %s2978_s20 }
 0xb35   : > { %v3926_v22 = vpop.permute.xlu1 %2094 }
 0xb36   : > { %2418 = vperm.xlu0 %2947, %v3779_v25   ;;  %v2267_v25 = vld [vmem:[#allocation2 + $0x48] sm:$0xff] }
 0xb37   : > { %v2281_v2 = vmul.f32 %v2274_v37, %v2267_v25  ;;  %v2330_v30 = vmul.f32 %v2323_v19, %v2267_v25  ;;  %v2378_v29 = vmul.f32 %v2371_v14, %v2267_v25  ;;  %v3932_v38 = vpop.permute.xlu0 %2092 }
 0xb38   : > { %1981 = vrot.lane.b32.xlu1 %v1973_v48, %s2978_s20 }
 0xb39   : > { %v3928_v20 = vpop.permute.xlu1 %2090 }
 0xb3a   : > { %2393 = vrot.lane.b32.xlu0 %v2377_v12, %s2989_s24 }
 0xb3b   : > { %v3934_v51 = vpop.permute.xlu0 %2036 }
 0xb3c   : > { %2196 = vrot.lane.b32.xlu1 %v2179_v23, %s3030_s4 }
 0xb3e   : > { %2414 = vperm.xlu0 %2947, %v3785_v63   ;;  %v2279_v63 = vmul.f32 %v2274_v37, %v3830_v55 }
 0xb40   : > { %2192 = vrot.lane.b32.xlu1 %v2177_v15, %s3030_s4 }
 0xb42   : > { %2391 = vrot.lane.b32.xlu0 %v2376_v43, %s2989_s24 }
 0xb44   : > { %2244 = vrot.lane.b32.xlu1 %v2227_v3, %s3031_s5 }
 0xb48   : > { %2240 = vrot.lane.b32.xlu1 %v2225_v60, %s3031_s5 }
 0xb4c   : > { %2298 = vrot.lane.b32.xlu1 %v2281_v2, %s3048_s25 }
 0xb50   : > { %2294 = vrot.lane.b32.xlu1 %v2279_v63, %s3048_s25  ;;  %v2013_v63 = vmul.f32 %v3794_v17, %v3924_v47 }
 0xb54   : > { %2292 = vrot.lane.b32.xlu1 %v2278_v18, %s3048_s25 }
 0xb58   : > { %2347 = vrot.lane.b32.xlu1 %v2330_v30, %s2987_s22 }
 0xb5c   : > { %2343 = vrot.lane.b32.xlu1 %v2328_v16, %s2987_s22 }
 0xb60   : > { %2341 = vrot.lane.b32.xlu1 %v2327_v44, %s2987_s22  ;;  %v2014_v44 = vmul.f32 %v3924_v47, %v3822_v13 }
 0xb64   : > { %2395 = vrot.lane.b32.xlu1 %v2378_v29, %s2989_s24  ;;  %v2050_v29 = vsel %vm296_vm4, %v3922_v62, %v3920_v26 }
 0xb90   : > { %v3930_v8 = vpop.permute.xlu1 %2148  ;;  %v3938_v49 = vpop.permute.xlu0 %2146 }
 0xb94   : > { %v3936_v10 = vpop.permute.xlu1 %2144  ;;  %v3942_v59 = vpop.permute.xlu0 %2084 }
 0xb95   : > { %v2152_v62 = vsel %vm1578_vm8, %v3936_v10, %v3938_v49 }
 0xb98   : > { %v3951_v37 = vpop.permute.xlu0 %2194 }
 0xb9c   : > { %v3965_v33 = vpop.permute.xlu0 %2242 }
 0xba0   : > { %v3977_v39 = vpop.permute.xlu0 %2296 }
 0xba2   : > { %v1978_v42 = vpop.permute.xlu1 %1977 }
 0xba3   : > { %1988 = vst.msk [vmem:[#allocation2 + $0x8] sm:$0xf] %vm749_vm9, %v1978_v42  ;;  %vm4165_vm9 = vcmask 908288  }
 0xba4   : > { %v3987_v15 = vpop.permute.xlu0 %2345 }
 0xba6   : > { %v1980_v35 = vpop.permute.xlu1 %1979 }
 0xba7   : > { %v1983_v46 = vsel %vm172_vm0, %v1978_v42, %v1980_v35  ;;  %v2099_v42 = vsel %vm322_vm5, %v3932_v38, %v3926_v22 }
 0xba8   : > { %1989 = vst [vmem:[#allocation2 + $0x10] sm:$0xf] %v1983_v46 }
 0xbaa   : > { %v1982_v21 = vpop.permute.xlu1 %1981  ;;  %v3944_v45 = vld [vmem:[#allocation2 + $0x8] sm:$0xff] }
 0xbab   : > { %v1984_v1 = vsel %vm172_vm0, %v1980_v35, %v1982_v21  ;;  %v2025_v4 = vmul.f32 %v3827_v7, %v3944_v45  ;;  %v2073_v36 = vmul.f32 %v3849_v28, %v3944_v45  ;;  %v2126_v53 = vmul.f32 %v3851_v61, %v3944_v45 }
 0xbac   : > { %1990 = vst.msk [vmem:[#allocation2 + $0x18] sm:$0xf] %vm752_vm10, %v1984_v1  ;;  %v2061_v35 = vadd.f32 %v2050_v29, %v2013_v63  ;;  %vm2300_vm0 = vcmask 916480   ;;  %vm4166_vm10 = vmmov %vm4165_vm9 }
 0xbad   : > { %2038 = vrot.lane.b32.xlu0 %v2025_v4, %s2986_s21 }
 0xbae   : > { %v3953_v24 = vpop.permute.xlu1 %2196 }
 0xbaf   : > { %v3957_v57 = vld [vmem:[#allocation2 + $0x10] sm:$0xff] }
 0xbb0   : > { %v2026_v34 = vmul.f32 %v3827_v7, %v3957_v57  ;;  %v2074_v54 = vmul.f32 %v3849_v28, %v3957_v57  ;;  %v2174_v7 = vmul.f32 %v3863_v11, %v3944_v45  ;;  %v2222_v28 = vmul.f32 %v3859_v50, %v3944_v45 }
 0xbb1   : > { %2086 = vrot.lane.b32.xlu0 %v2073_v36, %s2988_s23  ;;  %v2127_v23 = vmul.f32 %v3851_v61, %v3957_v57  ;;  %v2175_v25 = vmul.f32 %v3863_v11, %v3957_v57  ;;  %v3994_v60 = vpop.permute.xlu0 %2418  ;;  %v2276_v2 = vmul.f32 %v3870_v40, %v3957_v57  ;;  %v2223_v16 = vmul.f32 %v3859_v50, %v3957_v57 }
 0xbb2   : > { %2040 = vrot.lane.b32.xlu1 %v2026_v34, %s2986_s21  ;;  %v2193_v19 = vpop.permute.xlu1 %2192 }
 0xbb3   : > { %v2114_v31 = vld [vmem:[#allocation2 + $0x18] sm:$0xff]  ;;  %v2200_v36 = vsel %vm1630_vm14, %v2193_v19, %v3951_v37 }
 0xbb4   : > { %v2128_v5 = vmul.f32 %v3851_v61, %v2114_v31  ;;  %v2176_v48 = vmul.f32 %v3863_v11, %v2114_v31  ;;  %v2224_v43 = vmul.f32 %v3859_v50, %v2114_v31  ;;  %v2015_v61 = vmul.f32 %v3924_v47, %v3830_v55 }
 0xbb5   : > { %2138 = vrot.lane.b32.xlu0 %v2126_v53, %s3016_s19  ;;  %v2051_v11 = vsel %vm296_vm4, %v3920_v26, %v2047_v27  ;;  %v2325_v55 = vmul.f32 %v3909_v6, %v3957_v57  ;;  %v2394_v13 = vpop.permute.xlu0 %2393  ;;  %v2153_v26 = vsel %vm1578_vm8, %v3938_v49, %v3930_v8  ;;  %v2374_v1 = vmul.f32 %v3916_v9, %v2114_v31 }
 0xbb6   : > { %2088 = vrot.lane.b32.xlu1 %v2074_v54, %s2988_s23  ;;  %v3971_v41 = vpop.permute.xlu1 %2244  ;;  %v2063_v30 = vadd.f32 %v2047_v27, %v2015_v61  ;;  %v2098_v27 = vsel %vm322_vm5, %v3928_v20, %v3932_v38  ;;  %v2062_v50 = vadd.f32 %v2051_v11, %v2014_v44  ;;  %v2277_v20 = vmul.f32 %v3870_v40, %v2114_v31 }
 0xbb7   : > { %v2109_v21 = vadd.f32 %v2098_v27, %v2061_v35  ;;  %v2326_v54 = vmul.f32 %v3909_v6, %v2114_v31  ;;  %v2375_v31 = vmul.f32 %v3916_v9, %v3900_v0 }
 0xbb8   : > { %v2111_v46 = vadd.f32 %v3926_v22, %v2063_v30  ;;  %v2110_v38 = vadd.f32 %v2099_v42, %v2062_v50  ;;  %v2201_v22 = vsel %vm1630_vm14, %v3951_v37, %v3953_v24 }
 0xbb9   : > { %2186 = vrot.lane.b32.xlu0 %v2174_v7, %s3030_s4  ;;  %v2163_v53 = vadd.f32 %v2152_v62, %v2109_v21  ;;  %v4049_v7 = vpop.permute.xlu0 %2414 }
 0xbba   : > { %2142 = vrot.lane.b32.xlu1 %v2128_v5, %s3016_s19  ;;  %v2241_v14 = vpop.permute.xlu1 %2240  ;;  %v2165_v4 = vadd.f32 %v3930_v8, %v2111_v46  ;;  %v2164_v34 = vadd.f32 %v2153_v26, %v2110_v38  ;;  %v2249_v8 = vsel %vm1682_vm3, %v3965_v33, %v3971_v41  ;;  %v2373_v5 = vmul.f32 %v3916_v9, %v3957_v57 }
 0xbbb   : > { %v2248_v49 = vsel %vm1682_vm3, %v2241_v14, %v3965_v33  ;;  %v2211_v19 = vadd.f32 %v2200_v36, %v2163_v53  ;;  %v2011_v53 = vmul.f32 %v3918_v32, %v3944_v45 }
 0xbbc   : > { %v2213_v10 = vadd.f32 %v3953_v24, %v2165_v4  ;;  %v2212_v37 = vadd.f32 %v2201_v22, %v2164_v34  ;;  %v2010_v34 = vmul.f32 %v3794_v17, %v3918_v32 }
 0xbbd   : > { %2234 = vrot.lane.b32.xlu0 %v2222_v28, %s3031_s5  ;;  %v2259_v14 = vadd.f32 %v2248_v49, %v2211_v19 }
 0xbbe   : > { %2190 = vrot.lane.b32.xlu1 %v2176_v48, %s3030_s4  ;;  %v2299_v12 = vpop.permute.xlu1 %2298  ;;  %v2261_v28 = vadd.f32 %v3971_v41, %v2213_v10  ;;  %v2260_v33 = vadd.f32 %v2249_v8, %v2212_v37 }
 0xbbf   : > { %v2304_v24 = vsel %vm2300_vm0, %v3977_v39, %v2299_v12 }
 0xbc1   : > { %2140 = vrot.lane.b32.xlu0 %v2127_v23, %s3016_s19  ;;  %v2316_v23 = vadd.f32 %v2299_v12, %v2261_v28 }
 0xbc2   : > { %2238 = vrot.lane.b32.xlu1 %v2224_v43, %s3031_s5  ;;  %v2295_v3 = vpop.permute.xlu1 %2294 }
 0xbc3   : > { %v2303_v48 = vsel %vm2300_vm0, %v2295_v3, %v3977_v39 }
 0xbc4   : > { %v2314_v39 = vadd.f32 %v2303_v48, %v2259_v14 }
 0xbc5   : > { %2188 = vrot.lane.b32.xlu0 %v2175_v25, %s3030_s4  ;;  %v2315_v25 = vadd.f32 %v2304_v24, %v2260_v33 }
 0xbc6   : > { %2288 = vrot.lane.b32.xlu1 %v2276_v2, %s3048_s25  ;;  %v4004_v18 = vpop.permute.xlu1 %2292  ;;  %v2392_v2 = vpop.permute.xlu0 %2391 }
 0xbc7   : > { %v2399_v9 = vsel %vm4168_vm6, %v2392_v2, %v2394_v13 }
 0xbc9   : > { %2236 = vrot.lane.b32.xlu0 %v2223_v16, %s3031_s5 }
 0xbca   : > { %2337 = vrot.lane.b32.xlu1 %v2325_v55, %s2987_s22  ;;  %v2348_v47 = vpop.permute.xlu1 %2347 }
 0xbcb   : > { %v2352_v41 = vsel %vm4165_vm9, %v3987_v15, %v2348_v47  ;;  %v2364_v3 = vadd.f32 %v2348_v47, %v2316_v23 }
 0xbcc   : > { %v2363_v61 = vadd.f32 %v2352_v41, %v2315_v25 }
 0xbcd   : > { %2290 = vrot.lane.b32.xlu0 %v2277_v20, %s3048_s25  ;;  %v2012_v20 = vmul.f32 %v3918_v32, %v3957_v57 }
 0xbce   : > { %2387 = vrot.lane.b32.xlu1 %v2374_v1, %s2989_s24  ;;  %v2344_v40 = vpop.permute.xlu1 %2343 }
 0xbcf   : > { %v2351_v43 = vsel %vm4166_vm10, %v2344_v40, %v3987_v15 }
 0xbd0   : > { %v2362_v63 = vadd.f32 %v2351_v43, %v2314_v39 }
 0xbd1   : > { %2339 = vrot.lane.b32.xlu0 %v2326_v54, %s2987_s22 }
 0xbd2   : > { %2385 = vrot.lane.b32.xlu1 %v2373_v5, %s2989_s24  ;;  %v4060_v6 = vpop.permute.xlu1 %2341  ;;  %v2410_v44 = vadd.f32 %v2399_v9, %v2362_v63 }
 0xbd4   : > { %v2424_v55 = vadd.f32 %v3994_v60, %v2410_v44 }
 0xbd5   : > { %2389 = vrot.lane.b32.xlu0 %v2375_v31, %s2989_s24 }
 0xbd6   : > { %v2396_v11 = vpop.permute.xlu1 %2395 }
 0xbd7   : > { %v2400_v30 = vsel %vm4167_vm15, %v2394_v13, %v2396_v11  ;;  %v2412_v16 = vadd.f32 %v2396_v11, %v2364_v3 }
 0xbd8   : > { %v2411_v0 = vadd.f32 %v2400_v30, %v2363_v61 }
 0xbd9   : > { %v2426_v12 = vadd.f32 %v3994_v60, %v2412_v16 }
 0xbda   : > { %v2425_v15 = vadd.f32 %v3994_v60, %v2411_v0 }
 0xbdb   : > { %2449 = vrot.lane.b32.xlu1 %v2426_v12, %s3048_s25 }
 0xbdc   : > { %2447 = vrot.lane.b32.xlu0 %v2425_v15, %s3048_s25 }
 0xbe0   : > { %2445 = vrot.lane.b32.xlu0 %v2424_v55, %s3048_s25 }
 0xc1f   : > { %v2039_v29 = vpop.permute.xlu0 %2038 }
 0xc20   : > { %v2048_v60 = vsel %vm296_vm4, %v3934_v51, %v2039_v29 }
 0xc21   : > { %v2058_v8 = vadd.f32 %v2048_v60, %v2010_v34 }
 0xc23   : > { %v2087_v42 = vpop.permute.xlu0 %2086 }
 0xc24   : > { %v2041_v27 = vpop.permute.xlu1 %2040  ;;  %v2096_v40 = vsel %vm322_vm5, %v3942_v59, %v2087_v42 }
 0xc25   : > { %v2060_v21 = vadd.f32 %v2041_v27, %v2012_v20  ;;  %v2049_v4 = vsel %vm296_vm4, %v2039_v29, %v2041_v27  ;;  %v2106_v28 = vadd.f32 %v2096_v40, %v2058_v8  ;;  %vm4169_vm4 = vmmov %vm4165_vm9 }
 0xc26   : > { %v2059_v49 = vadd.f32 %v2049_v4, %v2011_v53 }
 0xc27   : > { %v2139_v50 = vpop.permute.xlu0 %2138 }
 0xc28   : > { %v2089_v35 = vpop.permute.xlu1 %2088 }
 0xc29   : > { %v2108_v22 = vadd.f32 %v2089_v35, %v2060_v21  ;;  %v2097_v57 = vsel %vm322_vm5, %v2087_v42, %v2089_v35  ;;  %vm4170_vm5 = vmmov %vm4169_vm4  ;;  %v3049_v42 = vmov 58  }
 0xc2a   : > { %v2107_v24 = vadd.f32 %v2097_v57, %v2059_v49  ;;  %2948 = vset.pattern.permute.xlu0 %v3049_v42 }
 0xc2b   : > { %v2187_v47 = vpop.permute.xlu0 %2186 }
 0xc2c   : > { %v2143_v13 = vpop.permute.xlu1 %2142 }
 0xc2d   : > { %v2162_v10 = vadd.f32 %v2143_v13, %v2108_v22  ;;  %v2427_v22 = vld [vmem:[%s4145_s2 + $0xc] sm:$0xf] }
 0xc2f   : > { %v2235_v46 = vpop.permute.xlu0 %2234 }
 0xc30   : > { %v2191_v26 = vpop.permute.xlu1 %2190 }
 0xc31   : > { %v2210_v51 = vadd.f32 %v2191_v26, %v2162_v10 }
 0xc33   : > { %v2141_v62 = vpop.permute.xlu0 %2140 }
 0xc34   : > { %v2239_v38 = vpop.permute.xlu1 %2238  ;;  %v2150_v37 = vsel %vm1578_vm8, %v2139_v50, %v2141_v62  ;;  %v2151_v19 = vsel %vm1578_vm8, %v2141_v62, %v2143_v13  ;;  %vm4171_vm8 = vmmov %vm4168_vm6 }
 0xc35   : > { %v2258_v48 = vadd.f32 %v2239_v38, %v2210_v51  ;;  %v2160_v59 = vadd.f32 %v2150_v37, %v2106_v28  ;;  %v2161_v33 = vadd.f32 %v2151_v19, %v2107_v24 }
 0xc37   : > { %v2189_v1 = vpop.permute.xlu0 %2188  ;;  %v2313_v39 = vadd.f32 %v4004_v18, %v2258_v48 }
 0xc38   : > { %v2289_v36 = vpop.permute.xlu1 %2288  ;;  %v2198_v32 = vsel %vm1630_vm14, %v2187_v47, %v2189_v1  ;;  %v2199_v45 = vsel %vm1630_vm14, %v2189_v1, %v2191_v26  ;;  %vm4172_vm14 = vmmov %vm4168_vm6  ;;  %v1993_v26 = vld [vmem:[%s4144_s1] sm:$0xf] }
 0xc39   : > { %v2208_v43 = vadd.f32 %v2198_v32, %v2160_v59  ;;  %v2209_v25 = vadd.f32 %v2199_v45, %v2161_v33  ;;  %v2361_v44 = vadd.f32 %v4060_v6, %v2313_v39  ;;  %v3050_v45 = vmov 59  }
 0xc3a   : > { %2949 = vset.pattern.permute.xlu1 %v3050_v45  ;;  %v3051_v59 = vmov 60   ;;  %v3052_v33 = vmov 61  }
 0xc3b   : > { %v2237_v54 = vpop.permute.xlu0 %2236 }
 0xc3c   : > { %v2338_v5 = vpop.permute.xlu1 %2337  ;;  %v2246_v31 = vsel %vm1682_vm3, %v2235_v46, %v2237_v54  ;;  %v2247_v23 = vsel %vm1682_vm3, %v2237_v54, %v2239_v38  ;;  %vm2461_vm3 = vcmask 130048  }
 0xc3d   : > { %v2256_v61 = vadd.f32 %v2246_v31, %v2208_v43  ;;  %v2257_v63 = vadd.f32 %v2247_v23, %v2209_v25 }
 0xc3f   : > { %v2291_v14 = vpop.permute.xlu0 %2290 }
 0xc40   : > { %v2388_v41 = vpop.permute.xlu1 %2387  ;;  %v2301_v3 = vsel %vm2300_vm0, %v2289_v36, %v2291_v14  ;;  %v2302_v2 = vsel %vm2300_vm0, %v2291_v14, %v4004_v18 }
 0xc41   : > { %v2311_v0 = vadd.f32 %v2301_v3, %v2256_v61  ;;  %v2312_v9 = vadd.f32 %v2302_v2, %v2257_v63 }
 0xc43   : > { %v2340_v11 = vpop.permute.xlu0 %2339 }
 0xc44   : > { %v2349_v30 = vsel %vm4169_vm4, %v2338_v5, %v2340_v11  ;;  %v2350_v16 = vsel %vm4170_vm5, %v2340_v11, %v4060_v6  ;;  %v2386_v12 = vpop.permute.xlu1 %2385 }
 0xc45   : > { %v2359_v15 = vadd.f32 %v2349_v30, %v2311_v0  ;;  %v2360_v55 = vadd.f32 %v2350_v16, %v2312_v9  ;;  %v2397_v18 = vsel %vm4171_vm8, %v2386_v12, %v2388_v41 }
 0xc47   : > { %v2390_v29 = vpop.permute.xlu0 %2389  ;;  %v2407_v13 = vadd.f32 %v2397_v18, %v2359_v15 }
 0xc48   : > { %v2398_v27 = vsel %vm4172_vm14, %v2388_v41, %v2390_v29  ;;  %v2409_v50 = vadd.f32 %v2390_v29, %v2361_v44 }
 0xc49   : > { %v2408_v35 = vadd.f32 %v2398_v27, %v2360_v55  ;;  %v2421_v20 = vadd.f32 %v4049_v7, %v2407_v13 }
 0xc4a   : > { %v2423_v47 = vadd.f32 %v4049_v7, %v2409_v50 }
 0xc4b   : > { %v2422_v46 = vadd.f32 %v4049_v7, %v2408_v35 }
 0xc4c   : > { %2443 = vrot.lane.b32.xlu0 %v2423_v47, %s3048_s25 }
 0xc4d   : > { %2441 = vrot.lane.b32.xlu1 %v2422_v46, %s3048_s25  ;;  %v2450_v6 = vpop.permute.xlu1 %2449 }
 0xc4e   : > { %v2448_v62 = vpop.permute.xlu0 %2447  ;;  %2785 = vmatpush3.msra.mxu1 %v2450_v6 }
 0xc4f   : > { %v2454_v38 = vsel %vm2300_vm0, %v2448_v62, %v2450_v6  ;;  %2786 = vmatprep.subr.mxu1 %v3794_v17 }
 0xc50   : > { %2493 = vmatprep.subr.mxu0 %v2454_v38  ;;  %2430 = vperm.xlu0 %2948, %v1993_v26  }
 0xc51   : > { %2439 = vrot.lane.b32.xlu1 %v2421_v20, %s3048_s25 }
 0xc52   : > { %v2446_v21 = vpop.permute.xlu0 %2445 }
 0xc53   : > { %v2453_v1 = vsel %vm2300_vm0, %v2446_v21, %v2448_v62 }
 0xc54   : > { %2494 = vmatpush1.msra.mxu0 %v2453_v1  ;;  %2950 = vset.pattern.permute.xlu0 %v3051_v59 }
 0xcbe   : > { %v2444_v60 = vpop.permute.xlu0 %2443 }
 0xcbf   : > { %2787 = vmatpush3.msra.mxu1 %v2444_v60  ;;  %v2442_v4 = vpop.permute.xlu1 %2441 }
 0xcc0   : > { %v2452_v7 = vsel %vm2300_vm0, %v2442_v4, %v2444_v60  ;;  %2789 = vmatmul.mubr.msk.f32.vlgmr.msra.gmra.mxu1 %vm2461_vm3, %v2427_v22 }
 0xcc1   : > { %2495 = vmatprep.subr.mxu0 %v2452_v7 }
 0xcc3   : > { %v2440_v17 = vpop.permute.xlu1 %2439 }
 0xcc4   : > { %v2451_v36 = vsel %vm2300_vm0, %v2440_v17, %v2442_v4 }
 0xcc5   : > { %2496 = vmatpush1.msra.mxu0 %v2451_v36 }
 0xcc6   : > { %2753 = vmatmul.mubr.msk.f32.vlgmr.msra.gmra.mxu0 %vm2461_vm3, %v2427_v22 }
 0xccb   : > { %v2431_v40 = vpop.permute.xlu0 %2430 }
 0xd80   : > { %v2602_v34 = vpop.f32.mrf.mxu1 }
 0xd81   : > { %v2603_v8 = vadd.f32 %v2602_v34, %v2431_v40 }
 0xd82   : > { %v2790_v53 = vpop.f32.mrf.mxu1 }
 0xd83   : > { %v2608_v19 = vmul.f32 %v3222_v58, %v2603_v8 }
 0xd85   : > { %v2612_v48 = vsel %vm676_vm2, %v2608_v19, 0.0 }
 0xd86   : > { %v2531_v57 = vpop.f32.mrf.mxu0 }
 0xd87   : > { %v2532_v10 = vadd.f32 %v2531_v57, %v2431_v40 }
 0xd88   : > { %v2533_v49 = vpop.f32.mrf.mxu0 }
 0xd89   : > { %v2606_v54 = vmul.f32 %v3216_v52, %v2532_v10  ;;  %v2534_v51 = vadd.f32 %v2533_v49, %v2431_v40 }
 0xd8b   : > { %v2607_v37 = vmul.f32 %v3219_v56, %v2534_v51  ;;  %v2609_v5 = vsel %vm522_vm13, %v2606_v54, 0.0 }
 0xd8d   : > { %v2610_v28 = vsel %vm522_vm13, %v2607_v37, 0.0 }
 0xd8e   : > { %v2611_v24 = vadd.f32 %v2610_v28, %v2609_v5 }
 0xd90   : > { %v2613_v32 = vadd.f32 %v2612_v48, %v2611_v24 }
 0xd92   : > { %2614 = vadd.xlane.f32.xlu1 %v2613_v32 }
 0xda3   : > { %2641 = vperm.xlu1 %2949, %v1993_v26  }
 0xda7   : > { %2951 = vset.pattern.permute.xlu1 %v3052_v33 }
 0xda8   : > { %2658 = vperm.xlu1 %2951, %v1993_v26  }
 0xe1b   : > { %v2615_v14 = vpop.xlane.xlu1 %2614 }
 0xe1c   : > { %v2616_v31 = vmul.f32 0.00390625, %v2615_v14 }
 0xe1e   : > { %v2617_v23 = vsub.f32 %v2606_v54, %v2616_v31  ;;  %v2618_v41 = vsub.f32 %v2607_v37, %v2616_v31  ;;  %v2619_v43 = vsub.f32 %v2608_v19, %v2616_v31  ;;  %v2630_v16 = vmul.f32 16.0, %v2616_v31 }
 0xe1f   : > { %v2642_v29 = vpop.permute.xlu1 %2641 }
 0xe20   : > { %v2620_v25 = vmul.f32 %v2617_v23, %v2617_v23  ;;  %v2621_v39 = vmul.f32 %v2618_v41, %v2618_v41  ;;  %v2622_v3 = vmul.f32 %v2619_v43, %v2619_v43  ;;  %v2631_v0 = vmul.f32 %v2630_v16, %v2616_v31 }
 0xe22   : > { %v2623_v2 = vsel %vm522_vm13, %v2620_v25, 0.0  ;;  %v2624_v61 = vsel %vm522_vm13, %v2621_v39, 0.0  ;;  %v2626_v11 = vsel %vm676_vm2, %v2622_v3, 0.0 }
 0xe23   : > { %v2625_v63 = vadd.f32 %v2624_v61, %v2623_v2  ;;  %v2659_v6 = vpop.permute.xlu1 %2658 }
 0xe25   : > { %v2627_v30 = vadd.f32 %v2626_v11, %v2625_v63 }
 0xe27   : > { %2628 = vadd.xlane.f32.xlu0 %v2627_v30 }
 0xe3d   : > { %2648 = vperm.xlu0 %2950, %v1993_v26  }
 0xe41   : > { %2952 = vset.pattern.permute.xlu0 %v3052_v33 }
 0xeb0   : > { %v2629_v9 = vpop.xlane.xlu0 %2628 }
 0xeb1   : > { %v2632_v12 = vsub.f32 %v2629_v9, %v2631_v0 }
 0xeb3   : > { %v2633_v44 = vmul.f32 0.00390625, %v2632_v12 }
 0xeb5   : > { %v2634_v15 = vmax.f32 %v2633_v44, 0.0 }
 0xeb7   : > { %v2635_v55 = vadd.f32 1e-05, %v2634_v15 }
 0xeb8   : > { %v2649_v35 = vpop.permute.xlu0 %2648 }
 0xeb9   : > { %2961 = vrsqrt.f32 %v2635_v55 }
 0xec6   : > { %v2962_v42 = vpop.eup %2961 }
 0xec7   : > { %v2637_v18 = vmul.f32 %v2962_v42, %v2617_v23  ;;  %v2638_v27 = vmul.f32 %v2962_v42, %v2618_v41  ;;  %v2639_v50 = vmul.f32 %v2962_v42, %v2619_v43 }
 0xec9   : > { %v2644_v47 = vmul.f32 %v2642_v29, %v2637_v18  ;;  %v2645_v13 = vmul.f32 %v2642_v29, %v2638_v27  ;;  %v2646_v46 = vmul.f32 %v2642_v29, %v2639_v50 }
 0xecb   : > { %v2651_v26 = vadd.f32 %v2649_v35, %v2644_v47  ;;  %v2652_v62 = vadd.f32 %v2649_v35, %v2645_v13  ;;  %v2653_v20 = vadd.f32 %v2649_v35, %v2646_v46 }
 0xecd   : > { %vm2654_vm13 = vcmp.ge.f32.partialorder %v2651_v26, 0.0  ;;  %vm2655_vm7 = vcmp.ge.f32.partialorder %v2652_v62, 0.0  ;;  %vm2656_vm1 = vcmp.ge.f32.partialorder %v2653_v20, 0.0  ;;  %v2661_v38 = vmul.f32 %v2659_v6, %v2651_v26 }
 0xece   : > { %v2662_v21 = vmul.f32 %v2659_v6, %v2652_v62  ;;  %v2663_v1 = vmul.f32 %v2659_v6, %v2653_v20 }
 0xecf   : > { %v2664_v60 = vsel %vm2654_vm13, %v2651_v26, %v2661_v38 }
 0xed0   : > { %v2665_v4 = vsel %vm2655_vm7, %v2652_v62, %v2662_v21  ;;  %v2666_v22 = vsel %vm2656_vm1, %v2653_v20, %v2663_v1  ;;  %v2667_v7 = vmul.f32 %v3216_v52, %v2664_v60 }
 0xed1   : > { %v2668_v17 = vmul.f32 %v3219_v56, %v2665_v4  ;;  %v2669_v36 = vmul.f32 %v3222_v58, %v2666_v22 }
 0xed3   : > { %v2672_v34 = vcombine.low %v2667_v7, %v2668_v17  ;;  %2675 = vst.msk [vmem:[%s170_s26 + $0x8] sm:$0xf] %vm676_vm2, %v2669_v36 }
 0xed5   : > { %2674 = vst [vmem:[%s170_s26] sm:$0xff] %v2672_v34 }
 0xed6 PF: > { %s13_s12 = sadd.s32 1, %s2972_s12  }
 0xed7   : > { %p10_p4 = scmp.ge.s32.totalorder %s13_s12, 4  }
 0xed9   :  { %12 = sbr.rel (!%p10_p4) target bundleno = 1 (0x1), region = 62 }

</bundles_post_ra>
